<compile_context>
chip_gen: v7x
topology: tpu7x:2x2x1
jax: 0.10.0
libtpu: 0.0.40
codegen_flags: <defaults>
</compile_context>

<pallas_src>
import functools

import jax
import jax.numpy as jnp
from jax import lax
from jax.experimental import pallas as pl
from jax.experimental.pallas import tpu as pltpu

_LANE = 128                         # lane width (f32 / bf16)
_SUB = 16                           # bf16 sublane packing (covers f32's 8 too)
_VMEM_LIMIT = 48 * 1024 * 1024      # safe on v5e/v6e (128 MiB) and v7x (64 MiB)
_TILE_BUDGET = 24 * 1024 * 1024     # per-step working-set budget (v7x-conservative)


def _round_up(x, m):
    return (x + m - 1) // m * m


def _pad_last(x, size):
    pad = size - x.shape[-1]
    if pad == 0:
        return x
    return jnp.pad(x, [(0, 0)] * (x.ndim - 1) + [(0, pad)])


def _pick_row_tile(h, w, cin_p, cout_p, budget=_TILE_BUDGET):
    """Largest row tile TH dividing H whose per-step working set fits `budget`.

    Working set: double-buffered bf16 halo input tile + 3 kw-shifted copies,
    double-buffered bf16 output tile, f32 accumulator, bf16 weights.
    `budget` is conservative for v7x (64 MiB physical VMEM); v5e/v6e could
    take roughly 2x larger tiles.
    """
    wp = _round_up(w + 2, _SUB)
    best = 1
    for th in range(1, h + 1):
        if h % th:
            continue
        est = (2 * (th + 2) * wp * cin_p * 2      # input halo tile, double buffered
               + 3 * (th + 2) * w * cin_p * 2     # kw-shifted copies
               + 2 * th * w * cout_p * 2          # output tile, double buffered
               + th * w * cout_p * 4              # f32 accumulator
               + 2 * 9 * cin_p * cout_p * 2)      # weights, double buffered
        if est <= budget:
            best = th
    return best


def _halo_row_tiles(x_nhwc, th, wp):
    """(N, H, W, C) -> (N, H//th, th+2, wp, C) overlapping zero-padded row tiles.

    Replaces the per-block jnp.pad of the previous version: one fused XLA copy
    producing a layout that plain Blocked BlockSpecs can pipeline (no manual
    DMA, megacore-safe); halo duplication overhead is only 2/th rows.
    """
    n, h, w, c = x_nhwc.shape
    nh = h // th
    xp = jnp.pad(x_nhwc, ((0, 0), (1, 1), (1, wp - w - 1), (0, 0)))
    tiles = [lax.slice_in_dim(xp, i * th, i * th + th + 2, axis=1)
             for i in range(nh)]
    return jnp.stack(tiles, axis=1)


# ----------------------------------------------------------------------------
# Shared in-kernel 3x3 tap accumulation (bf16 MXU matmuls, f32 scratch acc).
# ----------------------------------------------------------------------------
def _conv3x3_taps(x_tile, w_ref, acc_ref, th, w):
    """Accumulate the nine 3x3 taps of one (th, w) output tile into acc_ref.

    x_tile : (th+2, wp, cin) bf16, spatially zero/halo padded.
    w_ref  : (3, 3, cin, cout) bf16 weight ref.
    acc_ref: (th*w, cout) f32 VMEM scratch (fully overwritten each grid step).
    """
    cin = x_tile.shape[-1]
    # Hoist the kw (column) shift out of the tap loop: 3 shifted copies whose
    # flattened (w % 16 == 0) views keep every later row-range slice aligned,
    # instead of 9 unaligned slice+reshape relayouts feeding the MXU.
    xs = [x_tile[:, kw:kw + w, :].reshape((th + 2) * w, cin) for kw in range(3)]
    first = True
    for kh in range(3):
        lo = kh * w                       # multiple of w (and of 16): aligned rows
        for kw in range(3):
            t = jnp.dot(xs[kw][lo:lo + th * w, :], w_ref[kh, kw],
                        preferred_element_type=jnp.float32)
            if first:
                acc_ref[...] = t
                first = False
            else:
                acc_ref[...] += t


# ----------------------------------------------------------------------------
# Kernel 1: fused 3x3 conv (pad=1) + folded BatchNorm + ReLU (hidden blocks).
# ----------------------------------------------------------------------------
def conv3x3_bn_relu(x_nhwc, w_hwio, scale, bias, *, th):
    """One Conv2d(3x3, pad=1) + folded BN + ReLU block (bf16 in / bf16 out)."""
    n, h, w, cin = x_nhwc.shape
    cout = w_hwio.shape[-1]
    assert h % th == 0, (h, th)
    nh = h // th
    wp = _round_up(w + 2, _SUB)
    xt = _halo_row_tiles(x_nhwc, th, wp)

    def kernel(x_ref, w_ref, s_ref, b_ref, o_ref, acc_ref):
        _conv3x3_taps(x_ref[...], w_ref, acc_ref, th, w)
        y = jnp.maximum(acc_ref[...] * s_ref[...] + b_ref[...], 0.0)
        o_ref[...] = y.reshape(th, w, cout).astype(o_ref.dtype)

    return pl.pallas_call(
        kernel,
        out_shape=jax.ShapeDtypeStruct((n, h, w, cout), jnp.bfloat16),
        grid=(n, nh),
        in_specs=[
            pl.BlockSpec((None, None, th + 2, wp, cin),
                         lambda i, j: (i, j, 0, 0, 0)),
            pl.BlockSpec((3, 3, cin, cout), lambda i, j: (0, 0, 0, 0)),
            pl.BlockSpec((1, cout), lambda i, j: (0, 0)),
            pl.BlockSpec((1, cout), lambda i, j: (0, 0)),
        ],
        out_specs=pl.BlockSpec((None, th, w, cout), lambda i, j: (i, j, 0, 0)),
        scratch_shapes=[pltpu.VMEM((th * w, cout), jnp.float32)],
        compiler_params=pltpu.CompilerParams(
            dimension_semantics=("parallel", "parallel"),
            vmem_limit_bytes=_VMEM_LIMIT),
    )(xt, w_hwio, scale, bias)


# ----------------------------------------------------------------------------
# Kernel 2: final 3x3 conv + BN + ReLU fused with the 1x1 classifier.
# ----------------------------------------------------------------------------
def conv3x3_bn_relu_classifier(x_nhwc, w_hwio, scale, bias, w_cls_kc, b_cls_k,
                               *, th, num_classes):
    """Final conv block fused with the 1x1 classifier.

    Returns logits laid out as (N, H//th, num_classes, th*W) f32 — the spatial
    positions sit on the lane axis so stores are dense; the caller reshapes
    this tiny tensor to NCHW.
    """
    n, h, w, cin = x_nhwc.shape
    cout = w_hwio.shape[-1]
    kp = w_cls_kc.shape[0]
    assert h % th == 0, (h, th)
    nh = h // th
    wp = _round_up(w + 2, _SUB)
    xt = _halo_row_tiles(x_nhwc, th, wp)

    def kernel(x_ref, w_ref, s_ref, b_ref, wk_ref, bk_ref, o_ref, acc_ref):
        _conv3x3_taps(x_ref[...], w_ref, acc_ref, th, w)
        y = jnp.maximum(acc_ref[...] * s_ref[...] + b_ref[...], 0.0)
        # 1x1 classifier on the VMEM-resident activation:
        # (Kp, Cout) x (th*w, Cout)^T -> (Kp, th*w); spatial on the lane axis.
        z = lax.dot_general(wk_ref[...], y.astype(wk_ref.dtype),
                            dimension_numbers=(((1,), (1,)), ((), ())),
                            preferred_element_type=jnp.float32)
        z = z + bk_ref[...]
        o_ref[...] = z[:num_classes].astype(o_ref.dtype)

    return pl.pallas_call(
        kernel,
        out_shape=jax.ShapeDtypeStruct((n, nh, num_classes, th * w),
                                       jnp.float32),
        grid=(n, nh),
        in_specs=[
            pl.BlockSpec((None, None, th + 2, wp, cin),
                         lambda i, j: (i, j, 0, 0, 0)),
            pl.BlockSpec((3, 3, cin, cout), lambda i, j: (0, 0, 0, 0)),
            pl.BlockSpec((1, cout), lambda i, j: (0, 0)),
            pl.BlockSpec((1, cout), lambda i, j: (0, 0)),
            pl.BlockSpec((kp, cout), lambda i, j: (0, 0)),
            pl.BlockSpec((kp, 1), lambda i, j: (0, 0)),
        ],
        out_specs=pl.BlockSpec((None, None, num_classes, th * w),
                               lambda i, j: (i, j, 0, 0)),
        scratch_shapes=[pltpu.VMEM((th * w, cout), jnp.float32)],
        compiler_params=pltpu.CompilerParams(
            dimension_semantics=("parallel", "parallel"),
            vmem_limit_bytes=_VMEM_LIMIT),
    )(xt, w_hwio, scale, bias, w_cls_kc, b_cls_k)


# ----------------------------------------------------------------------------
# FCNHead parameter construction + forward (wrapper glue in plain JAX).
# ----------------------------------------------------------------------------
def init_fcn_head_params(key, num_classes, in_channels, out_channels,
                         num_convs, kernel_size=3):
    assert kernel_size == 3
    params = {"blocks": []}
    for i in range(num_convs):
        cin = in_channels if i == 0 else out_channels
        key, k1, k2, k3, k4, k5, k6 = jax.random.split(key, 7)
        blk = {
            "w": 0.1 * jax.random.normal(k1, (3, 3, cin, out_channels), jnp.float32),
            "b": 0.1 * jax.random.normal(k2, (out_channels,), jnp.float32),
            "gamma": jax.random.uniform(k3, (out_channels,), jnp.float32, 0.5, 1.5),
            "beta": 0.1 * jax.random.normal(k4, (out_channels,), jnp.float32),
            "mean": 0.1 * jax.random.normal(k5, (out_channels,), jnp.float32),
            "var": jax.random.uniform(k6, (out_channels,), jnp.float32, 0.5, 1.5),
        }
        params["blocks"].append(blk)
    key, k1, k2 = jax.random.split(key, 3)
    params["w_cls"] = 0.1 * jax.random.normal(
        k1, (out_channels, num_classes), jnp.float32)
    params["b_cls"] = 0.1 * jax.random.normal(k2, (num_classes,), jnp.float32)
    return params


def fcn_head_forward(params, x_nchw, *, eps=1e-5, th=None):
    """FCNHead forward (eval mode).  Input/output are NCHW (PyTorch convention)."""
    n, cin, h, w = x_nchw.shape
    blocks = params["blocks"]
    num_classes = params["w_cls"].shape[-1]
    hidden = params["w_cls"].shape[0]
    if th is None:
        th = _pick_row_tile(h, w, _round_up(cin, _LANE), _round_up(hidden, _LANE))
    assert h % th == 0, (h, th)

    # NCHW -> NHWC (channels on lanes), bf16 for the MXU, lane-pad channels.
    x = jnp.transpose(x_nchw, (0, 2, 3, 1)).astype(jnp.bfloat16)
    x = _pad_last(x, _round_up(cin, _LANE))

    for i, blk in enumerate(blocks):
        c_in, c_out = blk["w"].shape[2], blk["w"].shape[3]
        cin_p, cout_p = x.shape[-1], _round_up(c_out, _LANE)
        w_p = jnp.pad(blk["w"], ((0, 0), (0, 0), (0, cin_p - c_in),
                                 (0, cout_p - c_out))).astype(jnp.bfloat16)
        scale = blk["gamma"] * lax.rsqrt(blk["var"] + eps)
        bias = blk["beta"] + (blk["b"] - blk["mean"]) * scale   # fold BN + conv bias
        scale = _pad_last(scale.reshape(1, -1).astype(jnp.float32), cout_p)
        bias = _pad_last(bias.reshape(1, -1).astype(jnp.float32), cout_p)

        if i < len(blocks) - 1:
            x = conv3x3_bn_relu(x, w_p, scale, bias, th=th)
        else:
            # TODO(synk): Dropout2d is identity in eval mode; training-mode
            # channel dropout is not implemented here.
            kp = _round_up(num_classes, 8)
            wk = jnp.pad(params["w_cls"],
                         ((0, cout_p - c_out), (0, kp - num_classes)))
            wk = jnp.transpose(wk).astype(jnp.bfloat16)           # (Kp, Cout_p)
            bk = jnp.pad(params["b_cls"], (0, kp - num_classes))
            bk = bk.reshape(kp, 1).astype(jnp.float32)
            x = conv3x3_bn_relu_classifier(x, w_p, scale, bias, wk, bk,
                                           th=th, num_classes=num_classes)

    # (N, H//th, K, th*W) -> (N, K, H, W): cheap — the logits tensor is tiny
    # compared with the activations (the old full-channel NHWC->NCHW transpose
    # of the previous version is gone).
    nh = h // th
    out = x.reshape(n, nh, num_classes, th, w)
    out = jnp.transpose(out, (0, 2, 1, 3, 4)).reshape(n, num_classes, h, w)
    return out


# ----------------------------------------------------------------------------
# Pure-JAX f32 reference (true module semantics, for correctness check).
# ----------------------------------------------------------------------------
def fcn_head_reference(params, x_nchw, eps=1e-5):
    x = jnp.transpose(x_nchw, (0, 2, 3, 1))
    dn = ("NHWC", "HWIO", "NHWC")
    for blk in params["blocks"]:
        y = lax.conv_general_dilated(x, blk["w"], (1, 1), "SAME",
                                     dimension_numbers=dn) + blk["b"]
        y = (y - blk["mean"]) * lax.rsqrt(blk["var"] + eps) * blk["gamma"] + blk["beta"]
        x = jnp.maximum(y, 0.0)
    y = jnp.einsum("nhwc,ck->nhwk", x, params["w_cls"]) + params["b_cls"]
    return jnp.transpose(y, (0, 3, 1, 2))


if __name__ == "__main__":
    # Small FCNHead config.
    num_classes, in_channels, out_channels = 3, 4, 8
    num_convs = 2
    N, H, W = 2, 16, 16

    key = jax.random.PRNGKey(0)
    key, pkey, xkey = jax.random.split(key, 3)
    params = init_fcn_head_params(pkey, num_classes, in_channels,
                                  out_channels, num_convs)
    x = jax.random.normal(xkey, (N, in_channels, H, W), jnp.float32)

    # th=8 forces >1 spatial tile so the halo-tiled pipeline is exercised even
    # at this toy resolution (auto-pick would choose the whole image).
    fwd = jax.jit(functools.partial(fcn_head_forward, th=8))
    out = jax.block_until_ready(fwd(params, x))
    ref = jax.block_until_ready(fcn_head_reference(params, x))

    assert out.shape == (N, num_classes, H, W), out.shape
    max_err = float(jnp.max(jnp.abs(out - ref)))
    # bf16 MXU matmuls vs f32 reference: tolerance sized for bf16 rounding.
    assert jnp.allclose(out, ref, atol=5e-2, rtol=5e-2), max_err
    print("KERNEL_OK")
</pallas_src>

<mosaic_0001>
module attributes {stable_mosaic.version = 11 : i64} {
  func.func @kernel(%arg0: i32, %arg1: i32, %arg2: memref<1x1x10x32x128xbf16, #tpu.memory_space<vmem>>, %arg3: memref<3x3x128x128xbf16, #tpu.memory_space<vmem>>, %arg4: memref<1x128xf32, #tpu.memory_space<vmem>>, %arg5: memref<1x128xf32, #tpu.memory_space<vmem>>, %arg6: memref<1x8x16x128xbf16, #tpu.memory_space<vmem>>, %arg7: memref<128x128xf32, #tpu.memory_space<vmem>>) attributes {dimension_semantics = [#tpu.dimension_semantics<parallel>, #tpu.dimension_semantics<parallel>], iteration_bounds = array<i64: 2, 2>, scalar_prefetch = 0 : i64, scratch_operands = 1 : i64, tpu.core_type = #tpu.core_type<tc>, window_params = [{transform_indices = @transform_0, window_bounds = array<i64: 1, 1, 10, 32, 128>}, {pipeline_mode = #tpu.pipeline_mode<synchronous>, transform_indices = @transform_1, window_bounds = array<i64: 3, 3, 128, 128>}, {pipeline_mode = #tpu.pipeline_mode<synchronous>, transform_indices = @transform_2, window_bounds = array<i64: 1, 128>}, {pipeline_mode = #tpu.pipeline_mode<synchronous>, transform_indices = @transform_3, window_bounds = array<i64: 1, 128>}, {transform_indices = @transform_4, window_bounds = array<i64: 1, 8, 16, 128>}]} {
    %c0 = arith.constant 0 : index
    %c0_0 = arith.constant 0 : index
    %c0_1 = arith.constant 0 : index
    %c0_2 = arith.constant 0 : index
    %c0_3 = arith.constant 0 : index
    %0 = vector.load %arg2[%c0, %c0_0, %c0_1, %c0_2, %c0_3] : memref<1x1x10x32x128xbf16, #tpu.memory_space<vmem>>, vector<1x1x10x32x128xbf16>
    %1 = vector.shape_cast %0 : vector<1x1x10x32x128xbf16> to vector<10x32x128xbf16>
    %2 = vector.extract_strided_slice %1 {offsets = [0, 0, 0], sizes = [10, 16, 128], strides = [1, 1, 1]} : vector<10x32x128xbf16> to vector<10x16x128xbf16>
    %3 = vector.shape_cast %2 : vector<10x16x128xbf16> to vector<160x128xbf16>
    %4 = vector.extract_strided_slice %1 {offsets = [0, 1, 0], sizes = [10, 16, 128], strides = [1, 1, 1]} : vector<10x32x128xbf16> to vector<10x16x128xbf16>
    %5 = vector.shape_cast %4 : vector<10x16x128xbf16> to vector<160x128xbf16>
    %6 = vector.extract_strided_slice %1 {offsets = [0, 2, 0], sizes = [10, 16, 128], strides = [1, 1, 1]} : vector<10x32x128xbf16> to vector<10x16x128xbf16>
    %7 = vector.shape_cast %6 : vector<10x16x128xbf16> to vector<160x128xbf16>
    %8 = vector.extract_strided_slice %3 {offsets = [0, 0], sizes = [128, 128], strides = [1, 1]} : vector<160x128xbf16> to vector<128x128xbf16>
    %c0_4 = arith.constant 0 : index
    %c0_5 = arith.constant 0 : index
    %c0_6 = arith.constant 0 : index
    %c0_7 = arith.constant 0 : index
    %9 = vector.load %arg3[%c0_4, %c0_5, %c0_6, %c0_7] : memref<3x3x128x128xbf16, #tpu.memory_space<vmem>>, vector<1x1x128x128xbf16>
    %10 = vector.shape_cast %9 : vector<1x1x128x128xbf16> to vector<128x128xbf16>
    %cst = arith.constant dense<0.000000e+00> : vector<128x128xf32>
    %11 = tpu.matmul %8, %10, %cst {dimension_numbers = #tpu.dot_dimension_numbers<[1], [0], [0], [1], [0, 0, 1, 1], [], []>} : vector<128x128xbf16>, vector<128x128xbf16>, vector<128x128xf32> -> vector<128x128xf32>
    %c0_8 = arith.constant 0 : index
    %c0_9 = arith.constant 0 : index
    %12 = vector.load %arg7[%c0_8, %c0_9] : memref<128x128xf32, #tpu.memory_space<vmem>>, vector<128x128xf32>
    tpu.vector_store %arg7[%c0_8, %c0_9], %11 {strides = array<i32>} : memref<128x128xf32, #tpu.memory_space<vmem>>, vector<128x128xf32>,
    %13 = vector.extract_strided_slice %5 {offsets = [0, 0], sizes = [128, 128], strides = [1, 1]} : vector<160x128xbf16> to vector<128x128xbf16>
    %c0_10 = arith.constant 0 : index
    %c1 = arith.constant 1 : index
    %c0_11 = arith.constant 0 : index
    %c0_12 = arith.constant 0 : index
    %14 = vector.load %arg3[%c0_10, %c1, %c0_11, %c0_12] : memref<3x3x128x128xbf16, #tpu.memory_space<vmem>>, vector<1x1x128x128xbf16>
    %15 = vector.shape_cast %14 : vector<1x1x128x128xbf16> to vector<128x128xbf16>
    %cst_13 = arith.constant dense<0.000000e+00> : vector<128x128xf32>
    %16 = tpu.matmul %13, %15, %cst_13 {dimension_numbers = #tpu.dot_dimension_numbers<[1], [0], [0], [1], [0, 0, 1, 1], [], []>} : vector<128x128xbf16>, vector<128x128xbf16>, vector<128x128xf32> -> vector<128x128xf32>
    %c0_14 = arith.constant 0 : index
    %c0_15 = arith.constant 0 : index
    %17 = vector.load %arg7[%c0_14, %c0_15] : memref<128x128xf32, #tpu.memory_space<vmem>>, vector<128x128xf32>
    %18 = arith.addf %17, %16 : vector<128x128xf32>
    %c0_16 = arith.constant 0 : index
    %c0_17 = arith.constant 0 : index
    %19 = vector.load %arg7[%c0_16, %c0_17] : memref<128x128xf32, #tpu.memory_space<vmem>>, vector<128x128xf32>
    tpu.vector_store %arg7[%c0_16, %c0_17], %18 {strides = array<i32>} : memref<128x128xf32, #tpu.memory_space<vmem>>, vector<128x128xf32>,
    %20 = vector.extract_strided_slice %7 {offsets = [0, 0], sizes = [128, 128], strides = [1, 1]} : vector<160x128xbf16> to vector<128x128xbf16>
    %c0_18 = arith.constant 0 : index
    %c2 = arith.constant 2 : index
    %c0_19 = arith.constant 0 : index
    %c0_20 = arith.constant 0 : index
    %21 = vector.load %arg3[%c0_18, %c2, %c0_19, %c0_20] : memref<3x3x128x128xbf16, #tpu.memory_space<vmem>>, vector<1x1x128x128xbf16>
    %22 = vector.shape_cast %21 : vector<1x1x128x128xbf16> to vector<128x128xbf16>
    %cst_21 = arith.constant dense<0.000000e+00> : vector<128x128xf32>
    %23 = tpu.matmul %20, %22, %cst_21 {dimension_numbers = #tpu.dot_dimension_numbers<[1], [0], [0], [1], [0, 0, 1, 1], [], []>} : vector<128x128xbf16>, vector<128x128xbf16>, vector<128x128xf32> -> vector<128x128xf32>
    %c0_22 = arith.constant 0 : index
    %c0_23 = arith.constant 0 : index
    %24 = vector.load %arg7[%c0_22, %c0_23] : memref<128x128xf32, #tpu.memory_space<vmem>>, vector<128x128xf32>
    %25 = arith.addf %24, %23 : vector<128x128xf32>
    %c0_24 = arith.constant 0 : index
    %c0_25 = arith.constant 0 : index
    %26 = vector.load %arg7[%c0_24, %c0_25] : memref<128x128xf32, #tpu.memory_space<vmem>>, vector<128x128xf32>
    tpu.vector_store %arg7[%c0_24, %c0_25], %25 {strides = array<i32>} : memref<128x128xf32, #tpu.memory_space<vmem>>, vector<128x128xf32>,
    %27 = vector.extract_strided_slice %3 {offsets = [16, 0], sizes = [128, 128], strides = [1, 1]} : vector<160x128xbf16> to vector<128x128xbf16>
    %c1_26 = arith.constant 1 : index
    %c0_27 = arith.constant 0 : index
    %c0_28 = arith.constant 0 : index
    %c0_29 = arith.constant 0 : index
    %28 = vector.load %arg3[%c1_26, %c0_27, %c0_28, %c0_29] : memref<3x3x128x128xbf16, #tpu.memory_space<vmem>>, vector<1x1x128x128xbf16>
    %29 = vector.shape_cast %28 : vector<1x1x128x128xbf16> to vector<128x128xbf16>
    %cst_30 = arith.constant dense<0.000000e+00> : vector<128x128xf32>
    %30 = tpu.matmul %27, %29, %cst_30 {dimension_numbers = #tpu.dot_dimension_numbers<[1], [0], [0], [1], [0, 0, 1, 1], [], []>} : vector<128x128xbf16>, vector<128x128xbf16>, vector<128x128xf32> -> vector<128x128xf32>
    %c0_31 = arith.constant 0 : index
    %c0_32 = arith.constant 0 : index
    %31 = vector.load %arg7[%c0_31, %c0_32] : memref<128x128xf32, #tpu.memory_space<vmem>>, vector<128x128xf32>
    %32 = arith.addf %31, %30 : vector<128x128xf32>
    %c0_33 = arith.constant 0 : index
    %c0_34 = arith.constant 0 : index
    %33 = vector.load %arg7[%c0_33, %c0_34] : memref<128x128xf32, #tpu.memory_space<vmem>>, vector<128x128xf32>
    tpu.vector_store %arg7[%c0_33, %c0_34], %32 {strides = array<i32>} : memref<128x128xf32, #tpu.memory_space<vmem>>, vector<128x128xf32>,
    %34 = vector.extract_strided_slice %5 {offsets = [16, 0], sizes = [128, 128], strides = [1, 1]} : vector<160x128xbf16> to vector<128x128xbf16>
    %c1_35 = arith.constant 1 : index
    %c1_36 = arith.constant 1 : index
    %c0_37 = arith.constant 0 : index
    %c0_38 = arith.constant 0 : index
    %35 = vector.load %arg3[%c1_35, %c1_36, %c0_37, %c0_38] : memref<3x3x128x128xbf16, #tpu.memory_space<vmem>>, vector<1x1x128x128xbf16>
    %36 = vector.shape_cast %35 : vector<1x1x128x128xbf16> to vector<128x128xbf16>
    %cst_39 = arith.constant dense<0.000000e+00> : vector<128x128xf32>
    %37 = tpu.matmul %34, %36, %cst_39 {dimension_numbers = #tpu.dot_dimension_numbers<[1], [0], [0], [1], [0, 0, 1, 1], [], []>} : vector<128x128xbf16>, vector<128x128xbf16>, vector<128x128xf32> -> vector<128x128xf32>
    %c0_40 = arith.constant 0 : index
    %c0_41 = arith.constant 0 : index
    %38 = vector.load %arg7[%c0_40, %c0_41] : memref<128x128xf32, #tpu.memory_space<vmem>>, vector<128x128xf32>
    %39 = arith.addf %38, %37 : vector<128x128xf32>
    %c0_42 = arith.constant 0 : index
    %c0_43 = arith.constant 0 : index
    %40 = vector.load %arg7[%c0_42, %c0_43] : memref<128x128xf32, #tpu.memory_space<vmem>>, vector<128x128xf32>
    tpu.vector_store %arg7[%c0_42, %c0_43], %39 {strides = array<i32>} : memref<128x128xf32, #tpu.memory_space<vmem>>, vector<128x128xf32>,
    %41 = vector.extract_strided_slice %7 {offsets = [16, 0], sizes = [128, 128], strides = [1, 1]} : vector<160x128xbf16> to vector<128x128xbf16>
    %c1_44 = arith.constant 1 : index
    %c2_45 = arith.constant 2 : index
    %c0_46 = arith.constant 0 : index
    %c0_47 = arith.constant 0 : index
    %42 = vector.load %arg3[%c1_44, %c2_45, %c0_46, %c0_47] : memref<3x3x128x128xbf16, #tpu.memory_space<vmem>>, vector<1x1x128x128xbf16>
    %43 = vector.shape_cast %42 : vector<1x1x128x128xbf16> to vector<128x128xbf16>
    %cst_48 = arith.constant dense<0.000000e+00> : vector<128x128xf32>
    %44 = tpu.matmul %41, %43, %cst_48 {dimension_numbers = #tpu.dot_dimension_numbers<[1], [0], [0], [1], [0, 0, 1, 1], [], []>} : vector<128x128xbf16>, vector<128x128xbf16>, vector<128x128xf32> -> vector<128x128xf32>
    %c0_49 = arith.constant 0 : index
    %c0_50 = arith.constant 0 : index
    %45 = vector.load %arg7[%c0_49, %c0_50] : memref<128x128xf32, #tpu.memory_space<vmem>>, vector<128x128xf32>
    %46 = arith.addf %45, %44 : vector<128x128xf32>
    %c0_51 = arith.constant 0 : index
    %c0_52 = arith.constant 0 : index
    %47 = vector.load %arg7[%c0_51, %c0_52] : memref<128x128xf32, #tpu.memory_space<vmem>>, vector<128x128xf32>
    tpu.vector_store %arg7[%c0_51, %c0_52], %46 {strides = array<i32>} : memref<128x128xf32, #tpu.memory_space<vmem>>, vector<128x128xf32>,
    %48 = vector.extract_strided_slice %3 {offsets = [32, 0], sizes = [128, 128], strides = [1, 1]} : vector<160x128xbf16> to vector<128x128xbf16>
    %c2_53 = arith.constant 2 : index
    %c0_54 = arith.constant 0 : index
    %c0_55 = arith.constant 0 : index
    %c0_56 = arith.constant 0 : index
    %49 = vector.load %arg3[%c2_53, %c0_54, %c0_55, %c0_56] : memref<3x3x128x128xbf16, #tpu.memory_space<vmem>>, vector<1x1x128x128xbf16>
    %50 = vector.shape_cast %49 : vector<1x1x128x128xbf16> to vector<128x128xbf16>
    %cst_57 = arith.constant dense<0.000000e+00> : vector<128x128xf32>
    %51 = tpu.matmul %48, %50, %cst_57 {dimension_numbers = #tpu.dot_dimension_numbers<[1], [0], [0], [1], [0, 0, 1, 1], [], []>} : vector<128x128xbf16>, vector<128x128xbf16>, vector<128x128xf32> -> vector<128x128xf32>
    %c0_58 = arith.constant 0 : index
    %c0_59 = arith.constant 0 : index
    %52 = vector.load %arg7[%c0_58, %c0_59] : memref<128x128xf32, #tpu.memory_space<vmem>>, vector<128x128xf32>
    %53 = arith.addf %52, %51 : vector<128x128xf32>
    %c0_60 = arith.constant 0 : index
    %c0_61 = arith.constant 0 : index
    %54 = vector.load %arg7[%c0_60, %c0_61] : memref<128x128xf32, #tpu.memory_space<vmem>>, vector<128x128xf32>
    tpu.vector_store %arg7[%c0_60, %c0_61], %53 {strides = array<i32>} : memref<128x128xf32, #tpu.memory_space<vmem>>, vector<128x128xf32>,
    %55 = vector.extract_strided_slice %5 {offsets = [32, 0], sizes = [128, 128], strides = [1, 1]} : vector<160x128xbf16> to vector<128x128xbf16>
    %c2_62 = arith.constant 2 : index
    %c1_63 = arith.constant 1 : index
    %c0_64 = arith.constant 0 : index
    %c0_65 = arith.constant 0 : index
    %56 = vector.load %arg3[%c2_62, %c1_63, %c0_64, %c0_65] : memref<3x3x128x128xbf16, #tpu.memory_space<vmem>>, vector<1x1x128x128xbf16>
    %57 = vector.shape_cast %56 : vector<1x1x128x128xbf16> to vector<128x128xbf16>
    %cst_66 = arith.constant dense<0.000000e+00> : vector<128x128xf32>
    %58 = tpu.matmul %55, %57, %cst_66 {dimension_numbers = #tpu.dot_dimension_numbers<[1], [0], [0], [1], [0, 0, 1, 1], [], []>} : vector<128x128xbf16>, vector<128x128xbf16>, vector<128x128xf32> -> vector<128x128xf32>
    %c0_67 = arith.constant 0 : index
    %c0_68 = arith.constant 0 : index
    %59 = vector.load %arg7[%c0_67, %c0_68] : memref<128x128xf32, #tpu.memory_space<vmem>>, vector<128x128xf32>
    %60 = arith.addf %59, %58 : vector<128x128xf32>
    %c0_69 = arith.constant 0 : index
    %c0_70 = arith.constant 0 : index
    %61 = vector.load %arg7[%c0_69, %c0_70] : memref<128x128xf32, #tpu.memory_space<vmem>>, vector<128x128xf32>
    tpu.vector_store %arg7[%c0_69, %c0_70], %60 {strides = array<i32>} : memref<128x128xf32, #tpu.memory_space<vmem>>, vector<128x128xf32>,
    %62 = vector.extract_strided_slice %7 {offsets = [32, 0], sizes = [128, 128], strides = [1, 1]} : vector<160x128xbf16> to vector<128x128xbf16>
    %c2_71 = arith.constant 2 : index
    %c2_72 = arith.constant 2 : index
    %c0_73 = arith.constant 0 : index
    %c0_74 = arith.constant 0 : index
    %63 = vector.load %arg3[%c2_71, %c2_72, %c0_73, %c0_74] : memref<3x3x128x128xbf16, #tpu.memory_space<vmem>>, vector<1x1x128x128xbf16>
    %64 = vector.shape_cast %63 : vector<1x1x128x128xbf16> to vector<128x128xbf16>
    %cst_75 = arith.constant dense<0.000000e+00> : vector<128x128xf32>
    %65 = tpu.matmul %62, %64, %cst_75 {dimension_numbers = #tpu.dot_dimension_numbers<[1], [0], [0], [1], [0, 0, 1, 1], [], []>} : vector<128x128xbf16>, vector<128x128xbf16>, vector<128x128xf32> -> vector<128x128xf32>
    %c0_76 = arith.constant 0 : index
    %c0_77 = arith.constant 0 : index
    %66 = vector.load %arg7[%c0_76, %c0_77] : memref<128x128xf32, #tpu.memory_space<vmem>>, vector<128x128xf32>
    %67 = arith.addf %66, %65 : vector<128x128xf32>
    %c0_78 = arith.constant 0 : index
    %c0_79 = arith.constant 0 : index
    %68 = vector.load %arg7[%c0_78, %c0_79] : memref<128x128xf32, #tpu.memory_space<vmem>>, vector<128x128xf32>
    tpu.vector_store %arg7[%c0_78, %c0_79], %67 {strides = array<i32>} : memref<128x128xf32, #tpu.memory_space<vmem>>, vector<128x128xf32>,
    %c0_80 = arith.constant 0 : index
    %c0_81 = arith.constant 0 : index
    %69 = vector.load %arg7[%c0_80, %c0_81] : memref<128x128xf32, #tpu.memory_space<vmem>>, vector<128x128xf32>
    %c0_82 = arith.constant 0 : index
    %c0_83 = arith.constant 0 : index
    %70 = vector.load %arg4[%c0_82, %c0_83] : memref<1x128xf32, #tpu.memory_space<vmem>>, vector<1x128xf32>
    %71 = vector.broadcast %70 : vector<1x128xf32> to vector<128x128xf32>
    %72 = arith.mulf %69, %71 : vector<128x128xf32>
    %c0_84 = arith.constant 0 : index
    %c0_85 = arith.constant 0 : index
    %73 = vector.load %arg5[%c0_84, %c0_85] : memref<1x128xf32, #tpu.memory_space<vmem>>, vector<1x128xf32>
    %74 = vector.broadcast %73 : vector<1x128xf32> to vector<128x128xf32>
    %75 = arith.addf %72, %74 : vector<128x128xf32>
    %cst_86 = arith.constant 0.000000e+00 : f32
    %76 = vector.broadcast %cst_86 : f32 to vector<128x128xf32>
    %77 = arith.maximumf %75, %76 : vector<128x128xf32>
    %78 = vector.shape_cast %77 : vector<128x128xf32> to vector<8x16x128xf32>
    %79 = arith.truncf %78 : vector<8x16x128xf32> to vector<8x16x128xbf16>
    %c0_87 = arith.constant 0 : index
    %c0_88 = arith.constant 0 : index
    %c0_89 = arith.constant 0 : index
    %c0_90 = arith.constant 0 : index
    %80 = vector.load %arg6[%c0_87, %c0_88, %c0_89, %c0_90] : memref<1x8x16x128xbf16, #tpu.memory_space<vmem>>, vector<1x8x16x128xbf16>
    %81 = vector.shape_cast %80 : vector<1x8x16x128xbf16> to vector<8x16x128xbf16>
    %82 = vector.shape_cast %79 : vector<8x16x128xbf16> to vector<1x8x16x128xbf16>
    tpu.vector_store %arg6[%c0_87, %c0_88, %c0_89, %c0_90], %82 {strides = array<i32>} : memref<1x8x16x128xbf16, #tpu.memory_space<vmem>>, vector<1x8x16x128xbf16>,
    return
  }
  func.func @transform_0(%arg0: i32, %arg1: i32) -> (i32, i32, i32, i32, i32) {
    %c0_i32 = arith.constant 0 : i32
    %c0_i32_0 = arith.constant 0 : i32
    %c0_i32_1 = arith.constant 0 : i32
    %c0_i32_2 = arith.constant 0 : i32
    return %arg0, %arg1, %c0_i32, %c0_i32_0, %c0_i32_1 : i32, i32, i32, i32, i32
  }
  func.func @transform_1(%arg0: i32, %arg1: i32) -> (i32, i32, i32, i32) {
    %c0_i32 = arith.constant 0 : i32
    %c0_i32_0 = arith.constant 0 : i32
    %c0_i32_1 = arith.constant 0 : i32
    %c0_i32_2 = arith.constant 0 : i32
    %c0_i32_3 = arith.constant 0 : i32
    return %c0_i32, %c0_i32_0, %c0_i32_1, %c0_i32_2 : i32, i32, i32, i32
  }
  func.func @transform_2(%arg0: i32, %arg1: i32) -> (i32, i32) {
    %c0_i32 = arith.constant 0 : i32
    %c0_i32_0 = arith.constant 0 : i32
    %c0_i32_1 = arith.constant 0 : i32
    return %c0_i32, %c0_i32_0 : i32, i32
  }
  func.func @transform_3(%arg0: i32, %arg1: i32) -> (i32, i32) {
    %c0_i32 = arith.constant 0 : i32
    %c0_i32_0 = arith.constant 0 : i32
    %c0_i32_1 = arith.constant 0 : i32
    return %c0_i32, %c0_i32_0 : i32, i32
  }
  func.func @transform_4(%arg0: i32, %arg1: i32) -> (i32, i32, i32, i32) {
    %c0_i32 = arith.constant 0 : i32
    %c0_i32_0 = arith.constant 0 : i32
    %c0_i32_1 = arith.constant 0 : i32
    return %arg0, %arg1, %c0_i32, %c0_i32_0 : i32, i32, i32, i32
  }
}

module attributes {stable_mosaic.version = 11 : i64} {
  func.func @kernel(%arg0: i32, %arg1: i32, %arg2: memref<1x1x10x32x128xbf16, #tpu.memory_space<vmem>>, %arg3: memref<3x3x128x128xbf16, #tpu.memory_space<vmem>>, %arg4: memref<1x128xf32, #tpu.memory_space<vmem>>, %arg5: memref<1x128xf32, #tpu.memory_space<vmem>>, %arg6: memref<8x128xbf16, #tpu.memory_space<vmem>>, %arg7: memref<8x1xf32, #tpu.memory_space<vmem>>, %arg8: memref<1x1x3x128xf32, #tpu.memory_space<vmem>>, %arg9: memref<128x128xf32, #tpu.memory_space<vmem>>) attributes {dimension_semantics = [#tpu.dimension_semantics<parallel>, #tpu.dimension_semantics<parallel>], iteration_bounds = array<i64: 2, 2>, scalar_prefetch = 0 : i64, scratch_operands = 1 : i64, tpu.core_type = #tpu.core_type<tc>, window_params = [{transform_indices = @transform_0, window_bounds = array<i64: 1, 1, 10, 32, 128>}, {pipeline_mode = #tpu.pipeline_mode<synchronous>, transform_indices = @transform_1, window_bounds = array<i64: 3, 3, 128, 128>}, {pipeline_mode = #tpu.pipeline_mode<synchronous>, transform_indices = @transform_2, window_bounds = array<i64: 1, 128>}, {pipeline_mode = #tpu.pipeline_mode<synchronous>, transform_indices = @transform_3, window_bounds = array<i64: 1, 128>}, {pipeline_mode = #tpu.pipeline_mode<synchronous>, transform_indices = @transform_4, window_bounds = array<i64: 8, 128>}, {pipeline_mode = #tpu.pipeline_mode<synchronous>, transform_indices = @transform_5, window_bounds = array<i64: 8, 1>}, {transform_indices = @transform_6, window_bounds = array<i64: 1, 1, 3, 128>}]} {
    %c0 = arith.constant 0 : index
    %c0_0 = arith.constant 0 : index
    %c0_1 = arith.constant 0 : index
    %c0_2 = arith.constant 0 : index
    %c0_3 = arith.constant 0 : index
    %0 = vector.load %arg2[%c0, %c0_0, %c0_1, %c0_2, %c0_3] : memref<1x1x10x32x128xbf16, #tpu.memory_space<vmem>>, vector<1x1x10x32x128xbf16>
    %1 = vector.shape_cast %0 : vector<1x1x10x32x128xbf16> to vector<10x32x128xbf16>
    %2 = vector.extract_strided_slice %1 {offsets = [0, 0, 0], sizes = [10, 16, 128], strides = [1, 1, 1]} : vector<10x32x128xbf16> to vector<10x16x128xbf16>
    %3 = vector.shape_cast %2 : vector<10x16x128xbf16> to vector<160x128xbf16>
    %4 = vector.extract_strided_slice %1 {offsets = [0, 1, 0], sizes = [10, 16, 128], strides = [1, 1, 1]} : vector<10x32x128xbf16> to vector<10x16x128xbf16>
    %5 = vector.shape_cast %4 : vector<10x16x128xbf16> to vector<160x128xbf16>
    %6 = vector.extract_strided_slice %1 {offsets = [0, 2, 0], sizes = [10, 16, 128], strides = [1, 1, 1]} : vector<10x32x128xbf16> to vector<10x16x128xbf16>
    %7 = vector.shape_cast %6 : vector<10x16x128xbf16> to vector<160x128xbf16>
    %8 = vector.extract_strided_slice %3 {offsets = [0, 0], sizes = [128, 128], strides = [1, 1]} : vector<160x128xbf16> to vector<128x128xbf16>
    %c0_4 = arith.constant 0 : index
    %c0_5 = arith.constant 0 : index
    %c0_6 = arith.constant 0 : index
    %c0_7 = arith.constant 0 : index
    %9 = vector.load %arg3[%c0_4, %c0_5, %c0_6, %c0_7] : memref<3x3x128x128xbf16, #tpu.memory_space<vmem>>, vector<1x1x128x128xbf16>
    %10 = vector.shape_cast %9 : vector<1x1x128x128xbf16> to vector<128x128xbf16>
    %cst = arith.constant dense<0.000000e+00> : vector<128x128xf32>
    %11 = tpu.matmul %8, %10, %cst {dimension_numbers = #tpu.dot_dimension_numbers<[1], [0], [0], [1], [0, 0, 1, 1], [], []>} : vector<128x128xbf16>, vector<128x128xbf16>, vector<128x128xf32> -> vector<128x128xf32>
    %c0_8 = arith.constant 0 : index
    %c0_9 = arith.constant 0 : index
    %12 = vector.load %arg9[%c0_8, %c0_9] : memref<128x128xf32, #tpu.memory_space<vmem>>, vector<128x128xf32>
    tpu.vector_store %arg9[%c0_8, %c0_9], %11 {strides = array<i32>} : memref<128x128xf32, #tpu.memory_space<vmem>>, vector<128x128xf32>,
    %13 = vector.extract_strided_slice %5 {offsets = [0, 0], sizes = [128, 128], strides = [1, 1]} : vector<160x128xbf16> to vector<128x128xbf16>
    %c0_10 = arith.constant 0 : index
    %c1 = arith.constant 1 : index
    %c0_11 = arith.constant 0 : index
    %c0_12 = arith.constant 0 : index
    %14 = vector.load %arg3[%c0_10, %c1, %c0_11, %c0_12] : memref<3x3x128x128xbf16, #tpu.memory_space<vmem>>, vector<1x1x128x128xbf16>
    %15 = vector.shape_cast %14 : vector<1x1x128x128xbf16> to vector<128x128xbf16>
    %cst_13 = arith.constant dense<0.000000e+00> : vector<128x128xf32>
    %16 = tpu.matmul %13, %15, %cst_13 {dimension_numbers = #tpu.dot_dimension_numbers<[1], [0], [0], [1], [0, 0, 1, 1], [], []>} : vector<128x128xbf16>, vector<128x128xbf16>, vector<128x128xf32> -> vector<128x128xf32>
    %c0_14 = arith.constant 0 : index
    %c0_15 = arith.constant 0 : index
    %17 = vector.load %arg9[%c0_14, %c0_15] : memref<128x128xf32, #tpu.memory_space<vmem>>, vector<128x128xf32>
    %18 = arith.addf %17, %16 : vector<128x128xf32>
    %c0_16 = arith.constant 0 : index
    %c0_17 = arith.constant 0 : index
    %19 = vector.load %arg9[%c0_16, %c0_17] : memref<128x128xf32, #tpu.memory_space<vmem>>, vector<128x128xf32>
    tpu.vector_store %arg9[%c0_16, %c0_17], %18 {strides = array<i32>} : memref<128x128xf32, #tpu.memory_space<vmem>>, vector<128x128xf32>,
    %20 = vector.extract_strided_slice %7 {offsets = [0, 0], sizes = [128, 128], strides = [1, 1]} : vector<160x128xbf16> to vector<128x128xbf16>
    %c0_18 = arith.constant 0 : index
    %c2 = arith.constant 2 : index
    %c0_19 = arith.constant 0 : index
    %c0_20 = arith.constant 0 : index
    %21 = vector.load %arg3[%c0_18, %c2, %c0_19, %c0_20] : memref<3x3x128x128xbf16, #tpu.memory_space<vmem>>, vector<1x1x128x128xbf16>
    %22 = vector.shape_cast %21 : vector<1x1x128x128xbf16> to vector<128x128xbf16>
    %cst_21 = arith.constant dense<0.000000e+00> : vector<128x128xf32>
    %23 = tpu.matmul %20, %22, %cst_21 {dimension_numbers = #tpu.dot_dimension_numbers<[1], [0], [0], [1], [0, 0, 1, 1], [], []>} : vector<128x128xbf16>, vector<128x128xbf16>, vector<128x128xf32> -> vector<128x128xf32>
    %c0_22 = arith.constant 0 : index
    %c0_23 = arith.constant 0 : index
    %24 = vector.load %arg9[%c0_22, %c0_23] : memref<128x128xf32, #tpu.memory_space<vmem>>, vector<128x128xf32>
    %25 = arith.addf %24, %23 : vector<128x128xf32>
    %c0_24 = arith.constant 0 : index
    %c0_25 = arith.constant 0 : index
    %26 = vector.load %arg9[%c0_24, %c0_25] : memref<128x128xf32, #tpu.memory_space<vmem>>, vector<128x128xf32>
    tpu.vector_store %arg9[%c0_24, %c0_25], %25 {strides = array<i32>} : memref<128x128xf32, #tpu.memory_space<vmem>>, vector<128x128xf32>,
    %27 = vector.extract_strided_slice %3 {offsets = [16, 0], sizes = [128, 128], strides = [1, 1]} : vector<160x128xbf16> to vector<128x128xbf16>
    %c1_26 = arith.constant 1 : index
    %c0_27 = arith.constant 0 : index
    %c0_28 = arith.constant 0 : index
    %c0_29 = arith.constant 0 : index
    %28 = vector.load %arg3[%c1_26, %c0_27, %c0_28, %c0_29] : memref<3x3x128x128xbf16, #tpu.memory_space<vmem>>, vector<1x1x128x128xbf16>
    %29 = vector.shape_cast %28 : vector<1x1x128x128xbf16> to vector<128x128xbf16>
    %cst_30 = arith.constant dense<0.000000e+00> : vector<128x128xf32>
    %30 = tpu.matmul %27, %29, %cst_30 {dimension_numbers = #tpu.dot_dimension_numbers<[1], [0], [0], [1], [0, 0, 1, 1], [], []>} : vector<128x128xbf16>, vector<128x128xbf16>, vector<128x128xf32> -> vector<128x128xf32>
    %c0_31 = arith.constant 0 : index
    %c0_32 = arith.constant 0 : index
    %31 = vector.load %arg9[%c0_31, %c0_32] : memref<128x128xf32, #tpu.memory_space<vmem>>, vector<128x128xf32>
    %32 = arith.addf %31, %30 : vector<128x128xf32>
    %c0_33 = arith.constant 0 : index
    %c0_34 = arith.constant 0 : index
    %33 = vector.load %arg9[%c0_33, %c0_34] : memref<128x128xf32, #tpu.memory_space<vmem>>, vector<128x128xf32>
    tpu.vector_store %arg9[%c0_33, %c0_34], %32 {strides = array<i32>} : memref<128x128xf32, #tpu.memory_space<vmem>>, vector<128x128xf32>,
    %34 = vector.extract_strided_slice %5 {offsets = [16, 0], sizes = [128, 128], strides = [1, 1]} : vector<160x128xbf16> to vector<128x128xbf16>
    %c1_35 = arith.constant 1 : index
    %c1_36 = arith.constant 1 : index
    %c0_37 = arith.constant 0 : index
    %c0_38 = arith.constant 0 : index
    %35 = vector.load %arg3[%c1_35, %c1_36, %c0_37, %c0_38] : memref<3x3x128x128xbf16, #tpu.memory_space<vmem>>, vector<1x1x128x128xbf16>
    %36 = vector.shape_cast %35 : vector<1x1x128x128xbf16> to vector<128x128xbf16>
    %cst_39 = arith.constant dense<0.000000e+00> : vector<128x128xf32>
    %37 = tpu.matmul %34, %36, %cst_39 {dimension_numbers = #tpu.dot_dimension_numbers<[1], [0], [0], [1], [0, 0, 1, 1], [], []>} : vector<128x128xbf16>, vector<128x128xbf16>, vector<128x128xf32> -> vector<128x128xf32>
    %c0_40 = arith.constant 0 : index
    %c0_41 = arith.constant 0 : index
    %38 = vector.load %arg9[%c0_40, %c0_41] : memref<128x128xf32, #tpu.memory_space<vmem>>, vector<128x128xf32>
    %39 = arith.addf %38, %37 : vector<128x128xf32>
    %c0_42 = arith.constant 0 : index
    %c0_43 = arith.constant 0 : index
    %40 = vector.load %arg9[%c0_42, %c0_43] : memref<128x128xf32, #tpu.memory_space<vmem>>, vector<128x128xf32>
    tpu.vector_store %arg9[%c0_42, %c0_43], %39 {strides = array<i32>} : memref<128x128xf32, #tpu.memory_space<vmem>>, vector<128x128xf32>,
    %41 = vector.extract_strided_slice %7 {offsets = [16, 0], sizes = [128, 128], strides = [1, 1]} : vector<160x128xbf16> to vector<128x128xbf16>
    %c1_44 = arith.constant 1 : index
    %c2_45 = arith.constant 2 : index
    %c0_46 = arith.constant 0 : index
    %c0_47 = arith.constant 0 : index
    %42 = vector.load %arg3[%c1_44, %c2_45, %c0_46, %c0_47] : memref<3x3x128x128xbf16, #tpu.memory_space<vmem>>, vector<1x1x128x128xbf16>
    %43 = vector.shape_cast %42 : vector<1x1x128x128xbf16> to vector<128x128xbf16>
    %cst_48 = arith.constant dense<0.000000e+00> : vector<128x128xf32>
    %44 = tpu.matmul %41, %43, %cst_48 {dimension_numbers = #tpu.dot_dimension_numbers<[1], [0], [0], [1], [0, 0, 1, 1], [], []>} : vector<128x128xbf16>, vector<128x128xbf16>, vector<128x128xf32> -> vector<128x128xf32>
    %c0_49 = arith.constant 0 : index
    %c0_50 = arith.constant 0 : index
    %45 = vector.load %arg9[%c0_49, %c0_50] : memref<128x128xf32, #tpu.memory_space<vmem>>, vector<128x128xf32>
    %46 = arith.addf %45, %44 : vector<128x128xf32>
    %c0_51 = arith.constant 0 : index
    %c0_52 = arith.constant 0 : index
    %47 = vector.load %arg9[%c0_51, %c0_52] : memref<128x128xf32, #tpu.memory_space<vmem>>, vector<128x128xf32>
    tpu.vector_store %arg9[%c0_51, %c0_52], %46 {strides = array<i32>} : memref<128x128xf32, #tpu.memory_space<vmem>>, vector<128x128xf32>,
    %48 = vector.extract_strided_slice %3 {offsets = [32, 0], sizes = [128, 128], strides = [1, 1]} : vector<160x128xbf16> to vector<128x128xbf16>
    %c2_53 = arith.constant 2 : index
    %c0_54 = arith.constant 0 : index
    %c0_55 = arith.constant 0 : index
    %c0_56 = arith.constant 0 : index
    %49 = vector.load %arg3[%c2_53, %c0_54, %c0_55, %c0_56] : memref<3x3x128x128xbf16, #tpu.memory_space<vmem>>, vector<1x1x128x128xbf16>
    %50 = vector.shape_cast %49 : vector<1x1x128x128xbf16> to vector<128x128xbf16>
    %cst_57 = arith.constant dense<0.000000e+00> : vector<128x128xf32>
    %51 = tpu.matmul %48, %50, %cst_57 {dimension_numbers = #tpu.dot_dimension_numbers<[1], [0], [0], [1], [0, 0, 1, 1], [], []>} : vector<128x128xbf16>, vector<128x128xbf16>, vector<128x128xf32> -> vector<128x128xf32>
    %c0_58 = arith.constant 0 : index
    %c0_59 = arith.constant 0 : index
    %52 = vector.load %arg9[%c0_58, %c0_59] : memref<128x128xf32, #tpu.memory_space<vmem>>, vector<128x128xf32>
    %53 = arith.addf %52, %51 : vector<128x128xf32>
    %c0_60 = arith.constant 0 : index
    %c0_61 = arith.constant 0 : index
    %54 = vector.load %arg9[%c0_60, %c0_61] : memref<128x128xf32, #tpu.memory_space<vmem>>, vector<128x128xf32>
    tpu.vector_store %arg9[%c0_60, %c0_61], %53 {strides = array<i32>} : memref<128x128xf32, #tpu.memory_space<vmem>>, vector<128x128xf32>,
    %55 = vector.extract_strided_slice %5 {offsets = [32, 0], sizes = [128, 128], strides = [1, 1]} : vector<160x128xbf16> to vector<128x128xbf16>
    %c2_62 = arith.constant 2 : index
    %c1_63 = arith.constant 1 : index
    %c0_64 = arith.constant 0 : index
    %c0_65 = arith.constant 0 : index
    %56 = vector.load %arg3[%c2_62, %c1_63, %c0_64, %c0_65] : memref<3x3x128x128xbf16, #tpu.memory_space<vmem>>, vector<1x1x128x128xbf16>
    %57 = vector.shape_cast %56 : vector<1x1x128x128xbf16> to vector<128x128xbf16>
    %cst_66 = arith.constant dense<0.000000e+00> : vector<128x128xf32>
    %58 = tpu.matmul %55, %57, %cst_66 {dimension_numbers = #tpu.dot_dimension_numbers<[1], [0], [0], [1], [0, 0, 1, 1], [], []>} : vector<128x128xbf16>, vector<128x128xbf16>, vector<128x128xf32> -> vector<128x128xf32>
    %c0_67 = arith.constant 0 : index
    %c0_68 = arith.constant 0 : index
    %59 = vector.load %arg9[%c0_67, %c0_68] : memref<128x128xf32, #tpu.memory_space<vmem>>, vector<128x128xf32>
    %60 = arith.addf %59, %58 : vector<128x128xf32>
    %c0_69 = arith.constant 0 : index
    %c0_70 = arith.constant 0 : index
    %61 = vector.load %arg9[%c0_69, %c0_70] : memref<128x128xf32, #tpu.memory_space<vmem>>, vector<128x128xf32>
    tpu.vector_store %arg9[%c0_69, %c0_70], %60 {strides = array<i32>} : memref<128x128xf32, #tpu.memory_space<vmem>>, vector<128x128xf32>,
    %62 = vector.extract_strided_slice %7 {offsets = [32, 0], sizes = [128, 128], strides = [1, 1]} : vector<160x128xbf16> to vector<128x128xbf16>
    %c2_71 = arith.constant 2 : index
    %c2_72 = arith.constant 2 : index
    %c0_73 = arith.constant 0 : index
    %c0_74 = arith.constant 0 : index
    %63 = vector.load %arg3[%c2_71, %c2_72, %c0_73, %c0_74] : memref<3x3x128x128xbf16, #tpu.memory_space<vmem>>, vector<1x1x128x128xbf16>
    %64 = vector.shape_cast %63 : vector<1x1x128x128xbf16> to vector<128x128xbf16>
    %cst_75 = arith.constant dense<0.000000e+00> : vector<128x128xf32>
    %65 = tpu.matmul %62, %64, %cst_75 {dimension_numbers = #tpu.dot_dimension_numbers<[1], [0], [0], [1], [0, 0, 1, 1], [], []>} : vector<128x128xbf16>, vector<128x128xbf16>, vector<128x128xf32> -> vector<128x128xf32>
    %c0_76 = arith.constant 0 : index
    %c0_77 = arith.constant 0 : index
    %66 = vector.load %arg9[%c0_76, %c0_77] : memref<128x128xf32, #tpu.memory_space<vmem>>, vector<128x128xf32>
    %67 = arith.addf %66, %65 : vector<128x128xf32>
    %c0_78 = arith.constant 0 : index
    %c0_79 = arith.constant 0 : index
    %68 = vector.load %arg9[%c0_78, %c0_79] : memref<128x128xf32, #tpu.memory_space<vmem>>, vector<128x128xf32>
    tpu.vector_store %arg9[%c0_78, %c0_79], %67 {strides = array<i32>} : memref<128x128xf32, #tpu.memory_space<vmem>>, vector<128x128xf32>,
    %c0_80 = arith.constant 0 : index
    %c0_81 = arith.constant 0 : index
    %69 = vector.load %arg9[%c0_80, %c0_81] : memref<128x128xf32, #tpu.memory_space<vmem>>, vector<128x128xf32>
    %c0_82 = arith.constant 0 : index
    %c0_83 = arith.constant 0 : index
    %70 = vector.load %arg4[%c0_82, %c0_83] : memref<1x128xf32, #tpu.memory_space<vmem>>, vector<1x128xf32>
    %71 = vector.broadcast %70 : vector<1x128xf32> to vector<128x128xf32>
    %72 = arith.mulf %69, %71 : vector<128x128xf32>
    %c0_84 = arith.constant 0 : index
    %c0_85 = arith.constant 0 : index
    %73 = vector.load %arg5[%c0_84, %c0_85] : memref<1x128xf32, #tpu.memory_space<vmem>>, vector<1x128xf32>
    %74 = vector.broadcast %73 : vector<1x128xf32> to vector<128x128xf32>
    %75 = arith.addf %72, %74 : vector<128x128xf32>
    %cst_86 = arith.constant 0.000000e+00 : f32
    %76 = vector.broadcast %cst_86 : f32 to vector<128x128xf32>
    %77 = arith.maximumf %75, %76 : vector<128x128xf32>
    %c0_87 = arith.constant 0 : index
    %c0_88 = arith.constant 0 : index
    %78 = vector.load %arg6[%c0_87, %c0_88] : memref<8x128xbf16, #tpu.memory_space<vmem>>, vector<8x128xbf16>
    %79 = arith.truncf %77 : vector<128x128xf32> to vector<128x128xbf16>
    %cst_89 = arith.constant dense<0.000000e+00> : vector<8x128xf32>
    %80 = tpu.matmul %78, %79, %cst_89 {dimension_numbers = #tpu.dot_dimension_numbers<[1], [1], [0], [0], [0, 0, 1, 0], [], []>} : vector<8x128xbf16>, vector<128x128xbf16>, vector<8x128xf32> -> vector<8x128xf32>
    %c0_90 = arith.constant 0 : index
    %c0_91 = arith.constant 0 : index
    %81 = vector.load %arg7[%c0_90, %c0_91] : memref<8x1xf32, #tpu.memory_space<vmem>>, vector<8x1xf32>
    %82 = vector.broadcast %81 : vector<8x1xf32> to vector<8x128xf32>
    %83 = arith.addf %80, %82 : vector<8x128xf32>
    %84 = vector.extract_strided_slice %83 {offsets = [0, 0], sizes = [3, 128], strides = [1, 1]} : vector<8x128xf32> to vector<3x128xf32>
    %c0_92 = arith.constant 0 : index
    %c0_93 = arith.constant 0 : index
    %c0_94 = arith.constant 0 : index
    %c0_95 = arith.constant 0 : index
    %85 = vector.load %arg8[%c0_92, %c0_93, %c0_94, %c0_95] : memref<1x1x3x128xf32, #tpu.memory_space<vmem>>, vector<1x1x3x128xf32>
    %86 = vector.shape_cast %85 : vector<1x1x3x128xf32> to vector<3x128xf32>
    %87 = vector.shape_cast %84 : vector<3x128xf32> to vector<1x1x3x128xf32>
    tpu.vector_store %arg8[%c0_92, %c0_93, %c0_94, %c0_95], %87 {strides = array<i32>} : memref<1x1x3x128xf32, #tpu.memory_space<vmem>>, vector<1x1x3x128xf32>,
    return
  }
  func.func @transform_0(%arg0: i32, %arg1: i32) -> (i32, i32, i32, i32, i32) {
    %c0_i32 = arith.constant 0 : i32
    %c0_i32_0 = arith.constant 0 : i32
    %c0_i32_1 = arith.constant 0 : i32
    %c0_i32_2 = arith.constant 0 : i32
    return %arg0, %arg1, %c0_i32, %c0_i32_0, %c0_i32_1 : i32, i32, i32, i32, i32
  }
  func.func @transform_1(%arg0: i32, %arg1: i32) -> (i32, i32, i32, i32) {
    %c0_i32 = arith.constant 0 : i32
    %c0_i32_0 = arith.constant 0 : i32
    %c0_i32_1 = arith.constant 0 : i32
    %c0_i32_2 = arith.constant 0 : i32
    %c0_i32_3 = arith.constant 0 : i32
    return %c0_i32, %c0_i32_0, %c0_i32_1, %c0_i32_2 : i32, i32, i32, i32
  }
  func.func @transform_2(%arg0: i32, %arg1: i32) -> (i32, i32) {
    %c0_i32 = arith.constant 0 : i32
    %c0_i32_0 = arith.constant 0 : i32
    %c0_i32_1 = arith.constant 0 : i32
    return %c0_i32, %c0_i32_0 : i32, i32
  }
  func.func @transform_3(%arg0: i32, %arg1: i32) -> (i32, i32) {
    %c0_i32 = arith.constant 0 : i32
    %c0_i32_0 = arith.constant 0 : i32
    %c0_i32_1 = arith.constant 0 : i32
    return %c0_i32, %c0_i32_0 : i32, i32
  }
  func.func @transform_4(%arg0: i32, %arg1: i32) -> (i32, i32) {
    %c0_i32 = arith.constant 0 : i32
    %c0_i32_0 = arith.constant 0 : i32
    %c0_i32_1 = arith.constant 0 : i32
    return %c0_i32, %c0_i32_0 : i32, i32
  }
  func.func @transform_5(%arg0: i32, %arg1: i32) -> (i32, i32) {
    %c0_i32 = arith.constant 0 : i32
    %c0_i32_0 = arith.constant 0 : i32
    %c0_i32_1 = arith.constant 0 : i32
    return %c0_i32, %c0_i32_0 : i32, i32
  }
  func.func @transform_6(%arg0: i32, %arg1: i32) -> (i32, i32, i32, i32) {
    %c0_i32 = arith.constant 0 : i32
    %c0_i32_0 = arith.constant 0 : i32
    %c0_i32_1 = arith.constant 0 : i32
    return %arg0, %arg1, %c0_i32, %c0_i32_0 : i32, i32, i32, i32
  }
}

</mosaic_0001>

<bundles_post_ra>
// kernel: fcn_head_forward.3
= control target key start
LH: loop header
LB: loop body
LE: loop exit
PB: predicated region body
PF: predicated region fallthrough
CT: control target
= control target key end

     0   :  { %s3910_s21 = smov 0   ;;  %s3912_s22 = smov 0   ;;  %s4673_s0 = inlined_call_operand.vmem [shape: bf16[2,2,10,32,128], index: 0, kind: input, shape index: {}]   ;;  %s4674_s1 = inlined_call_operand.vmem [shape: bf16[3,3,128,128], index: 1, kind: input, shape index: {}]   ;;  %s4675_s2 = inlined_call_operand.vmem [shape: f32[1,128], index: 2, kind: input, shape index: {}]   ;;  %s4676_s3 = inlined_call_operand.vmem [shape: f32[1,128], index: 3, kind: input, shape index: {}]   ;;  %s4677_s4 = inlined_call_operand.vmem [shape: bf16[8,128], index: 4, kind: input, shape index: {}]   ;;  %s4678_s5 = inlined_call_operand.vmem [shape: f32[8,1], index: 5, kind: input, shape index: {}]   ;;  %s4679_s6 = inlined_call_operand.vmem [shape: f32[2,2,3,128], index: 6, kind: output, shape index: {}]  }
   0x1   :  { %s3914_s23 = smov 0   ;;  %s3916_s24 = smov 0  }
   0x2   :  { %s3918_s25 = smov 0  }
   0x3 LB: > { %s25_s26 = sadd.s32 1, %s3862_s23  ;;  %s28_s27 = sadd.s32 1, %s3866_s24  ;;  %s3870_s25 = sphi %s3918_s25, %s16_s25   ;;  %s3866_s24 = sphi %s3916_s24, %s4702_s24   ;;  %s3862_s23 = sphi %s3914_s23, %s4701_s23   ;;  %s3858_s22 = sphi %s3912_s22, %s4700_s22   ;;  %s3854_s21 = sphi %s3910_s21, %s4699_s21  }
   0x4   : > { %p26_p0 = scmp.ge.s32.totalorder %s25_s26, 2  ;;  %p2867_p1 = scmp.ge.s32.totalorder %s3870_s25, 1 }
   0x5   : > { %p232_p2 = scmp.lt.s32.totalorder %s3870_s25, 5 }
   0x6   : > { %s4704_s26 = smov (%p26_p0, %s25_s26), 0  ;;  %s4706_s27 = smov (!%p26_p0, %s28_s27), %s3866_s24 }
   0x7   : > { %p233_p3 = pnand %p2867_p1, %p232_p2  ;;  %p30_p4 = scmp.ge.s32.totalorder %s4706_s27, 2 }
   0x9   : > { %s4708_s27 = smov (%p30_p4, %s4706_s27), 0  ;;  %236 = sbr.rel (%p233_p3) target bundleno = 685 (0x2ad), region = 44 }
  0x10   : > { %v3750_v0 = vld [vmem:[%s4674_s1] sm:$0xff]   ;;  %p269_p5 = scmp.lt.s32.totalorder %s3858_s22, 1  ;;  %p271_p6 = scmp.lt.s32.totalorder %s3854_s21, 1  ;;  %v3752_v2 = vld [vmem:[%s4674_s1 + $0x8] sm:$0xff]   ;;  %v3754_v4 = vld [vmem:[%s4674_s1 + $0x10] sm:$0xff]   ;;  %vm590_vm0 = vcmask 1042432  }
  0x11   : > { %v3751_v1 = vld [vmem:[%s4674_s1 + $0x100] sm:$0xff]   ;;  %3268 = vmatprep.subr.bf16.mxu1 %v3750_v0  ;;  %v3753_v3 = vld [vmem:[%s4674_s1 + $0x108] sm:$0xff]   ;;  %v3755_v5 = vld [vmem:[%s4674_s1 + $0x110] sm:$0xff]   ;;  %vm591_vm1 = vcmask 1046532   ;;  %vm317_vm2 = vsmask.f32 3328 }
  0x12   : > { %s4710_s22 = smov (!%p269_p5, %s3858_s22), 1  ;;  %3396 = vmatprep.subr.bf16.mxu0 %v3751_v1  ;;  %3269 = vmatpush3.bf16.msra.mxu1 %v3750_v0  ;;  %s4712_s21 = smov (!%p271_p6, %s3854_s21), 1  ;;  %v3756_v6 = vld [vmem:[%s4674_s1 + $0x18] sm:$0xff]   ;;  %v3758_v8 = vld [vmem:[%s4674_s1 + $0x20] sm:$0xff]   ;;  %v3760_v10 = vld [vmem:[%s4674_s1 + $0x28] sm:$0xff]   ;;  %vm3873_vm6 = vmmov 0  }
  0x13   : > { %3397 = vmatpush3.bf16.msra.mxu0 %v3751_v1  ;;  %3270 = vmatprep.subr.bf16.mxu1 %v3752_v2  ;;  %s3705_s14 = smul.u32 80, %s4710_s22  ;;  %v3757_v7 = vld [vmem:[%s4674_s1 + $0x118] sm:$0xff]   ;;  %v3759_v9 = vld [vmem:[%s4674_s1 + $0x120] sm:$0xff]   ;;  %v3761_v14 = vld [vmem:[%s4674_s1 + $0x128] sm:$0xff]   ;;  %vm318_vm3 = vsmask.f32 7440 }
  0x14   : > { %3398 = vmatprep.subr.bf16.mxu0 %v3753_v3  ;;  %s3704_s17 = smul.u32 40, %s4712_s21  ;;  %v3762_v19 = vld [vmem:[%s4674_s1 + $0x30] sm:$0xff]   ;;  %v3764_v44 = vld [vmem:[%s4674_s1 + $0x38] sm:$0xff]   ;;  %vm4049_vm4 = vmor %vm317_vm2, %vm318_vm3 }
  0x15   : > { %v3763_v27 = vld [vmem:[%s4674_s1 + $0x130] sm:$0xff]   ;;  %v3765_v49 = vld [vmem:[%s4674_s1 + $0x138] sm:$0xff]   ;;  %vm4058_vm5 = vmor %vm590_vm0, %vm591_vm1 }
  0x16   : > { %3271 = vmatpush3.bf16.msra.mxu1 %v3752_v2  ;;  %s275_s18 = sadd.s32 %s3705_s14, %s3704_s17  ;;  %v3768_v61 = vld [vmem:[%s4674_s1 + $0x40] sm:$0xff]   ;;  %s2869_s17 = sshll.u32 %s4710_s22, 1 }
  0x17   : > { %3399 = vmatpush3.bf16.msra.mxu0 %v3753_v3  ;;  %3272 = vmatprep.subr.bf16.mxu1 %v3754_v4  ;;  %s2868_s30 = sshll.u32 %s275_s18, 2  ;;  %s283_s18 = sadd.s32 %s2869_s17, %s4712_s21 }
  0x18   : > { %3400 = vmatprep.subr.bf16.mxu0 %v3755_v5  ;;  %s3979_s13 = scalar_lea.vmem %s4673_s0, %s2868_s30  ;;  %s2870_s19 = sshll.u32 %s283_s18, 2 }
  0x19   : > { %v3985_v11 = vld [vmem:[%s3979_s13] sm:$0xf]  ;;  %v3988_v12 = vld [vmem:[%s3979_s13 + $0x4] sm:$0xf]  ;;  %v3991_v13 = vld [vmem:[%s3979_s13 + $0x10] sm:$0xf]  ;;  %s285_s28 = scalar_lea.vmem %s4679_s6, %s2870_s19 }
  0x1a   : > { %3273 = vmatpush3.bf16.msra.mxu1 %v3754_v4  ;;  %v321_v15 = vshrl.u32 %v3985_v11, 16  ;;  %v324_v16 = vshll.u32 %v3985_v11, 16  ;;  %v330_v17 = vshll.u32 %v3988_v12, 16  ;;  %v4000_v18 = vld [vmem:[%s3979_s13 + $0x14] sm:$0xf]  ;;  %v334_v20 = vshrl.u32 %v3988_v12, 16 }
  0x1b   : > { %3401 = vmatpush3.bf16.msra.mxu0 %v3755_v5  ;;  %3274 = vmatprep.subr.bf16.mxu1 %v3756_v6  ;;  %v2871_v21 = vrot.slane %v3985_v11, 9  ;;  %v4680_v22 = vrot.slane %v3988_v12, 5  ;;  %v2881_v23 = vcombine.low %v3985_v11, %v3988_v12  ;;  %v4011_v24 = vld [vmem:[%s3979_s13 + $0x18] sm:$0xf]  ;;  %v345_v28 = vshrl.u32 %v3991_v13, 16 }
  0x1c   : > { %3402 = vmatprep.subr.bf16.mxu0 %v3757_v7  ;;  %v4013_v25 = vrot.slane %v321_v15, 4  ;;  %v4015_v26 = vrot.slane %v324_v16, 5  ;;  %v348_v29 = vshll.u32 %v3991_v13, 16  ;;  %v354_v30 = vshll.u32 %v4000_v18, 16  ;;  %v4026_v33 = vld [vmem:[%s3979_s13 + $0x20] sm:$0xf] }
  0x1d   : > { %3284 = vmatprep.mubr.bf16.mxu1 %v2881_v23  ;;  %v358_v31 = vshrl.u32 %v4000_v18, 16  ;;  %v364_v32 = vshll.u32 %v4011_v24, 16  ;;  %v347_v34 = vrot.slane %v345_v28, 4  ;;  %v4029_v37 = vld [vmem:[%s3979_s13 + $0x24] sm:$0xf]  ;;  %v369_v38 = vshrl.u32 %v4026_v33, 16 }
  0x1e   : > { %3275 = vmatpush3.bf16.msra.mxu1 %v3756_v6  ;;  %v350_v35 = vrot.slane %v348_v29, 5  ;;  %v356_v36 = vrot.slane %v354_v30, 5  ;;  %v4032_v39 = vrot.slane %v330_v17, 5  ;;  %v4035_v41 = vld [vmem:[%s3979_s13 + $0x28] sm:$0xf]  ;;  %v372_v42 = vshll.u32 %v4026_v33, 16 }
  0x1f   : > { %3403 = vmatpush3.bf16.msra.mxu0 %v3757_v7  ;;  %3276 = vmatprep.subr.bf16.mxu1 %v3758_v8  ;;  %v360_v40 = vrot.slane %v358_v31, 4  ;;  %v378_v43 = vshll.u32 %v4029_v37, 16  ;;  %v371_v46 = vrot.slane %v369_v38, 4  ;;  %v382_v47 = vshrl.u32 %v4029_v37, 16  ;;  %v4078_v4 = vld [vmem:[%s3979_s13 + $0x30] sm:$0xf] }
  0x20   : > { %3404 = vmatprep.subr.bf16.mxu0 %v3759_v9  ;;  %v351_v45 = vor.u32 %v350_v35, %v347_v34  ;;  %v388_v48 = vshll.u32 %v4035_v41, 16  ;;  %v366_v52 = vrot.slane %v364_v32, 5  ;;  %v374_v53 = vrot.slane %v372_v42, 5  ;;  %v4081_v5 = vld [vmem:[%s3979_s13 + $0x34] sm:$0xf]  ;;  %v3770_v16 = vld [vmem:[%s4674_s1 + $0x48] sm:$0xff]  }
  0x21   : > { %v361_v51 = vor.u32 %v360_v40, %v356_v36  ;;  %v380_v54 = vrot.slane %v378_v43, 5  ;;  %v4053_v55 = vrot.slane %v334_v20, 4  ;;  %v384_v57 = vrot.slane %v382_v47, 4  ;;  %v4114_v34 = vld [vmem:[%s3979_s13 + $0x40] sm:$0xf] }
  0x22   : > { %3277 = vmatpush3.bf16.msra.mxu1 %v3758_v8  ;;  %v352_v56 = vrot.slane %v351_v45, 4  ;;  %v375_v62 = vor.u32 %v374_v53, %v371_v46  ;;  %v390_v63 = vrot.slane %v388_v48, 5  ;;  %v4069_v0 = vsel %vm4058_vm5, %v2871_v21, %v4680_v22  ;;  %v3769_v8 = vld [vmem:[%s4674_s1 + $0x140] sm:$0xff]   ;;  %v3771_v21 = vld [vmem:[%s4674_s1 + $0x148] sm:$0xff]   ;;  %v3787_v22 = vld [vmem:[%s4674_s1 + $0x170] sm:$0xff]  }
  0x23   : > { %3405 = vmatpush3.bf16.msra.mxu0 %v3759_v9  ;;  %3278 = vmatprep.subr.bf16.mxu1 %v3760_v10  ;;  %v362_v60 = vrot.slane %v361_v51, 4  ;;  %v4075_v2 = vcombine.low %v3991_v13, %v4000_v18  ;;  %v385_v3 = vor.u32 %v384_v57, %v380_v54  ;;  %v4089_v9 = vld [vmem:[%s3979_s13 + $0x38] sm:$0xf]  ;;  %v396_v11 = vshll.u32 %v4078_v4, 16  ;;  %v4117_v35 = vld [vmem:[%s3979_s13 + $0x44] sm:$0xf] }
  0x24   : > { %3406 = vmatprep.subr.bf16.mxu0 %v3761_v14  ;;  %v357_v1 = vsel %vm4049_vm4, %v352_v56, %v356_v36  ;;  %v376_v7 = vrot.slane %v375_v62, 4  ;;  %v402_v17 = vshll.u32 %v4081_v5, 16  ;;  %v412_v28 = vshll.u32 %v4089_v9, 16  ;;  %v4122_v42 = vld [vmem:[%s3979_s13 + $0x48] sm:$0xf] }
  0x25   : > { %4690 = vst [vmem:[#allocation3_spill] sm:$0xff] %v4075_v2  ;;  %v367_v6 = vsel %vm4049_vm4, %v362_v60, %v366_v52  ;;  %v386_v15 = vrot.slane %v385_v3, 4  ;;  %v4111_v30 = vcombine.low %v4026_v33, %v4029_v37  ;;  %v417_v43 = vshrl.u32 %v4114_v34, 16 }
  0x26   : > { %3279 = vmatpush3.bf16.msra.mxu1 %v3760_v10  ;;  %v393_v10 = vshrl.u32 %v4078_v4, 16  ;;  %v381_v20 = vsel %vm4049_vm4, %v376_v7, %v380_v54  ;;  %v404_v31 = vrot.slane %v402_v17, 5  ;;  %v414_v40 = vrot.slane %v412_v28, 5  ;;  %v3776_v17 = vld [vmem:[%s4674_s1 + $0x58] sm:$0xff]  }
  0x27   : > { %3407 = vmatpush3.bf16.msra.mxu0 %v3761_v14  ;;  %3280 = vmatprep.subr.bf16.mxu1 %v3762_v19  ;;  %v4093_v14 = vcombine.low %v357_v1, %v367_v6  ;;  %v391_v29 = vsel %vm4049_vm4, %v386_v15, %v390_v63  ;;  %v420_v45 = vshll.u32 %v4114_v34, 16  ;;  %v426_v46 = vshll.u32 %v4117_v35, 16  ;;  %v3775_v63 = vld [vmem:[%s4674_s1 + $0x150] sm:$0xff]  }
  0x28   : > { %3408 = vmatprep.subr.bf16.mxu0 %v3763_v27  ;;  %v395_v23 = vrot.slane %v393_v10, 4  ;;  %v4119_v36 = vcombine.low %v381_v20, %v391_v29  ;;  %v430_v47 = vshrl.u32 %v4117_v35, 16  ;;  %v419_v51 = vrot.slane %v417_v43, 4  ;;  %v4154_v10 = vld [vmem:[%s3979_s13 + $0x54] sm:$0xf] }
  0x29   : > { %3412 = vmatprep.mubr.bf16.mxu0 %v4093_v14  ;;  %v436_v52 = vshll.u32 %v4122_v42, 16  ;;  %v422_v54 = vrot.slane %v420_v45, 5  ;;  %v428_v56 = vrot.slane %v426_v46, 5  ;;  %v4148_v7 = vcombine.low %v4114_v34, %v4117_v35 }
  0x2a   : > { %3281 = vmatpush3.bf16.msra.mxu1 %v3762_v19  ;;  %v406_v19 = vshrl.u32 %v4081_v5, 16  ;;  %v432_v57 = vrot.slane %v430_v47, 4 }
  0x2b   : > { %3409 = vmatpush3.bf16.msra.mxu0 %v3763_v27  ;;  %3282 = vmatprep.subr.bf16.mxu1 %v3764_v44  ;;  %v398_v27 = vrot.slane %v396_v11, 5  ;;  %v438_v62 = vrot.slane %v436_v52, 5  ;;  %v423_v3 = vor.u32 %v422_v54, %v419_v51  ;;  %4691 = vst [vmem:[#allocation4_spill] sm:$0xff] %v4148_v7  ;;  %v4157_v11 = vld [vmem:[%s3979_s13 + $0x58] sm:$0xf] }
  0x2c   : > { %3410 = vmatprep.subr.bf16.mxu0 %v3765_v49  ;;  %v408_v32 = vrot.slane %v406_v19, 4  ;;  %v433_v6 = vor.u32 %v432_v57, %v428_v56  ;;  %v460_v29 = vshll.u32 %v4157_v11, 16  ;;  %v4187_v51 = vld [vmem:[%s3979_s13 + $0x68] sm:$0xf] }
  0x2d   : > { %v399_v38 = vor.u32 %v398_v27, %v395_v23  ;;  %v450_v23 = vshll.u32 %v4154_v10, 16  ;;  %v424_v27 = vrot.slane %v423_v3, 4 }
  0x2e   : > { %3283 = vmatpush3.bf16.msra.mxu1 %v3764_v44  ;;  %v409_v44 = vor.u32 %v408_v32, %v404_v31  ;;  %v434_v28 = vrot.slane %v433_v6, 4  ;;  %v462_v47 = vrot.slane %v460_v29, 5  ;;  %v3782_v29 = vld [vmem:[%s4674_s1 + $0x68] sm:$0xff]  }
  0x2f   : > { %3411 = vmatpush3.bf16.msra.mxu0 %v3765_v49  ;;  %3300 = vmatprep.subr.bf16.mxu1 %v3768_v61  ;;  %v400_v48 = vrot.slane %v399_v38, 4  ;;  %v3774_v49 = vld [vmem:[%s4674_s1 + $0x50] sm:$0xff]  }
  0x30   : > { %3428 = vmatprep.subr.bf16.mxu0 %v3769_v8  ;;  %v410_v53 = vrot.slane %v409_v44, 4  ;;  %v429_v44 = vsel %vm4049_vm4, %v424_v27, %v428_v56  ;;  %v439_v45 = vsel %vm4049_vm4, %v434_v28, %v438_v62 }
  0x31   : > { %3285 = vmatmul.mubr.bf16.vlgmr.msra.gmra.mrb[0].mxu1 %v4075_v2  ;;  %v405_v60 = vsel %vm4049_vm4, %v400_v48, %v404_v31  ;;  %v3777_v31 = vld [vmem:[%s4674_s1 + $0x158] sm:$0xff]   ;;  %v4184_v48 = vld [vmem:[%s3979_s13 + $0x64] sm:$0xf]  ;;  %v4189_v52 = vcombine.low %v429_v44, %v439_v45  ;;  %v4218_v45 = vld [vmem:[%s3979_s13 + $0x70] sm:$0xf] }
  0x32   : > { %3413 = vmatmul.mubr.bf16.vlgmr.msra.gmra.mrb[0].mxu0 %v4119_v36  ;;  %3301 = vmatpush3.bf16.msra.mxu1 %v3768_v61  ;;  %v4139_v61 = vcombine.low %v4078_v4, %v4081_v5  ;;  %v415_v1 = vsel %vm4049_vm4, %v410_v53, %v414_v40  ;;  %v452_v40 = vrot.slane %v450_v23, 5  ;;  %v474_v62 = vshll.u32 %v4184_v48, 16 }
  0x33   : > { %3429 = vmatpush3.bf16.msra.mxu0 %v3769_v8  ;;  %3302 = vmatprep.subr.bf16.mxu1 %v3770_v16  ;;  %v4151_v8 = vld [vmem:[%s3979_s13 + $0x50] sm:$0xf]  ;;  %v4159_v15 = vcombine.low %v405_v60, %v415_v1  ;;  %v3780_v60 = vld [vmem:[%s4674_s1 + $0x60] sm:$0xff]   ;;  %v478_v1 = vshrl.u32 %v4184_v48, 16 }
  0x34   : > { %3430 = vmatprep.subr.bf16.mxu0 %v3771_v21  ;;  %3288 = vmatprep.mubr.bf16.mxu1 %v4111_v30  ;;  %v441_v19 = vshrl.u32 %v4151_v8, 16  ;;  %v444_v20 = vshll.u32 %v4151_v8, 16  ;;  %v476_v27 = vrot.slane %v474_v62, 5 }
  0x35   : > { %3416 = vmatprep.mubr.bf16.mxu0 %v4159_v15  ;;  %v480_v28 = vrot.slane %v478_v1, 4 }
  0x36   : > { %3303 = vmatpush3.bf16.msra.mxu1 %v3770_v16  ;;  %v454_v16 = vshrl.u32 %v4154_v10, 16  ;;  %v443_v32 = vrot.slane %v441_v19, 4  ;;  %v446_v38 = vrot.slane %v444_v20, 5  ;;  %v3781_v20 = vld [vmem:[%s4674_s1 + $0x160] sm:$0xff]  }
  0x37   : > { %3431 = vmatpush3.bf16.msra.mxu0 %v3771_v21  ;;  %3304 = vmatprep.subr.bf16.mxu1 %v3774_v49  ;;  %v4174_v21 = vld [vmem:[%s3979_s13 + $0x60] sm:$0xf] }
  0x38   : > { %3432 = vmatprep.subr.bf16.mxu0 %v3775_v63  ;;  %v456_v46 = vrot.slane %v454_v16, 4  ;;  %v447_v53 = vor.u32 %v446_v38, %v443_v32  ;;  %v465_v54 = vshrl.u32 %v4174_v21, 16  ;;  %v468_v57 = vshll.u32 %v4174_v21, 16 }
  0x39   : > { %3289 = vmatmul.mubr.bf16.gmra.mrb[4].mxu1 %v4139_v61  ;;  %v4215_v44 = vcombine.low %v4174_v21, %v4184_v48 }
  0x3a   : > { %3305 = vmatpush3.bf16.msra.mxu1 %v3774_v49  ;;  %3292 = vmatprep.mubr.bf16.mxu1 %v4148_v7  ;;  %v457_v56 = vor.u32 %v456_v46, %v452_v40  ;;  %v484_v49 = vshll.u32 %v4187_v51, 16  ;;  %v448_v3 = vrot.slane %v447_v53, 4  ;;  %v467_v6 = vrot.slane %v465_v54, 4  ;;  %v4221_v46 = vld [vmem:[%s3979_s13 + $0x74] sm:$0xf] }
  0x3b   : > { %3433 = vmatpush3.bf16.msra.mxu0 %v3775_v63  ;;  %3306 = vmatprep.subr.bf16.mxu1 %v3776_v17  ;;  %v4203_v63 = vcombine.low %v4151_v8, %v4154_v10  ;;  %v470_v19 = vrot.slane %v468_v57, 5  ;;  %v337_v53 = vor.u32 %v4053_v55, %v4032_v39  ;;  %v489_v57 = vshrl.u32 %v4218_v45, 16  ;;  %v3783_v55 = vld [vmem:[%s4674_s1 + $0x168] sm:$0xff]  }
  0x3c   : > { %3417 = vmatmul.mubr.bf16.gmra.mrb[4].mxu0 %v4189_v52  ;;  %3434 = vmatprep.subr.bf16.mxu0 %v3777_v31  ;;  %v458_v23 = vrot.slane %v457_v56, 4  ;;  %v486_v16 = vrot.slane %v484_v49, 5  ;;  %v453_v32 = vsel %vm4049_vm4, %v448_v3, %v452_v40  ;;  %v4228_v40 = vld [vmem:[%s3979_s13 + $0x78] sm:$0xf]  ;;  %v492_v56 = vshll.u32 %v4218_v45, 16 }
  0x3d   : > { %4692 = vst [vmem:[#allocation5_spill] sm:$0xff] %v4203_v63  ;;  %v471_v38 = vor.u32 %v470_v19, %v467_v6  ;;  %v491_v3 = vrot.slane %v489_v57, 4  ;;  %v508_v19 = vshll.u32 %v4228_v40, 16  ;;  %v4255_v57 = vld [vmem:[%s3979_s13 + $0x84] sm:$0xf] }
  0x3e   : > { %3307 = vmatpush3.bf16.msra.mxu1 %v3776_v17  ;;  %v463_v54 = vsel %vm4049_vm4, %v458_v23, %v462_v47  ;;  %v481_v17 = vor.u32 %v480_v28, %v476_v27  ;;  %v502_v47 = vshrl.u32 %v4221_v46, 16  ;;  %v494_v6 = vrot.slane %v492_v56, 5  ;;  %v3786_v23 = vld [vmem:[%s4674_s1 + $0x70] sm:$0xff]   ;;  %v4245_v28 = vld [vmem:[%s3979_s13 + $0x80] sm:$0xf] }
  0x3f   : > { %3435 = vmatpush3.bf16.msra.mxu0 %v3777_v31  ;;  %3308 = vmatprep.subr.bf16.mxu1 %v3780_v60  ;;  %v4232_v62 = vcombine.low %v453_v32, %v463_v54  ;;  %v472_v1 = vrot.slane %v471_v38, 4  ;;  %v498_v31 = vshll.u32 %v4221_v46, 16  ;;  %v4258_v56 = vld [vmem:[%s3979_s13 + $0x88] sm:$0xf]  ;;  %v516_v43 = vshll.u32 %v4245_v28, 16 }
  0x40   : > { %3436 = vmatprep.subr.bf16.mxu0 %v3781_v20  ;;  %v482_v49 = vrot.slane %v481_v17, 4  ;;  %v504_v54 = vrot.slane %v502_v47, 4  ;;  %v4252_v17 = vcombine.low %v4218_v45, %v4221_v46  ;;  %v522_v2 = vshll.u32 %v4255_v57, 16 }
  0x41   : > { %3293 = vmatmul.mubr.bf16.gmra.mrb[8].mxu1 %v4203_v63  ;;  %3420 = vmatprep.mubr.bf16.mxu0 %v4232_v62  ;;  %v477_v32 = vsel %vm4049_vm4, %v472_v1, %v476_v27  ;;  %v500_v38 = vrot.slane %v498_v31, 5  ;;  %v510_v27 = vrot.slane %v508_v19, 5  ;;  %v513_v1 = vshrl.u32 %v4245_v28, 16 }
  0x42   : > { %3309 = vmatpush3.bf16.msra.mxu1 %v3780_v60  ;;  %v487_v58 = vsel %vm4049_vm4, %v482_v49, %v486_v16  ;;  %v495_v60 = vor.u32 %v494_v6, %v491_v3  ;;  %3296 = vmatprep.mubr.bf16.mxu1 %v4215_v44  ;;  %v532_v16 = vshll.u32 %v4258_v56, 16  ;;  %v518_v49 = vrot.slane %v516_v43, 5  ;;  %v3789_v43 = vld [vmem:[%s4674_s1 + $0x178] sm:$0xff]  }
  0x43   : > { %3437 = vmatpush3.bf16.msra.mxu0 %v3781_v20  ;;  %3310 = vmatprep.subr.bf16.mxu1 %v3782_v29  ;;  %v4266_v31 = vcombine.low %v477_v32, %v487_v58  ;;  %v505_v47 = vor.u32 %v504_v54, %v500_v38  ;;  %v515_v7 = vrot.slane %v513_v1, 4  ;;  %v526_v20 = vshrl.u32 %v4255_v57, 16  ;;  %v3788_v1 = vld [vmem:[%s4674_s1 + $0x78] sm:$0xff]  }
  0x44   : > { %3438 = vmatprep.subr.bf16.mxu0 %v3783_v55  ;;  %v496_v63 = vrot.slane %v495_v60, 4  ;;  %v524_v3 = vrot.slane %v522_v2, 5  ;;  %v4693_v6 = vor.u32 %v4015_v26, %v4013_v25  ;;  %v534_v60 = vrot.slane %v532_v16, 5  ;;  %v4286_v2 = vld [vmem:[%s3979_s13 + $0x8] sm:$0xf] }
  0x45   : > { %3421 = vmatmul.mubr.bf16.gmra.mrb[8].mxu0 %v4266_v31  ;;  %v506_v58 = vrot.slane %v505_v47, 4  ;;  %v528_v54 = vrot.slane %v526_v20, 4  ;;  %v519_v26 = vor.u32 %v518_v49, %v515_v7  ;;  %v2872_v47 = vrot.slane %v3991_v13, 9 }
  0x46   : > { %3311 = vmatpush3.bf16.msra.mxu1 %v3782_v29  ;;  %v328_v19 = vrot.slane %v4693_v6, 4  ;;  %v501_v32 = vsel %vm4049_vm4, %v496_v63, %v500_v38  ;;  %v338_v29 = vrot.slane %v337_v53, 4  ;;  %v340_v63 = vshll.u32 %v4286_v2, 16 }
  0x47   : > { %3439 = vmatpush3.bf16.msra.mxu0 %v3783_v55  ;;  %3312 = vmatprep.subr.bf16.mxu1 %v3786_v23  ;;  %v511_v25 = vsel %vm4049_vm4, %v506_v58, %v510_v27  ;;  %v529_v38 = vor.u32 %v528_v54, %v524_v3  ;;  %v602_v20 = vrot.slane %v4000_v18, 5  ;;  %v520_v16 = vrot.slane %v519_v26, 4 }
  0x48   : > { %3440 = vmatprep.subr.bf16.mxu0 %v3787_v22  ;;  %v4291_v55 = vcombine.low %v501_v32, %v511_v25  ;;  %v333_v27 = vsel %vm4049_vm4, %v328_v19, %v4032_v39  ;;  %v342_v7 = vrot.slane %v340_v63, 5  ;;  %v605_v53 = vrot.slane %v4011_v24, 5  ;;  %v3790_v24 = vld [vmem:[%s4674_s1 + $0x80] sm:$0xff]  }
  0x49   : > { %3297 = vmatmul.mubr.bf16.gmra.mrb[12].mxu1 %v4252_v17  ;;  %v530_v58 = vrot.slane %v529_v38, 4  ;;  %v603_v49 = vsel %vm4058_vm5, %v2872_v47, %v602_v20  ;;  %v604_v6 = vrot.slane %v602_v20, 4  ;;  %v609_v13 = vrot.slane %v4029_v37, 5  ;;  %v3791_v32 = vld [vmem:[%s4674_s1 + $0x180] sm:$0xff]  }
  0x4a   : > { %3313 = vmatpush3.bf16.msra.mxu1 %v3786_v23  ;;  %3424 = vmatprep.mubr.bf16.mxu0 %v4291_v55  ;;  %v525_v18 = vsel %vm4049_vm4, %v520_v16, %v524_v3  ;;  %v343_v39 = vsel %vm4049_vm4, %v338_v29, %v342_v7  ;;  %v4314_v23 = vcombine.low %v4245_v28, %v4255_v57  ;;  %v2874_v54 = vrot.slane %v4078_v4, 9 }
  0x4b   : > { %3441 = vmatpush3.bf16.msra.mxu0 %v3787_v22  ;;  %3314 = vmatprep.subr.bf16.mxu1 %v3788_v1  ;;  %v2873_v22 = vrot.slane %v4026_v33, 9  ;;  %v535_v37 = vsel %vm4049_vm4, %v530_v58, %v534_v60  ;;  %v2913_v19 = vcombine.low %v333_v27, %v343_v39  ;;  %v606_v3 = vsel %vm4058_vm5, %v604_v6, %v605_v53  ;;  %v3792_v60 = vld [vmem:[%s4674_s1 + $0x88] sm:$0xff]   ;;  %v3798_v39 = vld [vmem:[%s4674_s1 + $0xa0] sm:$0xff]  }
  0x4c   : > { %3442 = vmatprep.subr.bf16.mxu0 %v3789_v43  ;;  %v4324_v25 = vcombine.low %v525_v18, %v535_v37  ;;  %v4326_v33 = vcombine.low %v603_v49, %v606_v3  ;;  %v611_v26 = vrot.slane %v609_v13, 4  ;;  %v616_v29 = vrot.slane %v4081_v5, 5 }
  0x4d   : > { %3316 = vmatprep.mubr.bf16.mxu1 %v2913_v19  ;;  %v619_v63 = vrot.slane %v4089_v9, 5  ;;  %v4694_v5 = vrot.slane %v4035_v41, 5  ;;  %v623_v38 = vrot.slane %v4117_v35, 5  ;;  %v3794_v41 = vld [vmem:[%s4674_s1 + $0x90] sm:$0xff]   ;;  %v2875_v35 = vrot.slane %v4114_v34, 9  ;;  %v3796_v34 = vld [vmem:[%s4674_s1 + $0x98] sm:$0xff]  }
  0x4e   : > { %3315 = vmatpush3.bf16.msra.mxu1 %v3788_v1  ;;  %3425 = vmatmul.mubr.bf16.gmra.mrb[12].mxu0 %v4324_v25  ;;  %v618_v4 = vrot.slane %v616_v29, 4  ;;  %v610_v1 = vsel %vm4058_vm5, %v2873_v22, %v609_v13  ;;  %v617_v9 = vsel %vm4058_vm5, %v2874_v54, %v616_v29  ;;  %v626_v7 = vrot.slane %v4122_v42, 5  ;;  %v3797_v54 = vld [vmem:[%s4674_s1 + $0x198] sm:$0xff]  }
  0x4f   : > { %3443 = vmatpush3.bf16.msra.mxu0 %v3789_v43  ;;  %3332 = vmatprep.subr.bf16.mxu1 %v3790_v24  ;;  %v613_v43 = vsel %vm4058_vm5, %v611_v26, %v4694_v5  ;;  %v625_v27 = vrot.slane %v623_v38, 4  ;;  %v2876_v53 = vrot.slane %v4151_v8, 9  ;;  %v633_v49 = vrot.slane %v4157_v11, 5  ;;  %v3795_v8 = vld [vmem:[%s4674_s1 + $0x190] sm:$0xff]  }
  0x50   : > { %3444 = vmatprep.mubr.bf16.mxu0 %v4326_v33  ;;  %3460 = vmatprep.subr.bf16.mxu0 %v3791_v32  ;;  %v620_v47 = vsel %vm4058_vm5, %v618_v4, %v619_v63  ;;  %v4352_v20 = vcombine.low %v610_v1, %v613_v43  ;;  %v624_v42 = vsel %vm4058_vm5, %v2875_v35, %v623_v38  ;;  %v637_v11 = vrot.slane %v4184_v48, 5  ;;  %v3803_v35 = vld [vmem:[%s4674_s1 + $0x1b0] sm:$0xff]  }
  0x51   : > { %3317 = vmatmul.mubr.bf16.vlgmr.msra.gmra.mrb[0].mxu1 %v4093_v14  ;;  %v630_v14 = vrot.slane %v4154_v10, 5  ;;  %v4355_v16 = vcombine.low %v617_v9, %v620_v47  ;;  %v3793_v10 = vld [vmem:[%s4674_s1 + $0x188] sm:$0xff]   ;;  %v627_v6 = vsel %vm4058_vm5, %v625_v27, %v626_v7  ;;  %v2877_v48 = vrot.slane %v4174_v21, 9  ;;  %v3806_v7 = vld [vmem:[%s4674_s1 + $0xc0] sm:$0xff]  }
  0x52   : > { %3333 = vmatpush3.bf16.msra.mxu1 %v3790_v24  ;;  %3320 = vmatprep.mubr.bf16.mxu1 %v4119_v36  ;;  %v644_v24 = vrot.slane %v4221_v46, 5  ;;  %v640_v22 = vrot.slane %v4187_v51, 5  ;;  %v4695_v37 = vrot.slane %v3988_v12, 5  ;;  %v598_v3 = vrot.slane %v4286_v2, 5 }
  0x53   : > { %3334 = vmatprep.subr.bf16.mxu1 %v3792_v60  ;;  %v632_v58 = vrot.slane %v630_v14, 4  ;;  %v631_v13 = vsel %vm4058_vm5, %v2876_v53, %v630_v14  ;;  %v639_v26 = vrot.slane %v637_v11, 4  ;;  %v2878_v21 = vrot.slane %v4218_v45, 9  ;;  %v3801_v14 = vld [vmem:[%s4674_s1 + $0x1a8] sm:$0xff]  }
  0x54   : > { %v597_v19 = vrot.slane %v4695_v37, 4  ;;  %v646_v12 = vrot.slane %v644_v24, 4  ;;  %v647_v2 = vrot.slane %v4228_v40, 5  ;;  %v638_v45 = vsel %vm4058_vm5, %v2877_v48, %v637_v11  ;;  %v3808_v53 = vld [vmem:[%s4674_s1 + $0xc8] sm:$0xff]   ;;  %v3813_v11 = vld [vmem:[%s4674_s1 + $0x1d8] sm:$0xff]  }
  0x55   : > { %v634_v18 = vsel %vm4058_vm5, %v632_v58, %v633_v49  ;;  %v641_v63 = vsel %vm4058_vm5, %v639_v26, %v640_v22  ;;  %v651_v40 = vrot.slane %v4255_v57, 5  ;;  %v645_v4 = vsel %vm4058_vm5, %v2878_v21, %v644_v24  ;;  %v3802_v57 = vld [vmem:[%s4674_s1 + $0xb0] sm:$0xff]   ;;  %v3807_v58 = vld [vmem:[%s4674_s1 + $0x1c0] sm:$0xff]   ;;  %v3817_v48 = vld [vmem:[%s4674_s1 + $0x1e8] sm:$0xff]  }
  0x56   : > { %3335 = vmatpush3.bf16.msra.mxu1 %v3792_v60  ;;  %3445 = vmatmul.mubr.bf16.vlgmr.msra.gmra.mrb[0].mxu0 %v4352_v20  ;;  %v4396_v46 = vcombine.low %v631_v13, %v634_v18  ;;  %v599_v51 = vsel %vm4058_vm5, %v597_v19, %v598_v3  ;;  %v3800_v60 = vld [vmem:[%s4674_s1 + $0xa8] sm:$0xff]   ;;  %v648_v1 = vsel %vm4058_vm5, %v646_v12, %v647_v2  ;;  %v2879_v43 = vrot.slane %v4245_v28, 9  ;;  %v3810_v49 = vld [vmem:[%s4674_s1 + $0xd0] sm:$0xff]   ;;  %v3822_v22 = vld [vmem:[%s4674_s1 + $0xf8] sm:$0xff]  }
  0x57   : > { %3336 = vmatprep.subr.bf16.mxu1 %v3794_v41  ;;  %3461 = vmatpush3.bf16.msra.mxu0 %v3791_v32  ;;  %v4391_v32 = vcombine.low %v624_v42, %v627_v6  ;;  %v2945_v29 = vcombine.low %v4069_v0, %v599_v51  ;;  %v3799_v0 = vld [vmem:[%s4674_s1 + $0x1a0] sm:$0xff]   ;;  %v4422_v5 = vcombine.low %v638_v45, %v641_v63  ;;  %v653_v9 = vrot.slane %v651_v40, 4  ;;  %v4696_v42 = vld [vmem:[#allocation4_spill] sm:$0xff]  ;;  %v3811_v6 = vld [vmem:[%s4674_s1 + $0x1d0] sm:$0xff]  }
  0x58   : > { %3448 = vmatprep.mubr.bf16.mxu0 %v4355_v16  ;;  %3462 = vmatprep.subr.bf16.mxu0 %v3793_v10  ;;  %v4428_v38 = vcombine.low %v645_v4, %v648_v1  ;;  %v654_v47 = vrot.slane %v4258_v56, 5  ;;  %v652_v28 = vsel %vm4058_vm5, %v2879_v43, %v651_v40  ;;  %v4697_v13 = vld [vmem:[#allocation5_spill] sm:$0xff]  ;;  %v3816_v18 = vld [vmem:[%s4674_s1 + $0xe8] sm:$0xff]   ;;  %v3823_v21 = vld [vmem:[%s4674_s1 + $0x1f8] sm:$0xff]  }
  0x59   : > { %3321 = vmatmul.mubr.bf16.gmra.mrb[4].mxu1 %v4159_v15  ;;  %v3819_v24 = vld [vmem:[%s4674_s1 + $0xf0] sm:$0xff]   ;;  %v3824_v51 = vld [vmem:[%s4674_s1 + $0x200] sm:$0xff]   ;;  %v3825_v12 = vld [vmem:[%s4674_s1 + $0x208] sm:$0xff]  }
  0x5a   : > { %3337 = vmatpush3.bf16.msra.mxu1 %v3794_v41  ;;  %3324 = vmatprep.mubr.bf16.mxu1 %v4189_v52  ;;  %v3804_v41 = vld [vmem:[%s4674_s1 + $0xb8] sm:$0xff]   ;;  %v655_v56 = vsel %vm4058_vm5, %v653_v9, %v654_v47  ;;  %v4509_v37 = vld [vmem:[%s3979_s13 + $0x90] sm:$0xf]  ;;  %v4512_v19 = vld [vmem:[%s3979_s13 + $0x94] sm:$0xf] }
  0x5b   : > { %3338 = vmatprep.subr.bf16.mxu1 %v3796_v34  ;;  %3463 = vmatpush3.bf16.msra.mxu0 %v3793_v10  ;;  %v4447_v27 = vcombine.low %v652_v28, %v655_v56  ;;  %v3805_v10 = vld [vmem:[%s4674_s1 + $0x1b8] sm:$0xff]   ;;  %v3821_v3 = vld [vmem:[%s4674_s1 + $0x1f0] sm:$0xff]   ;;  %v3052_v26 = vcombine.low %v4509_v37, %v4512_v19  ;;  %v537_v2 = vshrl.u32 %v4509_v37, 16  ;;  %v658_v50 = vrot.slane %v4512_v19, 5 }
  0x5c   : > { %3464 = vmatprep.subr.bf16.mxu0 %v3795_v8  ;;  %v316_v40 = vld [vmem:[%s3979_s13 + $0x98] sm:$0xf] }
  0x5d   : > { %v556_v1 = vshll.u32 %v316_v40, 16 }
  0x5e   : > { %3339 = vmatpush3.bf16.msra.mxu1 %v3796_v34  ;;  %3449 = vmatmul.mubr.bf16.gmra.mrb[4].mxu0 %v4391_v32  ;;  %v3809_v34 = vld [vmem:[%s4674_s1 + $0x1c8] sm:$0xff]  }
  0x5f   : > { %3340 = vmatprep.subr.bf16.mxu1 %v3798_v39  ;;  %3465 = vmatpush3.bf16.msra.mxu0 %v3795_v8  ;;  %v3814_v8 = vld [vmem:[%s4674_s1 + $0xe0] sm:$0xff]   ;;  %v558_v47 = vrot.slane %v556_v1, 5 }
  0x60   : > { %3452 = vmatprep.mubr.bf16.mxu0 %v4396_v46  ;;  %3466 = vmatprep.subr.bf16.mxu0 %v3797_v54 }
  0x61   : > { %3325 = vmatmul.mubr.bf16.gmra.mrb[8].mxu1 %v4232_v62 }
  0x62   : > { %3341 = vmatpush3.bf16.msra.mxu1 %v3798_v39  ;;  %3328 = vmatprep.mubr.bf16.mxu1 %v4266_v31  ;;  %v3815_v39 = vld [vmem:[%s4674_s1 + $0x1e0] sm:$0xff]  }
  0x63   : > { %3342 = vmatprep.subr.bf16.mxu1 %v3800_v60  ;;  %3467 = vmatpush3.bf16.msra.mxu0 %v3797_v54  ;;  %v4698_v54 = vld [vmem:[#allocation3_spill] sm:$0xff] }
  0x64   : > { %3468 = vmatprep.subr.bf16.mxu0 %v3799_v0 }
  0x66   : > { %3343 = vmatpush3.bf16.msra.mxu1 %v3800_v60  ;;  %3453 = vmatmul.mubr.bf16.gmra.mrb[8].mxu0 %v4422_v5 }
  0x67   : > { %3344 = vmatprep.subr.bf16.mxu1 %v3802_v57  ;;  %3469 = vmatpush3.bf16.msra.mxu0 %v3799_v0 }
  0x68   : > { %3456 = vmatprep.mubr.bf16.mxu0 %v4428_v38  ;;  %3470 = vmatprep.subr.bf16.mxu0 %v3801_v14 }
  0x69   : > { %3329 = vmatmul.mubr.bf16.gmra.mrb[12].mxu1 %v4291_v55 }
  0x6a   : > { %3345 = vmatpush3.bf16.msra.mxu1 %v3802_v57  ;;  %3348 = vmatprep.mubr.bf16.mxu1 %v2945_v29  ;;  %v3826_v29 = vld [vmem:[%s4674_s1 + $0x210] sm:$0xff]   ;;  %v3828_v57 = vld [vmem:[%s4674_s1 + $0x220] sm:$0xff]  }
  0x6b   : > { %3346 = vmatprep.subr.bf16.mxu1 %v3804_v41  ;;  %3471 = vmatpush3.bf16.msra.mxu0 %v3801_v14 }
  0x6c   : > { %3472 = vmatprep.subr.bf16.mxu0 %v3803_v35 }
  0x6e   : > { %3347 = vmatpush3.bf16.msra.mxu1 %v3804_v41  ;;  %3457 = vmatmul.mubr.bf16.gmra.mrb[12].mxu0 %v4447_v27  ;;  %v661_v41 = vrot.slane %v316_v40, 5 }
  0x6f   : > { %3364 = vmatprep.subr.bf16.mxu1 %v3806_v7  ;;  %3473 = vmatpush3.bf16.msra.mxu0 %v3803_v35 }
  0x70   : > { %3476 = vmatprep.mubr.bf16.mxu0 %v4111_v30  ;;  %3474 = vmatprep.subr.bf16.mxu0 %v3805_v10 }
  0x71   : > { %3349 = vmatmul.mubr.bf16.vlgmr.msra.gmra.mrb[0].mxu1 %v4326_v33  ;;  %v3812_v33 = vld [vmem:[%s4674_s1 + $0xd8] sm:$0xff]  }
  0x72   : > { %3365 = vmatpush3.bf16.msra.mxu1 %v3806_v7  ;;  %3352 = vmatprep.mubr.bf16.mxu1 %v4352_v20 }
  0x73   : > { %3366 = vmatprep.subr.bf16.mxu1 %v3808_v53  ;;  %3475 = vmatpush3.bf16.msra.mxu0 %v3805_v10 }
  0x74   : > { %3492 = vmatprep.subr.bf16.mxu0 %v3807_v58 }
  0x76   : > { %3367 = vmatpush3.bf16.msra.mxu1 %v3808_v53  ;;  %3477 = vmatmul.mubr.bf16.vlgmr.msra.gmra.mrb[0].mxu0 %v4139_v61 }
  0x77   : > { %3368 = vmatprep.subr.bf16.mxu1 %v3810_v49  ;;  %3493 = vmatpush3.bf16.msra.mxu0 %v3807_v58 }
  0x78   : > { %3480 = vmatprep.mubr.bf16.mxu0 %v4696_v42  ;;  %3494 = vmatprep.subr.bf16.mxu0 %v3809_v34 }
  0x79   : > { %3353 = vmatmul.mubr.bf16.gmra.mrb[4].mxu1 %v4355_v16 }
  0x7a   : > { %3369 = vmatpush3.bf16.msra.mxu1 %v3810_v49  ;;  %3356 = vmatprep.mubr.bf16.mxu1 %v4391_v32 }
  0x7b   : > { %3370 = vmatprep.subr.bf16.mxu1 %v3812_v33  ;;  %3495 = vmatpush3.bf16.msra.mxu0 %v3809_v34 }
  0x7c   : > { %3496 = vmatprep.subr.bf16.mxu0 %v3811_v6 }
  0x7e   : > { %3371 = vmatpush3.bf16.msra.mxu1 %v3812_v33  ;;  %3481 = vmatmul.mubr.bf16.gmra.mrb[4].mxu0 %v4697_v13 }
  0x7f   : > { %3372 = vmatprep.subr.bf16.mxu1 %v3814_v8  ;;  %3497 = vmatpush3.bf16.msra.mxu0 %v3811_v6 }
  0x80   : > { %3484 = vmatprep.mubr.bf16.mxu0 %v4215_v44  ;;  %3498 = vmatprep.subr.bf16.mxu0 %v3813_v11 }
  0x81   : > { %3357 = vmatmul.mubr.bf16.gmra.mrb[8].mxu1 %v4396_v46 }
  0x82   : > { %3373 = vmatpush3.bf16.msra.mxu1 %v3814_v8  ;;  %3360 = vmatprep.mubr.bf16.mxu1 %v4422_v5 }
  0x83   : > { %3374 = vmatprep.subr.bf16.mxu1 %v3816_v18  ;;  %3499 = vmatpush3.bf16.msra.mxu0 %v3813_v11 }
  0x84   : > { %3500 = vmatprep.subr.bf16.mxu0 %v3815_v39 }
  0x86   : > { %3375 = vmatpush3.bf16.msra.mxu1 %v3816_v18  ;;  %3485 = vmatmul.mubr.bf16.gmra.mrb[8].mxu0 %v4252_v17  ;;  %v4600_v18 = vld [vmem:[%s4675_s2] ss:$0 sm:$0xff] }
  0x87   : > { %3376 = vmatprep.subr.bf16.mxu1 %v3819_v24  ;;  %3501 = vmatpush3.bf16.msra.mxu0 %v3815_v39 }
  0x88   : > { %3488 = vmatprep.mubr.bf16.mxu0 %v4314_v23  ;;  %3502 = vmatprep.subr.bf16.mxu0 %v3817_v48 }
  0x89   : > { %3361 = vmatmul.mubr.bf16.gmra.mrb[12].mxu1 %v4428_v38 }
  0x8a   : > { %3377 = vmatpush3.bf16.msra.mxu1 %v3819_v24  ;;  %3380 = vmatprep.mubr.bf16.mxu1 %v4698_v54 }
  0x8b   : > { %3378 = vmatprep.subr.bf16.mxu1 %v3822_v22  ;;  %3503 = vmatpush3.bf16.msra.mxu0 %v3817_v48  ;;  %v4605_v48 = vld [vmem:[%s4676_s3] ss:$0 sm:$0xff] }
  0x8c   : > { %3504 = vmatprep.subr.bf16.mxu0 %v3821_v3 }
  0x8e   : > { %3379 = vmatpush3.bf16.msra.mxu1 %v3822_v22  ;;  %3489 = vmatmul.mubr.bf16.gmra.mrb[12].mxu0 %v3052_v26 }
  0x8f   : > { %3505 = vmatpush3.bf16.msra.mxu0 %v3821_v3  ;;  %3508 = vmatprep.mubr.bf16.mxu0 %v4119_v36  ;;  %v540_v36 = vshll.u32 %v4509_v37, 16 }
  0x90   : > { %3506 = vmatprep.subr.bf16.mxu0 %v3823_v21 }
  0x91   : > { %3381 = vmatmul.mubr.bf16.vlgmr.msra.gmra.mrb[0].mxu1 %v4111_v30  ;;  %v550_v30 = vshrl.u32 %v4512_v19, 16  ;;  %v542_v60 = vrot.slane %v540_v36, 5 }
  0x92   : > { %3384 = vmatprep.mubr.bf16.mxu1 %v4139_v61  ;;  %v546_v61 = vshll.u32 %v4512_v19, 16 }
  0x93   : > { %3507 = vmatpush3.bf16.msra.mxu0 %v3823_v21  ;;  %v552_v63 = vrot.slane %v550_v30, 4 }
  0x94   : > { %3524 = vmatprep.subr.bf16.mxu0 %v3824_v51  ;;  %v548_v45 = vrot.slane %v546_v61, 5 }
  0x96   : > { %3509 = vmatmul.mubr.bf16.vlgmr.msra.gmra.mrb[0].mxu0 %v4159_v15  ;;  %v539_v15 = vrot.slane %v537_v2, 4  ;;  %v553_v4 = vor.u32 %v552_v63, %v548_v45 }
  0x97   : > { %3525 = vmatpush3.bf16.msra.mxu0 %v3824_v51  ;;  %3512 = vmatprep.mubr.bf16.mxu0 %v4189_v52  ;;  %v3827_v52 = vld [vmem:[%s4674_s1 + $0x218] sm:$0xff]  }
  0x98   : > { %3526 = vmatprep.subr.bf16.mxu0 %v3825_v12  ;;  %v543_v0 = vor.u32 %v542_v60, %v539_v15  ;;  %v554_v9 = vrot.slane %v553_v4, 4 }
  0x99   : > { %3385 = vmatmul.mubr.bf16.gmra.mrb[4].mxu1 %v4696_v42 }
  0x9a   : > { %3388 = vmatprep.mubr.bf16.mxu1 %v4697_v13  ;;  %v544_v43 = vrot.slane %v543_v0, 4 }
  0x9b   : > { %3527 = vmatpush3.bf16.msra.mxu0 %v3825_v12 }
  0x9c   : > { %3528 = vmatprep.subr.bf16.mxu0 %v3826_v29 }
  0x9e   : > { %3513 = vmatmul.mubr.bf16.gmra.mrb[4].mxu0 %v4232_v62  ;;  %v3829_v62 = vld [vmem:[%s4674_s1 + $0x228] sm:$0xff]  }
  0x9f   : > { %3529 = vmatpush3.bf16.msra.mxu0 %v3826_v29  ;;  %3516 = vmatprep.mubr.bf16.mxu0 %v4266_v31  ;;  %v3830_v31 = vld [vmem:[%s4674_s1 + $0x230] sm:$0xff]  }
  0xa0   : > { %3530 = vmatprep.subr.bf16.mxu0 %v3827_v52 }
  0xa1   : > { %3389 = vmatmul.mubr.bf16.gmra.mrb[8].mxu1 %v4215_v44  ;;  %v549_v44 = vsel %vm4049_vm4, %v544_v43, %v548_v45 }
  0xa2   : > { %3392 = vmatprep.mubr.bf16.mxu1 %v4252_v17  ;;  %v559_v17 = vsel %vm4049_vm4, %v554_v9, %v558_v47 }
  0xa3   : > { %3531 = vmatpush3.bf16.msra.mxu0 %v3827_v52  ;;  %v3077_v14 = vcombine.low %v549_v44, %v559_v17 }
  0xa4   : > { %3532 = vmatprep.subr.bf16.mxu0 %v3828_v57 }
  0xa6   : > { %3517 = vmatmul.mubr.bf16.gmra.mrb[8].mxu0 %v4291_v55  ;;  %v3831_v55 = vld [vmem:[%s4674_s1 + $0x238] sm:$0xff]  }
  0xa7   : > { %3533 = vmatpush3.bf16.msra.mxu0 %v3828_v57  ;;  %3520 = vmatprep.mubr.bf16.mxu0 %v4324_v25  ;;  %v660_v25 = vrot.slane %v658_v50, 4 }
  0xa8   : > { %3534 = vmatprep.subr.bf16.mxu0 %v3829_v62 }
  0xa9   : > { %3393 = vmatmul.mubr.bf16.gmra.mrb[12].mxu1 %v4314_v23  ;;  %v2880_v23 = vrot.slane %v4509_v37, 9 }
  0xab   : > { %3535 = vmatpush3.bf16.msra.mxu0 %v3829_v62 }
  0xac   : > { %3536 = vmatprep.subr.bf16.mxu0 %v3830_v31 }
  0xae   : > { %3521 = vmatmul.mubr.bf16.gmra.mrb[12].mxu0 %v3077_v14 }
  0xaf   : > { %3537 = vmatpush3.bf16.msra.mxu0 %v3830_v31  ;;  %3540 = vmatprep.mubr.bf16.mxu0 %v4352_v20  ;;  %v659_v20 = vsel %vm4058_vm5, %v2880_v23, %v658_v50 }
  0xb0   : > { %3538 = vmatprep.subr.bf16.mxu0 %v3831_v55 }
  0xb3   : > { %3539 = vmatpush3.bf16.msra.mxu0 %v3831_v55 }
  0xb6   : > { %3541 = vmatmul.mubr.bf16.vlgmr.msra.gmra.mrb[0].mxu0 %v4355_v16  ;;  %v662_v16 = vsel %vm4058_vm5, %v660_v25, %v661_v41 }
  0xb7   : > { %3544 = vmatprep.mubr.bf16.mxu0 %v4391_v32  ;;  %v3102_v32 = vcombine.low %v659_v20, %v662_v16 }
  0xbe   : > { %3545 = vmatmul.mubr.bf16.gmra.mrb[4].mxu0 %v4396_v46  ;;  %v3872_v46 = vmov 0.0  }
  0xbf   : > { %3548 = vmatprep.mubr.bf16.mxu0 %v4422_v5  ;;  %3556 = vmatprep.subr.bf16.mxu1 %v3872_v46  ;;  %v2727_v5 = vld [vmem:[%s4678_s5] sm:$0xff] }
  0xc0   : > { %3572 = vmatprep.mubr.msk.bf16.mxu1 %vm3873_vm6, %v3872_v46 }
  0xc6   : > { %3549 = vmatmul.mubr.bf16.gmra.mrb[8].mxu0 %v4428_v38  ;;  %v3874_v38 = vmov 0  }
  0xc7   : > { %3552 = vmatprep.mubr.bf16.mxu0 %v4447_v27  ;;  %3749 = vset.pattern.permute.xlu0 %v3874_v38 }
  0xc8   : > { %2730 = vperm.xlu0 %3749, %v2727_v5  }
  0xce   : > { %3553 = vmatmul.mubr.bf16.gmra.mrb[12].mxu0 %v3102_v32 }
 0x164   : > { %v3382_v28 = vpop.f32.mrb[0].mxu1 }
 0x165   : > { %v1459_v56 = vpop.f32.mrb[1].mxu1 }
 0x166   : > { %v3383_v35 = vpop.f32.mrb[2].mxu1 }
 0x167   : > { %v1462_v59 = vpop.f32.mrb[3].mxu1 }
 0x16c   : > { %v3386_v27 = vpop.f32.mrb[4].mxu1 }
 0x16d   : > { %v1475_v7 = vpop.f32.mrb[5].mxu1 }
 0x16e   : > { %v3387_v10 = vpop.f32.mrb[6].mxu1 }
 0x16f   : > { %v1478_v53 = vpop.f32.mrb[7].mxu1 }
 0x174   : > { %v3390_v58 = vpop.f32.mrb[8].mxu1 }
 0x175   : > { %v1491_v49 = vpop.f32.mrb[9].mxu1 }
 0x176   : > { %v3391_v34 = vpop.f32.mrb[10].mxu1 }
 0x177   : > { %v1494_v33 = vpop.f32.mrb[11].mxu1 }
 0x17c   : > { %v4589_v42 = vpop.f32.mrb[12].mxu1 }
 0x17d   : > { %v4591_v6 = vpop.f32.mrb[13].mxu1 }
 0x17e   : > { %v4593_v8 = vpop.f32.mrb[14].mxu1 }
 0x17f   : > { %v4595_v11 = vpop.f32.mrb[15].mxu1 }
 0x189   : > { %v3542_v13 = vpop.f32.mrb[0].mxu0 }
 0x18a   : > { %v3576_v39 = vadd.f32 %v3542_v13, %v3382_v28  ;;  %v2529_v24 = vpop.f32.mrb[1].mxu0 }
 0x18b   : > { %v3577_v22 = vadd.f32 %v2529_v24, %v1459_v56  ;;  %v3543_v37 = vpop.f32.mrb[2].mxu0 }
 0x18c   : > { %v2665_v19 = vmul.f32 %v3576_v39, %v4600_v18  ;;  %v3578_v3 = vadd.f32 %v3543_v37, %v3383_v35  ;;  %v2532_v54 = vpop.f32.mrb[3].mxu0 }
 0x18d   : > { %v2663_v26 = vmul.f32 %v3577_v22, %v4600_v18  ;;  %v3579_v21 = vadd.f32 %v2532_v54, %v1462_v59 }
 0x18e   : > { %v2688_v51 = vadd.f32 %v4605_v48, %v2665_v19  ;;  %v2666_v12 = vmul.f32 %v3578_v3, %v4600_v18 }
 0x18f   : > { %v2686_v2 = vadd.f32 %v4605_v48, %v2663_v26  ;;  %v2664_v36 = vmul.f32 %v3579_v21, %v4600_v18 }
 0x190   : > { %v2689_v30 = vadd.f32 %v4605_v48, %v2666_v12  ;;  %v2704_v15 = vmax.f32 %v2688_v51, 0.0 }
 0x191   : > { %v2687_v61 = vadd.f32 %v4605_v48, %v2664_v36  ;;  %v3546_v29 = vpop.f32.mrb[4].mxu0  ;;  %v2702_v52 = vmax.f32 %v2686_v2, 0.0 }
 0x192   : > { %v2705_v60 = vmax.f32 %v2689_v30, 0.0  ;;  %v3580_v45 = vadd.f32 %v3546_v29, %v3386_v27  ;;  %v2545_v63 = vpop.f32.mrb[5].mxu0 }
 0x193   : > { %v2703_v40 = vmax.f32 %v2687_v61, 0.0  ;;  %v3581_v0 = vadd.f32 %v2545_v63, %v1475_v7  ;;  %v3547_v4 = vpop.f32.mrb[6].mxu0 }
 0x194   : > { %v2720_v1 = vpack.c.bf16 %v2705_v60, %v2704_v15  ;;  %v2669_v57 = vmul.f32 %v3580_v45, %v4600_v18  ;;  %v3582_v43 = vadd.f32 %v3547_v4, %v3387_v10  ;;  %v2548_v9 = vpop.f32.mrb[7].mxu0 }
 0x195   : > { %v2719_v47 = vpack.c.bf16 %v2703_v40, %v2702_v52  ;;  %v2667_v62 = vmul.f32 %v3581_v0, %v4600_v18  ;;  %v3583_v44 = vadd.f32 %v2548_v9, %v1478_v53 }
 0x196   : > { %v2692_v17 = vadd.f32 %v4605_v48, %v2669_v57  ;;  %v2670_v31 = vmul.f32 %v3582_v43, %v4600_v18 }
 0x197   : > { %v2690_v14 = vadd.f32 %v4605_v48, %v2667_v62  ;;  %v2668_v55 = vmul.f32 %v3583_v44, %v4600_v18  ;;  %3557 = vmatpush3.bf16.xpose.msra.mxu1 %v2719_v47 }
 0x198   : > { %v2693_v50 = vadd.f32 %v4605_v48, %v2670_v31  ;;  %3558 = vmatprep.subr.bf16.mxu1 %v3872_v46  ;;  %v2708_v41 = vmax.f32 %v2692_v17, 0.0 }
 0x199   : > { %v2691_v23 = vadd.f32 %v4605_v48, %v2668_v55  ;;  %v3550_v25 = vpop.f32.mrb[8].mxu0  ;;  %v2706_v5 = vmax.f32 %v2690_v14, 0.0 }
 0x19a   : > { %v2709_v20 = vmax.f32 %v2693_v50, 0.0  ;;  %v3584_v16 = vadd.f32 %v3550_v25, %v3390_v58  ;;  %v2561_v32 = vpop.f32.mrb[9].mxu0 }
 0x19b   : > { %v2707_v38 = vmax.f32 %v2691_v23, 0.0  ;;  %v3585_v28 = vadd.f32 %v2561_v32, %v1491_v49  ;;  %v3551_v56 = vpop.f32.mrb[10].mxu0 }
 0x19c   : > { %v2722_v35 = vpack.c.bf16 %v2709_v20, %v2708_v41  ;;  %v2673_v59 = vmul.f32 %v3584_v16, %v4600_v18  ;;  %v3586_v27 = vadd.f32 %v3551_v56, %v3391_v34  ;;  %v2564_v7 = vpop.f32.mrb[11].mxu0 }
 0x19d   : > { %v2721_v10 = vpack.c.bf16 %v2707_v38, %v2706_v5  ;;  %v2671_v53 = vmul.f32 %v3585_v28, %v4600_v18  ;;  %v3587_v13 = vadd.f32 %v2564_v7, %v1494_v33 }
 0x19e   : > { %v2696_v39 = vadd.f32 %v4605_v48, %v2673_v59  ;;  %v2674_v24 = vmul.f32 %v3586_v27, %v4600_v18 }
 0x19f   : > { %v2694_v58 = vadd.f32 %v4605_v48, %v2671_v53  ;;  %v2672_v22 = vmul.f32 %v3587_v13, %v4600_v18  ;;  %3559 = vmatpush3.bf16.xpose.msra.mxu1 %v2720_v1 }
 0x1a0   : > { %v2697_v49 = vadd.f32 %v4605_v48, %v2674_v24  ;;  %3560 = vmatprep.subr.bf16.mxu1 %v3872_v46  ;;  %v2712_v19 = vmax.f32 %v2696_v39, 0.0 }
 0x1a1   : > { %v2695_v34 = vadd.f32 %v4605_v48, %v2672_v22  ;;  %v3554_v37 = vpop.f32.mrb[12].mxu0  ;;  %v2710_v26 = vmax.f32 %v2694_v58, 0.0 }
 0x1a2   : > { %v2713_v3 = vmax.f32 %v2697_v49, 0.0  ;;  %v3588_v33 = vadd.f32 %v3554_v37, %v4589_v42  ;;  %v2577_v54 = vpop.f32.mrb[13].mxu0 }
 0x1a3   : > { %v2711_v21 = vmax.f32 %v2695_v34, 0.0  ;;  %v3589_v51 = vadd.f32 %v2577_v54, %v4591_v6  ;;  %v3555_v12 = vpop.f32.mrb[14].mxu0 }
 0x1a4   : > { %v2724_v2 = vpack.c.bf16 %v2713_v3, %v2712_v19  ;;  %v2677_v36 = vmul.f32 %v3588_v33, %v4600_v18  ;;  %v3590_v30 = vadd.f32 %v3555_v12, %v4593_v8  ;;  %v2580_v61 = vpop.f32.mrb[15].mxu0 }
 0x1a5   : > { %v2723_v29 = vpack.c.bf16 %v2711_v21, %v2710_v26  ;;  %v2675_v15 = vmul.f32 %v3589_v51, %v4600_v18  ;;  %v3591_v60 = vadd.f32 %v2580_v61, %v4595_v11 }
 0x1a6   : > { %v2700_v45 = vadd.f32 %v4605_v48, %v2677_v36  ;;  %v2678_v42 = vmul.f32 %v3590_v30, %v4600_v18 }
 0x1a7   : > { %v2698_v63 = vadd.f32 %v4605_v48, %v2675_v15  ;;  %v2676_v6 = vmul.f32 %v3591_v60, %v4600_v18  ;;  %3561 = vmatpush3.bf16.xpose.msra.mxu1 %v2721_v10  ;;  %v2718_v18 = vld [vmem:[%s4677_s4] sm:$0xf] }
 0x1a8   : > { %v2701_v52 = vadd.f32 %v4605_v48, %v2678_v42  ;;  %3562 = vmatprep.subr.bf16.mxu1 %v3872_v46  ;;  %v2716_v40 = vmax.f32 %v2700_v45, 0.0 }
 0x1a9   : > { %v2699_v8 = vadd.f32 %v4605_v48, %v2676_v6  ;;  %v2714_v4 = vmax.f32 %v2698_v63, 0.0  ;;  %v2731_v48 = vpop.permute.xlu0 %2730 }
 0x1aa   : > { %v2717_v0 = vmax.f32 %v2701_v52, 0.0 }
 0x1ab   : > { %v2715_v11 = vmax.f32 %v2699_v8, 0.0 }
 0x1ac   : > { %v2726_v1 = vpack.c.bf16 %v2717_v0, %v2716_v40 }
 0x1ad   : > { %v2725_v57 = vpack.c.bf16 %v2715_v11, %v2714_v4 }
 0x1af   : > { %3563 = vmatpush3.bf16.xpose.msra.mxu1 %v2722_v35 }
 0x1b0   : > { %3564 = vmatprep.subr.bf16.mxu1 %v3872_v46 }
 0x1b7   : > { %3565 = vmatpush3.bf16.xpose.msra.mxu1 %v2723_v29 }
 0x1b8   : > { %3566 = vmatprep.subr.bf16.mxu1 %v3872_v46 }
 0x1bf   : > { %3567 = vmatpush3.bf16.xpose.msra.mxu1 %v2724_v2 }
 0x1c0   : > { %3568 = vmatprep.subr.bf16.mxu1 %v3872_v46 }
 0x1c7   : > { %3569 = vmatpush3.bf16.xpose.msra.mxu1 %v2725_v57 }
 0x1c8   : > { %3570 = vmatprep.subr.bf16.mxu1 %v3872_v46 }
 0x1cf   : > { %3571 = vmatpush3.bf16.xpose.msra.mxu1 %v2726_v1 }
 0x1d6   : > { %3573 = vmatmul.mubr.bf16.vlgmr.msra.gmra.mrb[16].mxu1 %v2718_v18 }
 0x2a9   : > { %v2767_v43 = vpop.f32.mrb[16].mxu1 }
 0x2aa   : > { %v2768_v9 = vadd.f32 %v2767_v43, %v2731_v48  ;;  %v3574_v47 = vpop.f32.mrb[17].mxu1 }
 0x2ab   : > { %v2770_v62 = vpop.f32.mrb[18].mxu1 }
 0x2ac   : > { %2773 = vst [vmem:[%s285_s28] sm:$0x7] %v2768_v9  ;;  %v3575_v46 = vpop.f32.mrb[19].mxu1 }
 0x2ad PF: > { %s16_s25 = sadd.s32 1, %s3870_s25   ;;  %s4699_s21 = smov %s3862_s23 }
 0x2ae   : > { %p13_p7 = scmp.ge.s32.totalorder %s16_s25, 6   ;;  %s4700_s22 = smov %s3866_s24 }
 0x2af   : > { %s4701_s23 = smov %s4704_s26  ;;  %s4702_s24 = smov %s4708_s27 }
 0x2b0   :  { %15 = sbr.rel (!%p13_p7) target bundleno = 3 (0x3), region = 82 }

// kernel: fcn_head_forward.2
= control target key start
LH: loop header
LB: loop body
LE: loop exit
PB: predicated region body
PF: predicated region fallthrough
CT: control target
= control target key end

     0   :  { %s3946_s15 = smov 0   ;;  %s3948_s16 = smov 0   ;;  %s4711_s0 = inlined_call_operand.vmem [shape: bf16[2,2,10,32,128], index: 0, kind: input, shape index: {}]   ;;  %s4712_s1 = inlined_call_operand.vmem [shape: bf16[3,3,128,128], index: 1, kind: input, shape index: {}]   ;;  %s4713_s2 = inlined_call_operand.vmem [shape: f32[1,128], index: 2, kind: input, shape index: {}]   ;;  %s4714_s3 = inlined_call_operand.vmem [shape: f32[1,128], index: 3, kind: input, shape index: {}]   ;;  %s4715_s4 = inlined_call_operand.vmem [shape: bf16[2,16,16,128], index: 4, kind: output, shape index: {}]  }
   0x1   :  { %s3950_s17 = smov 0   ;;  %s3952_s18 = smov 0  }
   0x2   :  { %s3954_s19 = smov 0  }
   0x3 LB: > { %s23_s20 = sadd.s32 1, %s3911_s17  ;;  %s26_s21 = sadd.s32 1, %s3915_s18  ;;  %s3919_s19 = sphi %s3954_s19, %s14_s19   ;;  %s3915_s18 = sphi %s3952_s18, %s4738_s18   ;;  %s3911_s17 = sphi %s3950_s17, %s4737_s17   ;;  %s3907_s16 = sphi %s3948_s16, %s4736_s16   ;;  %s3903_s15 = sphi %s3946_s15, %s4735_s15  }
   0x4   : > { %p24_p0 = scmp.ge.s32.totalorder %s23_s20, 2  ;;  %p2852_p1 = scmp.ge.s32.totalorder %s3919_s19, 1 }
   0x5   : > { %p182_p2 = scmp.lt.s32.totalorder %s3919_s19, 5 }
   0x6   : > { %s4740_s20 = smov (%p24_p0, %s23_s20), 0  ;;  %s4742_s21 = smov (!%p24_p0, %s26_s21), %s3915_s18 }
   0x7   : > { %p183_p3 = pnand %p2852_p1, %p182_p2  ;;  %p28_p4 = scmp.ge.s32.totalorder %s4742_s21, 2 }
   0x9   : > { %s4744_s21 = smov (%p28_p4, %s4742_s21), 0  ;;  %186 = sbr.rel (%p183_p3) target bundleno = 416 (0x1a0), region = 36 }
  0x10   : > { %v3799_v0 = vld [vmem:[%s4712_s1] sm:$0xff]   ;;  %p217_p5 = scmp.lt.s32.totalorder %s3907_s16, 1  ;;  %p219_p6 = scmp.lt.s32.totalorder %s3903_s15, 1  ;;  %v3801_v2 = vld [vmem:[%s4712_s1 + $0x8] sm:$0xff]   ;;  %v3803_v4 = vld [vmem:[%s4712_s1 + $0x10] sm:$0xff]   ;;  %vm541_vm0 = vcmask 1042432  }
  0x11   : > { %v3800_v1 = vld [vmem:[%s4712_s1 + $0x100] sm:$0xff]   ;;  %3325 = vmatprep.subr.bf16.mxu1 %v3799_v0  ;;  %v3802_v3 = vld [vmem:[%s4712_s1 + $0x108] sm:$0xff]   ;;  %v3804_v5 = vld [vmem:[%s4712_s1 + $0x110] sm:$0xff]   ;;  %vm542_vm1 = vcmask 1046532   ;;  %vm268_vm2 = vsmask.f32 3328 }
  0x12   : > { %s4746_s16 = smov (!%p217_p5, %s3907_s16), 1  ;;  %3453 = vmatprep.subr.bf16.mxu0 %v3800_v1  ;;  %3326 = vmatpush3.bf16.msra.mxu1 %v3799_v0  ;;  %v3805_v6 = vld [vmem:[%s4712_s1 + $0x18] sm:$0xff]   ;;  %v3807_v8 = vld [vmem:[%s4712_s1 + $0x20] sm:$0xff]   ;;  %v3809_v10 = vld [vmem:[%s4712_s1 + $0x28] sm:$0xff]   ;;  %vm269_vm3 = vsmask.f32 7440 }
  0x13   : > { %s220_s30 = scalar_select %p219_p6, %s3903_s15, 1  ;;  %3454 = vmatpush3.bf16.msra.mxu0 %v3800_v1  ;;  %3327 = vmatprep.subr.bf16.mxu1 %v3801_v2  ;;  %v3806_v7 = vld [vmem:[%s4712_s1 + $0x118] sm:$0xff]   ;;  %v3808_v9 = vld [vmem:[%s4712_s1 + $0x120] sm:$0xff]   ;;  %v3810_v14 = vld [vmem:[%s4712_s1 + $0x128] sm:$0xff]  }
  0x14   : > { %s3758_s7 = smul.u32 80, %s4746_s16  ;;  %3455 = vmatprep.subr.bf16.mxu0 %v3802_v3  ;;  %v3811_v19 = vld [vmem:[%s4712_s1 + $0x30] sm:$0xff]   ;;  %v3813_v44 = vld [vmem:[%s4712_s1 + $0x38] sm:$0xff]   ;;  %vm4086_vm4 = vmor %vm268_vm2, %vm269_vm3  ;;  %s2854_s27 = sshll.u32 %s3903_s15, 3 }
  0x15   : > { %s3757_s10 = smul.u32 40, %s220_s30  ;;  %v3812_v27 = vld [vmem:[%s4712_s1 + $0x130] sm:$0xff]   ;;  %v3814_v49 = vld [vmem:[%s4712_s1 + $0x138] sm:$0xff]   ;;  %vm4095_vm5 = vmor %vm541_vm0, %vm542_vm1  ;;  %p229_p7 = scmp.lt.s32.totalorder %s2854_s27, 15 }
  0x16   : > { %3328 = vmatpush3.bf16.msra.mxu1 %v3801_v2  ;;  %v3817_v61 = vld [vmem:[%s4712_s1 + $0x40] sm:$0xff]   ;;  %s2856_s5 = sshll.u32 %s4746_s16, 5 }
  0x17   : > { %s223_s11 = sadd.s32 %s3758_s7, %s3757_s10  ;;  %3456 = vmatpush3.bf16.msra.mxu0 %v3802_v3  ;;  %3329 = vmatprep.subr.bf16.mxu1 %v3803_v4  ;;  %s4748_s27 = smov (!%p229_p7, %s2854_s27), 15 }
  0x18   : > { %3457 = vmatprep.subr.bf16.mxu0 %v3804_v5  ;;  %s2853_s23 = sshll.u32 %s223_s11, 2  ;;  %s2855_s29 = sshll.u32 %s4748_s27, 1 }
  0x19   : > { %s4016_s30 = scalar_lea.vmem %s4711_s0, %s2853_s23  ;;  %s233_s8 = sadd.s32 %s2856_s5, %s2855_s29 }
  0x1a   : > { %3330 = vmatpush3.bf16.msra.mxu1 %v3803_v4  ;;  %v4022_v11 = vld [vmem:[%s4016_s30] sm:$0xf]  ;;  %v4025_v12 = vld [vmem:[%s4016_s30 + $0x4] sm:$0xf]  ;;  %v4028_v13 = vld [vmem:[%s4016_s30 + $0x10] sm:$0xf] }
  0x1b   : > { %3458 = vmatpush3.bf16.msra.mxu0 %v3804_v5  ;;  %3331 = vmatprep.subr.bf16.mxu1 %v3805_v6  ;;  %v272_v15 = vshrl.u32 %v4022_v11, 16  ;;  %v275_v16 = vshll.u32 %v4022_v11, 16  ;;  %v281_v17 = vshll.u32 %v4025_v12, 16  ;;  %v4037_v18 = vld [vmem:[%s4016_s30 + $0x14] sm:$0xf]  ;;  %v285_v20 = vshrl.u32 %v4025_v12, 16 }
  0x1c   : > { %3459 = vmatprep.subr.bf16.mxu0 %v3806_v7  ;;  %v2858_v21 = vrot.slane %v4022_v11, 9  ;;  %v4716_v22 = vrot.slane %v4025_v12, 5  ;;  %v2868_v23 = vcombine.low %v4022_v11, %v4025_v12  ;;  %v4048_v24 = vld [vmem:[%s4016_s30 + $0x18] sm:$0xf]  ;;  %v296_v28 = vshrl.u32 %v4028_v13, 16  ;;  %s2857_s16 = sshll.u32 %s233_s8, 2 }
  0x1d   : > { %v4050_v25 = vrot.slane %v272_v15, 4  ;;  %v4052_v26 = vrot.slane %v275_v16, 5  ;;  %v299_v29 = vshll.u32 %v4028_v13, 16  ;;  %v305_v30 = vshll.u32 %v4037_v18, 16  ;;  %v4063_v33 = vld [vmem:[%s4016_s30 + $0x20] sm:$0xf]  ;;  %s4659_s11 = scalar_lea.vmem %s4715_s4, %s2857_s16 }
  0x1e   : > { %3332 = vmatpush3.bf16.msra.mxu1 %v3805_v6  ;;  %3341 = vmatprep.mubr.bf16.mxu1 %v2868_v23  ;;  %v309_v31 = vshrl.u32 %v4037_v18, 16  ;;  %v315_v32 = vshll.u32 %v4048_v24, 16  ;;  %v298_v34 = vrot.slane %v296_v28, 4  ;;  %v4066_v37 = vld [vmem:[%s4016_s30 + $0x24] sm:$0xf]  ;;  %v320_v38 = vshrl.u32 %v4063_v33, 16 }
  0x1f   : > { %3460 = vmatpush3.bf16.msra.mxu0 %v3806_v7  ;;  %3333 = vmatprep.subr.bf16.mxu1 %v3807_v8  ;;  %v301_v35 = vrot.slane %v299_v29, 5  ;;  %v307_v36 = vrot.slane %v305_v30, 5  ;;  %v4069_v39 = vrot.slane %v281_v17, 5  ;;  %v4072_v41 = vld [vmem:[%s4016_s30 + $0x28] sm:$0xf]  ;;  %v323_v42 = vshll.u32 %v4063_v33, 16 }
  0x20   : > { %3461 = vmatprep.subr.bf16.mxu0 %v3808_v9  ;;  %v311_v40 = vrot.slane %v309_v31, 4  ;;  %v329_v43 = vshll.u32 %v4066_v37, 16  ;;  %v322_v46 = vrot.slane %v320_v38, 4  ;;  %v333_v47 = vshrl.u32 %v4066_v37, 16  ;;  %v4115_v4 = vld [vmem:[%s4016_s30 + $0x30] sm:$0xf] }
  0x21   : > { %v302_v45 = vor.u32 %v301_v35, %v298_v34  ;;  %v339_v48 = vshll.u32 %v4072_v41, 16  ;;  %v317_v52 = vrot.slane %v315_v32, 5  ;;  %v325_v53 = vrot.slane %v323_v42, 5  ;;  %v4118_v5 = vld [vmem:[%s4016_s30 + $0x34] sm:$0xf]  ;;  %v3819_v16 = vld [vmem:[%s4712_s1 + $0x48] sm:$0xff]  }
  0x22   : > { %3334 = vmatpush3.bf16.msra.mxu1 %v3807_v8  ;;  %v312_v51 = vor.u32 %v311_v40, %v307_v36  ;;  %v331_v54 = vrot.slane %v329_v43, 5  ;;  %v4090_v55 = vrot.slane %v285_v20, 4  ;;  %v335_v57 = vrot.slane %v333_v47, 4  ;;  %v3818_v8 = vld [vmem:[%s4712_s1 + $0x140] sm:$0xff]   ;;  %v4159_v42 = vld [vmem:[%s4016_s30 + $0x48] sm:$0xf] }
  0x23   : > { %3462 = vmatpush3.bf16.msra.mxu0 %v3808_v9  ;;  %3335 = vmatprep.subr.bf16.mxu1 %v3809_v10  ;;  %v303_v56 = vrot.slane %v302_v45, 4  ;;  %v326_v62 = vor.u32 %v325_v53, %v322_v46  ;;  %v341_v63 = vrot.slane %v339_v48, 5  ;;  %v4106_v0 = vsel %vm4095_vm5, %v2858_v21, %v4716_v22  ;;  %v4126_v9 = vld [vmem:[%s4016_s30 + $0x38] sm:$0xf]  ;;  %v3820_v21 = vld [vmem:[%s4712_s1 + $0x148] sm:$0xff]   ;;  %v3836_v22 = vld [vmem:[%s4712_s1 + $0x170] sm:$0xff]  }
  0x24   : > { %3463 = vmatprep.subr.bf16.mxu0 %v3810_v14  ;;  %v313_v60 = vrot.slane %v312_v51, 4  ;;  %v4112_v2 = vcombine.low %v4028_v13, %v4037_v18  ;;  %v336_v3 = vor.u32 %v335_v57, %v331_v54  ;;  %v347_v11 = vshll.u32 %v4115_v4, 16  ;;  %v4151_v34 = vld [vmem:[%s4016_s30 + $0x40] sm:$0xf]  ;;  %v4154_v35 = vld [vmem:[%s4016_s30 + $0x44] sm:$0xf] }
  0x25   : > { %v308_v1 = vsel %vm4086_vm4, %v303_v56, %v307_v36  ;;  %v327_v7 = vrot.slane %v326_v62, 4  ;;  %v353_v17 = vshll.u32 %v4118_v5, 16  ;;  %v363_v28 = vshll.u32 %v4126_v9, 16 }
  0x26   : > { %3336 = vmatpush3.bf16.msra.mxu1 %v3809_v10  ;;  %4726 = vst [vmem:[#allocation3_spill] sm:$0xff] %v4112_v2  ;;  %v318_v6 = vsel %vm4086_vm4, %v313_v60, %v317_v52  ;;  %v344_v10 = vshrl.u32 %v4115_v4, 16  ;;  %v337_v15 = vrot.slane %v336_v3, 4  ;;  %v4148_v30 = vcombine.low %v4063_v33, %v4066_v37 }
  0x27   : > { %3464 = vmatpush3.bf16.msra.mxu0 %v3810_v14  ;;  %3337 = vmatprep.subr.bf16.mxu1 %v3811_v19  ;;  %v4130_v14 = vcombine.low %v308_v1, %v318_v6  ;;  %v332_v20 = vsel %vm4086_vm4, %v327_v7, %v331_v54  ;;  %v355_v31 = vrot.slane %v353_v17, 5  ;;  %v365_v40 = vrot.slane %v363_v28, 5  ;;  %v3825_v17 = vld [vmem:[%s4712_s1 + $0x58] sm:$0xff]  }
  0x28   : > { %3465 = vmatprep.subr.bf16.mxu0 %v3812_v27  ;;  %v346_v23 = vrot.slane %v344_v10, 4  ;;  %v342_v29 = vsel %vm4086_vm4, %v337_v15, %v341_v63  ;;  %v368_v43 = vshrl.u32 %v4151_v34, 16  ;;  %v371_v45 = vshll.u32 %v4151_v34, 16  ;;  %v3824_v63 = vld [vmem:[%s4712_s1 + $0x150] sm:$0xff]  }
  0x29   : > { %3469 = vmatprep.mubr.bf16.mxu0 %v4130_v14  ;;  %v4156_v36 = vcombine.low %v332_v20, %v342_v29  ;;  %v377_v46 = vshll.u32 %v4154_v35, 16  ;;  %v381_v47 = vshrl.u32 %v4154_v35, 16  ;;  %v387_v52 = vshll.u32 %v4159_v42, 16  ;;  %v4191_v10 = vld [vmem:[%s4016_s30 + $0x54] sm:$0xf] }
  0x2a   : > { %3338 = vmatpush3.bf16.msra.mxu1 %v3811_v19  ;;  %v357_v19 = vshrl.u32 %v4118_v5, 16  ;;  %v370_v51 = vrot.slane %v368_v43, 4  ;;  %v373_v54 = vrot.slane %v371_v45, 5  ;;  %v4185_v7 = vcombine.low %v4151_v34, %v4154_v35 }
  0x2b   : > { %3466 = vmatpush3.bf16.msra.mxu0 %v3812_v27  ;;  %3339 = vmatprep.subr.bf16.mxu1 %v3813_v44  ;;  %v349_v27 = vrot.slane %v347_v11, 5  ;;  %v379_v56 = vrot.slane %v377_v46, 5  ;;  %v383_v57 = vrot.slane %v381_v47, 4  ;;  %v389_v62 = vrot.slane %v387_v52, 5  ;;  %v4194_v11 = vld [vmem:[%s4016_s30 + $0x58] sm:$0xf] }
  0x2c   : > { %3467 = vmatprep.subr.bf16.mxu0 %v3814_v49  ;;  %v359_v32 = vrot.slane %v357_v19, 4  ;;  %v374_v3 = vor.u32 %v373_v54, %v370_v51  ;;  %4727 = vst [vmem:[#allocation4_spill] sm:$0xff] %v4185_v7  ;;  %v411_v29 = vshll.u32 %v4194_v11, 16  ;;  %v4224_v51 = vld [vmem:[%s4016_s30 + $0x68] sm:$0xf] }
  0x2d   : > { %v350_v38 = vor.u32 %v349_v27, %v346_v23  ;;  %v384_v6 = vor.u32 %v383_v57, %v379_v56  ;;  %v401_v23 = vshll.u32 %v4191_v10, 16 }
  0x2e   : > { %3340 = vmatpush3.bf16.msra.mxu1 %v3813_v44  ;;  %v360_v44 = vor.u32 %v359_v32, %v355_v31  ;;  %v375_v27 = vrot.slane %v374_v3, 4  ;;  %v413_v47 = vrot.slane %v411_v29, 5  ;;  %v3831_v29 = vld [vmem:[%s4712_s1 + $0x68] sm:$0xff]  }
  0x2f   : > { %3468 = vmatpush3.bf16.msra.mxu0 %v3814_v49  ;;  %3357 = vmatprep.subr.bf16.mxu1 %v3817_v61  ;;  %v351_v48 = vrot.slane %v350_v38, 4  ;;  %v3823_v49 = vld [vmem:[%s4712_s1 + $0x50] sm:$0xff]   ;;  %v385_v28 = vrot.slane %v384_v6, 4 }
  0x30   : > { %3485 = vmatprep.subr.bf16.mxu0 %v3818_v8  ;;  %v361_v53 = vrot.slane %v360_v44, 4  ;;  %v380_v44 = vsel %vm4086_vm4, %v375_v27, %v379_v56 }
  0x31   : > { %3342 = vmatmul.mubr.bf16.vlgmr.msra.gmra.mrb[0].mxu1 %v4112_v2  ;;  %v356_v60 = vsel %vm4086_vm4, %v351_v48, %v355_v31  ;;  %v3826_v31 = vld [vmem:[%s4712_s1 + $0x158] sm:$0xff]   ;;  %v390_v45 = vsel %vm4086_vm4, %v385_v28, %v389_v62  ;;  %v4221_v48 = vld [vmem:[%s4016_s30 + $0x64] sm:$0xf] }
  0x32   : > { %3470 = vmatmul.mubr.bf16.vlgmr.msra.gmra.mrb[0].mxu0 %v4156_v36  ;;  %3358 = vmatpush3.bf16.msra.mxu1 %v3817_v61  ;;  %v4176_v61 = vcombine.low %v4115_v4, %v4118_v5  ;;  %v366_v1 = vsel %vm4086_vm4, %v361_v53, %v365_v40  ;;  %v403_v40 = vrot.slane %v401_v23, 5  ;;  %v4226_v52 = vcombine.low %v380_v44, %v390_v45  ;;  %v4255_v45 = vld [vmem:[%s4016_s30 + $0x70] sm:$0xf] }
  0x33   : > { %3486 = vmatpush3.bf16.msra.mxu0 %v3818_v8  ;;  %3359 = vmatprep.subr.bf16.mxu1 %v3819_v16  ;;  %v4188_v8 = vld [vmem:[%s4016_s30 + $0x50] sm:$0xf]  ;;  %v4196_v15 = vcombine.low %v356_v60, %v366_v1  ;;  %v3829_v60 = vld [vmem:[%s4712_s1 + $0x60] sm:$0xff]   ;;  %v425_v62 = vshll.u32 %v4221_v48, 16  ;;  %v429_v1 = vshrl.u32 %v4221_v48, 16 }
  0x34   : > { %3487 = vmatprep.subr.bf16.mxu0 %v3820_v21  ;;  %3345 = vmatprep.mubr.bf16.mxu1 %v4148_v30  ;;  %v392_v19 = vshrl.u32 %v4188_v8, 16  ;;  %v395_v20 = vshll.u32 %v4188_v8, 16 }
  0x35   : > { %3473 = vmatprep.mubr.bf16.mxu0 %v4196_v15  ;;  %v427_v27 = vrot.slane %v425_v62, 5  ;;  %v431_v28 = vrot.slane %v429_v1, 4 }
  0x36   : > { %3360 = vmatpush3.bf16.msra.mxu1 %v3819_v16  ;;  %v405_v16 = vshrl.u32 %v4191_v10, 16  ;;  %v394_v32 = vrot.slane %v392_v19, 4  ;;  %v397_v38 = vrot.slane %v395_v20, 5  ;;  %v3830_v20 = vld [vmem:[%s4712_s1 + $0x160] sm:$0xff]  }
  0x37   : > { %3488 = vmatpush3.bf16.msra.mxu0 %v3820_v21  ;;  %3361 = vmatprep.subr.bf16.mxu1 %v3823_v49  ;;  %v4211_v21 = vld [vmem:[%s4016_s30 + $0x60] sm:$0xf] }
  0x38   : > { %3489 = vmatprep.subr.bf16.mxu0 %v3824_v63  ;;  %v407_v46 = vrot.slane %v405_v16, 4  ;;  %v398_v53 = vor.u32 %v397_v38, %v394_v32  ;;  %v416_v54 = vshrl.u32 %v4211_v21, 16  ;;  %v419_v57 = vshll.u32 %v4211_v21, 16 }
  0x39   : > { %3346 = vmatmul.mubr.bf16.gmra.mrb[4].mxu1 %v4176_v61  ;;  %v4252_v44 = vcombine.low %v4211_v21, %v4221_v48 }
  0x3a   : > { %3362 = vmatpush3.bf16.msra.mxu1 %v3823_v49  ;;  %3349 = vmatprep.mubr.bf16.mxu1 %v4185_v7  ;;  %v408_v56 = vor.u32 %v407_v46, %v403_v40  ;;  %v435_v49 = vshll.u32 %v4224_v51, 16  ;;  %v399_v3 = vrot.slane %v398_v53, 4  ;;  %v418_v6 = vrot.slane %v416_v54, 4  ;;  %v4258_v46 = vld [vmem:[%s4016_s30 + $0x74] sm:$0xf] }
  0x3b   : > { %3490 = vmatpush3.bf16.msra.mxu0 %v3824_v63  ;;  %3363 = vmatprep.subr.bf16.mxu1 %v3825_v17  ;;  %v4240_v63 = vcombine.low %v4188_v8, %v4191_v10  ;;  %v421_v19 = vrot.slane %v419_v57, 5  ;;  %v288_v53 = vor.u32 %v4090_v55, %v4069_v39  ;;  %v440_v57 = vshrl.u32 %v4255_v45, 16  ;;  %v3832_v55 = vld [vmem:[%s4712_s1 + $0x168] sm:$0xff]  }
  0x3c   : > { %3474 = vmatmul.mubr.bf16.gmra.mrb[4].mxu0 %v4226_v52  ;;  %3491 = vmatprep.subr.bf16.mxu0 %v3826_v31  ;;  %v409_v23 = vrot.slane %v408_v56, 4  ;;  %v437_v16 = vrot.slane %v435_v49, 5  ;;  %v404_v32 = vsel %vm4086_vm4, %v399_v3, %v403_v40  ;;  %v4265_v40 = vld [vmem:[%s4016_s30 + $0x78] sm:$0xf]  ;;  %v443_v56 = vshll.u32 %v4255_v45, 16 }
  0x3d   : > { %4728 = vst [vmem:[#allocation5_spill] sm:$0xff] %v4240_v63  ;;  %v422_v38 = vor.u32 %v421_v19, %v418_v6  ;;  %v442_v3 = vrot.slane %v440_v57, 4  ;;  %v459_v19 = vshll.u32 %v4265_v40, 16  ;;  %v4292_v57 = vld [vmem:[%s4016_s30 + $0x84] sm:$0xf] }
  0x3e   : > { %3364 = vmatpush3.bf16.msra.mxu1 %v3825_v17  ;;  %v414_v54 = vsel %vm4086_vm4, %v409_v23, %v413_v47  ;;  %v432_v17 = vor.u32 %v431_v28, %v427_v27  ;;  %v453_v47 = vshrl.u32 %v4258_v46, 16  ;;  %v445_v6 = vrot.slane %v443_v56, 5  ;;  %v3835_v23 = vld [vmem:[%s4712_s1 + $0x70] sm:$0xff]   ;;  %v4282_v28 = vld [vmem:[%s4016_s30 + $0x80] sm:$0xf] }
  0x3f   : > { %3492 = vmatpush3.bf16.msra.mxu0 %v3826_v31  ;;  %3365 = vmatprep.subr.bf16.mxu1 %v3829_v60  ;;  %v4269_v62 = vcombine.low %v404_v32, %v414_v54  ;;  %v423_v1 = vrot.slane %v422_v38, 4  ;;  %v449_v31 = vshll.u32 %v4258_v46, 16  ;;  %v4295_v56 = vld [vmem:[%s4016_s30 + $0x88] sm:$0xf]  ;;  %v467_v43 = vshll.u32 %v4282_v28, 16 }
  0x40   : > { %3493 = vmatprep.subr.bf16.mxu0 %v3830_v20  ;;  %v433_v49 = vrot.slane %v432_v17, 4  ;;  %v455_v54 = vrot.slane %v453_v47, 4  ;;  %v4289_v17 = vcombine.low %v4255_v45, %v4258_v46  ;;  %v473_v2 = vshll.u32 %v4292_v57, 16 }
  0x41   : > { %3350 = vmatmul.mubr.bf16.gmra.mrb[8].mxu1 %v4240_v63  ;;  %3477 = vmatprep.mubr.bf16.mxu0 %v4269_v62  ;;  %v428_v32 = vsel %vm4086_vm4, %v423_v1, %v427_v27  ;;  %v451_v38 = vrot.slane %v449_v31, 5  ;;  %v461_v27 = vrot.slane %v459_v19, 5  ;;  %v464_v1 = vshrl.u32 %v4282_v28, 16 }
  0x42   : > { %3366 = vmatpush3.bf16.msra.mxu1 %v3829_v60  ;;  %v438_v58 = vsel %vm4086_vm4, %v433_v49, %v437_v16  ;;  %v446_v60 = vor.u32 %v445_v6, %v442_v3  ;;  %3353 = vmatprep.mubr.bf16.mxu1 %v4252_v44  ;;  %v483_v16 = vshll.u32 %v4295_v56, 16  ;;  %v469_v49 = vrot.slane %v467_v43, 5  ;;  %v3838_v43 = vld [vmem:[%s4712_s1 + $0x178] sm:$0xff]  }
  0x43   : > { %3494 = vmatpush3.bf16.msra.mxu0 %v3830_v20  ;;  %3367 = vmatprep.subr.bf16.mxu1 %v3831_v29  ;;  %v4303_v31 = vcombine.low %v428_v32, %v438_v58  ;;  %v456_v47 = vor.u32 %v455_v54, %v451_v38  ;;  %v466_v7 = vrot.slane %v464_v1, 4  ;;  %v477_v20 = vshrl.u32 %v4292_v57, 16  ;;  %v3837_v1 = vld [vmem:[%s4712_s1 + $0x78] sm:$0xff]  }
  0x44   : > { %3495 = vmatprep.subr.bf16.mxu0 %v3832_v55  ;;  %v447_v63 = vrot.slane %v446_v60, 4  ;;  %v475_v3 = vrot.slane %v473_v2, 5  ;;  %v4729_v6 = vor.u32 %v4052_v26, %v4050_v25  ;;  %v485_v60 = vrot.slane %v483_v16, 5  ;;  %v4323_v2 = vld [vmem:[%s4016_s30 + $0x8] sm:$0xf] }
  0x45   : > { %3478 = vmatmul.mubr.bf16.gmra.mrb[8].mxu0 %v4303_v31  ;;  %v457_v58 = vrot.slane %v456_v47, 4  ;;  %v479_v54 = vrot.slane %v477_v20, 4  ;;  %v470_v26 = vor.u32 %v469_v49, %v466_v7  ;;  %v2859_v47 = vrot.slane %v4028_v13, 9 }
  0x46   : > { %3368 = vmatpush3.bf16.msra.mxu1 %v3831_v29  ;;  %v279_v19 = vrot.slane %v4729_v6, 4  ;;  %v452_v32 = vsel %vm4086_vm4, %v447_v63, %v451_v38  ;;  %v289_v29 = vrot.slane %v288_v53, 4  ;;  %v291_v63 = vshll.u32 %v4323_v2, 16 }
  0x47   : > { %3496 = vmatpush3.bf16.msra.mxu0 %v3832_v55  ;;  %3369 = vmatprep.subr.bf16.mxu1 %v3835_v23  ;;  %v462_v25 = vsel %vm4086_vm4, %v457_v58, %v461_v27  ;;  %v480_v38 = vor.u32 %v479_v54, %v475_v3  ;;  %v553_v20 = vrot.slane %v4037_v18, 5  ;;  %v471_v16 = vrot.slane %v470_v26, 4 }
  0x48   : > { %3497 = vmatprep.subr.bf16.mxu0 %v3836_v22  ;;  %v4328_v55 = vcombine.low %v452_v32, %v462_v25  ;;  %v284_v27 = vsel %vm4086_vm4, %v279_v19, %v4069_v39  ;;  %v293_v7 = vrot.slane %v291_v63, 5  ;;  %v556_v53 = vrot.slane %v4048_v24, 5  ;;  %v3839_v24 = vld [vmem:[%s4712_s1 + $0x80] sm:$0xff]  }
  0x49   : > { %3354 = vmatmul.mubr.bf16.gmra.mrb[12].mxu1 %v4289_v17  ;;  %v481_v58 = vrot.slane %v480_v38, 4  ;;  %v554_v49 = vsel %vm4095_vm5, %v2859_v47, %v553_v20  ;;  %v555_v6 = vrot.slane %v553_v20, 4  ;;  %v560_v13 = vrot.slane %v4066_v37, 5  ;;  %v3840_v32 = vld [vmem:[%s4712_s1 + $0x180] sm:$0xff]  }
  0x4a   : > { %3370 = vmatpush3.bf16.msra.mxu1 %v3835_v23  ;;  %3481 = vmatprep.mubr.bf16.mxu0 %v4328_v55  ;;  %v476_v18 = vsel %vm4086_vm4, %v471_v16, %v475_v3  ;;  %v294_v39 = vsel %vm4086_vm4, %v289_v29, %v293_v7  ;;  %v4351_v23 = vcombine.low %v4282_v28, %v4292_v57  ;;  %v2861_v54 = vrot.slane %v4115_v4, 9 }
  0x4b   : > { %3498 = vmatpush3.bf16.msra.mxu0 %v3836_v22  ;;  %3371 = vmatprep.subr.bf16.mxu1 %v3837_v1  ;;  %v2860_v22 = vrot.slane %v4063_v33, 9  ;;  %v486_v37 = vsel %vm4086_vm4, %v481_v58, %v485_v60  ;;  %v2900_v19 = vcombine.low %v284_v27, %v294_v39  ;;  %v557_v3 = vsel %vm4095_vm5, %v555_v6, %v556_v53  ;;  %v3841_v60 = vld [vmem:[%s4712_s1 + $0x88] sm:$0xff]   ;;  %v3847_v39 = vld [vmem:[%s4712_s1 + $0xa0] sm:$0xff]  }
  0x4c   : > { %3499 = vmatprep.subr.bf16.mxu0 %v3838_v43  ;;  %v4361_v25 = vcombine.low %v476_v18, %v486_v37  ;;  %v4363_v33 = vcombine.low %v554_v49, %v557_v3  ;;  %v562_v26 = vrot.slane %v560_v13, 4  ;;  %v567_v29 = vrot.slane %v4118_v5, 5 }
  0x4d   : > { %3373 = vmatprep.mubr.bf16.mxu1 %v2900_v19  ;;  %v570_v63 = vrot.slane %v4126_v9, 5  ;;  %v4730_v5 = vrot.slane %v4072_v41, 5  ;;  %v574_v38 = vrot.slane %v4154_v35, 5  ;;  %v3843_v41 = vld [vmem:[%s4712_s1 + $0x90] sm:$0xff]   ;;  %v2862_v35 = vrot.slane %v4151_v34, 9  ;;  %v3845_v34 = vld [vmem:[%s4712_s1 + $0x98] sm:$0xff]  }
  0x4e   : > { %3372 = vmatpush3.bf16.msra.mxu1 %v3837_v1  ;;  %3482 = vmatmul.mubr.bf16.gmra.mrb[12].mxu0 %v4361_v25  ;;  %v569_v4 = vrot.slane %v567_v29, 4  ;;  %v561_v1 = vsel %vm4095_vm5, %v2860_v22, %v560_v13  ;;  %v568_v9 = vsel %vm4095_vm5, %v2861_v54, %v567_v29  ;;  %v577_v7 = vrot.slane %v4159_v42, 5  ;;  %v3846_v54 = vld [vmem:[%s4712_s1 + $0x198] sm:$0xff]  }
  0x4f   : > { %3500 = vmatpush3.bf16.msra.mxu0 %v3838_v43  ;;  %3389 = vmatprep.subr.bf16.mxu1 %v3839_v24  ;;  %v564_v43 = vsel %vm4095_vm5, %v562_v26, %v4730_v5  ;;  %v576_v27 = vrot.slane %v574_v38, 4  ;;  %v2863_v53 = vrot.slane %v4188_v8, 9  ;;  %v584_v49 = vrot.slane %v4194_v11, 5  ;;  %v3844_v8 = vld [vmem:[%s4712_s1 + $0x190] sm:$0xff]  }
  0x50   : > { %3501 = vmatprep.mubr.bf16.mxu0 %v4363_v33  ;;  %3517 = vmatprep.subr.bf16.mxu0 %v3840_v32  ;;  %v571_v47 = vsel %vm4095_vm5, %v569_v4, %v570_v63  ;;  %v4389_v20 = vcombine.low %v561_v1, %v564_v43  ;;  %v575_v42 = vsel %vm4095_vm5, %v2862_v35, %v574_v38  ;;  %v588_v11 = vrot.slane %v4221_v48, 5  ;;  %v3852_v35 = vld [vmem:[%s4712_s1 + $0x1b0] sm:$0xff]  }
  0x51   : > { %3374 = vmatmul.mubr.bf16.vlgmr.msra.gmra.mrb[0].mxu1 %v4130_v14  ;;  %v581_v14 = vrot.slane %v4191_v10, 5  ;;  %v4392_v16 = vcombine.low %v568_v9, %v571_v47  ;;  %v3842_v10 = vld [vmem:[%s4712_s1 + $0x188] sm:$0xff]   ;;  %v578_v6 = vsel %vm4095_vm5, %v576_v27, %v577_v7  ;;  %v2864_v48 = vrot.slane %v4211_v21, 9  ;;  %v3855_v7 = vld [vmem:[%s4712_s1 + $0xc0] sm:$0xff]  }
  0x52   : > { %3390 = vmatpush3.bf16.msra.mxu1 %v3839_v24  ;;  %3377 = vmatprep.mubr.bf16.mxu1 %v4156_v36  ;;  %v595_v24 = vrot.slane %v4258_v46, 5  ;;  %v591_v22 = vrot.slane %v4224_v51, 5  ;;  %v4731_v37 = vrot.slane %v4025_v12, 5  ;;  %v549_v3 = vrot.slane %v4323_v2, 5 }
  0x53   : > { %3391 = vmatprep.subr.bf16.mxu1 %v3841_v60  ;;  %v583_v58 = vrot.slane %v581_v14, 4  ;;  %v582_v13 = vsel %vm4095_vm5, %v2863_v53, %v581_v14  ;;  %v590_v26 = vrot.slane %v588_v11, 4  ;;  %v2865_v21 = vrot.slane %v4255_v45, 9  ;;  %v3850_v14 = vld [vmem:[%s4712_s1 + $0x1a8] sm:$0xff]  }
  0x54   : > { %v548_v19 = vrot.slane %v4731_v37, 4  ;;  %v597_v12 = vrot.slane %v595_v24, 4  ;;  %v598_v2 = vrot.slane %v4265_v40, 5  ;;  %v589_v45 = vsel %vm4095_vm5, %v2864_v48, %v588_v11  ;;  %v3857_v53 = vld [vmem:[%s4712_s1 + $0xc8] sm:$0xff]   ;;  %v3862_v11 = vld [vmem:[%s4712_s1 + $0x1d8] sm:$0xff]  }
  0x55   : > { %v585_v18 = vsel %vm4095_vm5, %v583_v58, %v584_v49  ;;  %v592_v63 = vsel %vm4095_vm5, %v590_v26, %v591_v22  ;;  %v602_v40 = vrot.slane %v4292_v57, 5  ;;  %v596_v4 = vsel %vm4095_vm5, %v2865_v21, %v595_v24  ;;  %v3851_v57 = vld [vmem:[%s4712_s1 + $0xb0] sm:$0xff]   ;;  %v3856_v58 = vld [vmem:[%s4712_s1 + $0x1c0] sm:$0xff]   ;;  %v3866_v48 = vld [vmem:[%s4712_s1 + $0x1e8] sm:$0xff]  }
  0x56   : > { %3392 = vmatpush3.bf16.msra.mxu1 %v3841_v60  ;;  %3502 = vmatmul.mubr.bf16.vlgmr.msra.gmra.mrb[0].mxu0 %v4389_v20  ;;  %v4433_v46 = vcombine.low %v582_v13, %v585_v18  ;;  %v550_v51 = vsel %vm4095_vm5, %v548_v19, %v549_v3  ;;  %v3849_v60 = vld [vmem:[%s4712_s1 + $0xa8] sm:$0xff]   ;;  %v599_v1 = vsel %vm4095_vm5, %v597_v12, %v598_v2  ;;  %v2866_v43 = vrot.slane %v4282_v28, 9  ;;  %v3859_v49 = vld [vmem:[%s4712_s1 + $0xd0] sm:$0xff]   ;;  %v3871_v22 = vld [vmem:[%s4712_s1 + $0xf8] sm:$0xff]  }
  0x57   : > { %3393 = vmatprep.subr.bf16.mxu1 %v3843_v41  ;;  %3518 = vmatpush3.bf16.msra.mxu0 %v3840_v32  ;;  %v4428_v32 = vcombine.low %v575_v42, %v578_v6  ;;  %v2932_v29 = vcombine.low %v4106_v0, %v550_v51  ;;  %v3848_v0 = vld [vmem:[%s4712_s1 + $0x1a0] sm:$0xff]   ;;  %v4459_v5 = vcombine.low %v589_v45, %v592_v63  ;;  %v604_v9 = vrot.slane %v602_v40, 4  ;;  %v4732_v42 = vld [vmem:[#allocation4_spill] sm:$0xff]  ;;  %v3860_v6 = vld [vmem:[%s4712_s1 + $0x1d0] sm:$0xff]  }
  0x58   : > { %3505 = vmatprep.mubr.bf16.mxu0 %v4392_v16  ;;  %3519 = vmatprep.subr.bf16.mxu0 %v3842_v10  ;;  %v4465_v38 = vcombine.low %v596_v4, %v599_v1  ;;  %v605_v47 = vrot.slane %v4295_v56, 5  ;;  %v603_v28 = vsel %vm4095_vm5, %v2866_v43, %v602_v40  ;;  %v4733_v13 = vld [vmem:[#allocation5_spill] sm:$0xff]  ;;  %v3865_v18 = vld [vmem:[%s4712_s1 + $0xe8] sm:$0xff]   ;;  %v3873_v21 = vld [vmem:[%s4712_s1 + $0x200] sm:$0xff]  }
  0x59   : > { %3378 = vmatmul.mubr.bf16.gmra.mrb[4].mxu1 %v4196_v15  ;;  %v3868_v24 = vld [vmem:[%s4712_s1 + $0xf0] sm:$0xff]   ;;  %v3872_v51 = vld [vmem:[%s4712_s1 + $0x1f8] sm:$0xff]   ;;  %v3874_v12 = vld [vmem:[%s4712_s1 + $0x208] sm:$0xff]  }
  0x5a   : > { %3394 = vmatpush3.bf16.msra.mxu1 %v3843_v41  ;;  %3381 = vmatprep.mubr.bf16.mxu1 %v4226_v52  ;;  %v3853_v41 = vld [vmem:[%s4712_s1 + $0xb8] sm:$0xff]   ;;  %v606_v56 = vsel %vm4095_vm5, %v604_v9, %v605_v47  ;;  %v4546_v37 = vld [vmem:[%s4016_s30 + $0x90] sm:$0xf]  ;;  %v4549_v19 = vld [vmem:[%s4016_s30 + $0x94] sm:$0xf] }
  0x5b   : > { %3395 = vmatprep.subr.bf16.mxu1 %v3845_v34  ;;  %3520 = vmatpush3.bf16.msra.mxu0 %v3842_v10  ;;  %v4484_v27 = vcombine.low %v603_v28, %v606_v56  ;;  %v3854_v10 = vld [vmem:[%s4712_s1 + $0x1b8] sm:$0xff]   ;;  %v3870_v3 = vld [vmem:[%s4712_s1 + $0x1f0] sm:$0xff]   ;;  %v3039_v26 = vcombine.low %v4546_v37, %v4549_v19  ;;  %v3878_v4 = vld [vmem:[%s4712_s1 + $0x228] sm:$0xff]  }
  0x5c   : > { %3521 = vmatprep.subr.bf16.mxu0 %v3844_v8  ;;  %v3875_v2 = vld [vmem:[%s4712_s1 + $0x210] sm:$0xff]  }
  0x5e   : > { %3396 = vmatpush3.bf16.msra.mxu1 %v3845_v34  ;;  %3506 = vmatmul.mubr.bf16.gmra.mrb[4].mxu0 %v4428_v32  ;;  %v3858_v34 = vld [vmem:[%s4712_s1 + $0x1c8] sm:$0xff]  }
  0x5f   : > { %3397 = vmatprep.subr.bf16.mxu1 %v3847_v39  ;;  %3522 = vmatpush3.bf16.msra.mxu0 %v3844_v8  ;;  %v3863_v8 = vld [vmem:[%s4712_s1 + $0xe0] sm:$0xff]  }
  0x60   : > { %3509 = vmatprep.mubr.bf16.mxu0 %v4433_v46  ;;  %3523 = vmatprep.subr.bf16.mxu0 %v3846_v54 }
  0x61   : > { %3382 = vmatmul.mubr.bf16.gmra.mrb[8].mxu1 %v4269_v62 }
  0x62   : > { %3398 = vmatpush3.bf16.msra.mxu1 %v3847_v39  ;;  %3385 = vmatprep.mubr.bf16.mxu1 %v4303_v31  ;;  %v3864_v39 = vld [vmem:[%s4712_s1 + $0x1e0] sm:$0xff]  }
  0x63   : > { %3399 = vmatprep.subr.bf16.mxu1 %v3849_v60  ;;  %3524 = vmatpush3.bf16.msra.mxu0 %v3846_v54  ;;  %v4734_v54 = vld [vmem:[#allocation3_spill] sm:$0xff] }
  0x64   : > { %3525 = vmatprep.subr.bf16.mxu0 %v3848_v0 }
  0x66   : > { %3400 = vmatpush3.bf16.msra.mxu1 %v3849_v60  ;;  %3510 = vmatmul.mubr.bf16.gmra.mrb[8].mxu0 %v4459_v5  ;;  %v497_v60 = vshll.u32 %v4549_v19, 16 }
  0x67   : > { %3401 = vmatprep.subr.bf16.mxu1 %v3851_v57  ;;  %3526 = vmatpush3.bf16.msra.mxu0 %v3848_v0 }
  0x68   : > { %3513 = vmatprep.mubr.bf16.mxu0 %v4465_v38  ;;  %3527 = vmatprep.subr.bf16.mxu0 %v3850_v14  ;;  %v499_v40 = vrot.slane %v497_v60, 5 }
  0x69   : > { %3386 = vmatmul.mubr.bf16.gmra.mrb[12].mxu1 %v4328_v55 }
  0x6a   : > { %3402 = vmatpush3.bf16.msra.mxu1 %v3851_v57  ;;  %3405 = vmatprep.mubr.bf16.mxu1 %v2932_v29  ;;  %v491_v29 = vshll.u32 %v4546_v37, 16 }
  0x6b   : > { %3403 = vmatprep.subr.bf16.mxu1 %v3853_v41  ;;  %3528 = vmatpush3.bf16.msra.mxu0 %v3850_v14 }
  0x6c   : > { %3529 = vmatprep.subr.bf16.mxu0 %v3852_v35  ;;  %v493_v63 = vrot.slane %v491_v29, 5  ;;  %v4643_v29 = vld [vmem:[%s4714_s3] ss:$0 sm:$0xff] }
  0x6e   : > { %3404 = vmatpush3.bf16.msra.mxu1 %v3853_v41  ;;  %3514 = vmatmul.mubr.bf16.gmra.mrb[12].mxu0 %v4484_v27 }
  0x6f   : > { %3421 = vmatprep.subr.bf16.mxu1 %v3855_v7  ;;  %3530 = vmatpush3.bf16.msra.mxu0 %v3852_v35 }
  0x70   : > { %3533 = vmatprep.mubr.bf16.mxu0 %v4148_v30  ;;  %3531 = vmatprep.subr.bf16.mxu0 %v3854_v10 }
  0x71   : > { %3406 = vmatmul.mubr.bf16.vlgmr.msra.gmra.mrb[0].mxu1 %v4363_v33  ;;  %v3861_v33 = vld [vmem:[%s4712_s1 + $0xd8] sm:$0xff]  }
  0x72   : > { %3422 = vmatpush3.bf16.msra.mxu1 %v3855_v7  ;;  %3409 = vmatprep.mubr.bf16.mxu1 %v4389_v20 }
  0x73   : > { %3423 = vmatprep.subr.bf16.mxu1 %v3857_v53  ;;  %3532 = vmatpush3.bf16.msra.mxu0 %v3854_v10 }
  0x74   : > { %3549 = vmatprep.subr.bf16.mxu0 %v3856_v58 }
  0x76   : > { %3424 = vmatpush3.bf16.msra.mxu1 %v3857_v53  ;;  %3534 = vmatmul.mubr.bf16.vlgmr.msra.gmra.mrb[0].mxu0 %v4176_v61 }
  0x77   : > { %3425 = vmatprep.subr.bf16.mxu1 %v3859_v49  ;;  %3550 = vmatpush3.bf16.msra.mxu0 %v3856_v58 }
  0x78   : > { %3537 = vmatprep.mubr.bf16.mxu0 %v4732_v42  ;;  %3551 = vmatprep.subr.bf16.mxu0 %v3858_v34 }
  0x79   : > { %3410 = vmatmul.mubr.bf16.gmra.mrb[4].mxu1 %v4392_v16 }
  0x7a   : > { %3426 = vmatpush3.bf16.msra.mxu1 %v3859_v49  ;;  %3413 = vmatprep.mubr.bf16.mxu1 %v4428_v32 }
  0x7b   : > { %3427 = vmatprep.subr.bf16.mxu1 %v3861_v33  ;;  %3552 = vmatpush3.bf16.msra.mxu0 %v3858_v34 }
  0x7c   : > { %3553 = vmatprep.subr.bf16.mxu0 %v3860_v6 }
  0x7e   : > { %3428 = vmatpush3.bf16.msra.mxu1 %v3861_v33  ;;  %3538 = vmatmul.mubr.bf16.gmra.mrb[4].mxu0 %v4733_v13 }
  0x7f   : > { %3429 = vmatprep.subr.bf16.mxu1 %v3863_v8  ;;  %3554 = vmatpush3.bf16.msra.mxu0 %v3860_v6 }
  0x80   : > { %3541 = vmatprep.mubr.bf16.mxu0 %v4252_v44  ;;  %3555 = vmatprep.subr.bf16.mxu0 %v3862_v11 }
  0x81   : > { %3414 = vmatmul.mubr.bf16.gmra.mrb[8].mxu1 %v4433_v46 }
  0x82   : > { %3430 = vmatpush3.bf16.msra.mxu1 %v3863_v8  ;;  %3417 = vmatprep.mubr.bf16.mxu1 %v4459_v5 }
  0x83   : > { %3431 = vmatprep.subr.bf16.mxu1 %v3865_v18  ;;  %3556 = vmatpush3.bf16.msra.mxu0 %v3862_v11 }
  0x84   : > { %3557 = vmatprep.subr.bf16.mxu0 %v3864_v39 }
  0x86   : > { %3432 = vmatpush3.bf16.msra.mxu1 %v3865_v18  ;;  %3542 = vmatmul.mubr.bf16.gmra.mrb[8].mxu0 %v4289_v17 }
  0x87   : > { %3433 = vmatprep.subr.bf16.mxu1 %v3868_v24  ;;  %3558 = vmatpush3.bf16.msra.mxu0 %v3864_v39 }
  0x88   : > { %3545 = vmatprep.mubr.bf16.mxu0 %v4351_v23  ;;  %3559 = vmatprep.subr.bf16.mxu0 %v3866_v48 }
  0x89   : > { %3418 = vmatmul.mubr.bf16.gmra.mrb[12].mxu1 %v4465_v38 }
  0x8a   : > { %3434 = vmatpush3.bf16.msra.mxu1 %v3868_v24  ;;  %3437 = vmatprep.mubr.bf16.mxu1 %v4734_v54 }
  0x8b   : > { %3435 = vmatprep.subr.bf16.mxu1 %v3871_v22  ;;  %3560 = vmatpush3.bf16.msra.mxu0 %v3866_v48 }
  0x8c   : > { %3561 = vmatprep.subr.bf16.mxu0 %v3870_v3 }
  0x8e   : > { %3436 = vmatpush3.bf16.msra.mxu1 %v3871_v22  ;;  %3546 = vmatmul.mubr.bf16.gmra.mrb[12].mxu0 %v3039_v26  ;;  %v4637_v26 = vld [vmem:[%s4713_s2] ss:$0 sm:$0xff] }
  0x8f   : > { %3613 = vmatprep.subr.bf16.mxu1 %v3873_v21  ;;  %3562 = vmatpush3.bf16.msra.mxu0 %v3870_v3 }
  0x90   : > { %3565 = vmatprep.mubr.bf16.mxu0 %v4156_v36  ;;  %3563 = vmatprep.subr.bf16.mxu0 %v3872_v51  ;;  %v3876_v36 = vld [vmem:[%s4712_s1 + $0x218] sm:$0xff]  }
  0x91   : > { %3438 = vmatmul.mubr.bf16.vlgmr.msra.gmra.mrb[0].mxu1 %v4148_v30  ;;  %v488_v30 = vshrl.u32 %v4546_v37, 16 }
  0x92   : > { %3621 = vmatpush3.bf16.msra.mxu1 %v3873_v21  ;;  %3441 = vmatprep.mubr.bf16.mxu1 %v4176_v61  ;;  %v501_v61 = vshrl.u32 %v4549_v19, 16 }
  0x93   : > { %3614 = vmatprep.subr.bf16.mxu1 %v3874_v12  ;;  %3564 = vmatpush3.bf16.msra.mxu0 %v3872_v51  ;;  %v490_v45 = vrot.slane %v488_v30, 4 }
  0x94   : > { %3581 = vmatprep.subr.bf16.mxu0 %v3873_v21  ;;  %v503_v0 = vrot.slane %v501_v61, 4 }
  0x95   : > { %v494_v1 = vor.u32 %v493_v63, %v490_v45 }
  0x96   : > { %3622 = vmatpush3.bf16.msra.mxu1 %v3874_v12  ;;  %3566 = vmatmul.mubr.bf16.vlgmr.msra.gmra.mrb[0].mxu0 %v4196_v15  ;;  %v3877_v15 = vld [vmem:[%s4712_s1 + $0x220] sm:$0xff]   ;;  %v504_v57 = vor.u32 %v503_v0, %v499_v40 }
  0x97   : > { %3615 = vmatprep.subr.bf16.mxu1 %v3875_v2  ;;  %3582 = vmatpush3.bf16.msra.mxu0 %v3873_v21  ;;  %v495_v9 = vrot.slane %v494_v1, 4 }
  0x98   : > { %3569 = vmatprep.mubr.bf16.mxu0 %v4226_v52  ;;  %3583 = vmatprep.subr.bf16.mxu0 %v3874_v12  ;;  %v267_v52 = vld [vmem:[%s4016_s30 + $0x98] sm:$0xf]  ;;  %v505_v47 = vrot.slane %v504_v57, 4 }
  0x99   : > { %3442 = vmatmul.mubr.bf16.gmra.mrb[4].mxu1 %v4732_v42  ;;  %v507_v43 = vshll.u32 %v267_v52, 16  ;;  %v612_v56 = vrot.slane %v267_v52, 5 }
  0x9a   : > { %3623 = vmatpush3.bf16.msra.mxu1 %v3875_v2  ;;  %3445 = vmatprep.mubr.bf16.mxu1 %v4733_v13 }
  0x9b   : > { %3616 = vmatprep.subr.bf16.mxu1 %v3876_v36  ;;  %3584 = vmatpush3.bf16.msra.mxu0 %v3874_v12  ;;  %v509_v14 = vrot.slane %v507_v43, 5 }
  0x9c   : > { %3585 = vmatprep.subr.bf16.mxu0 %v3875_v2 }
  0x9e   : > { %3624 = vmatpush3.bf16.msra.mxu1 %v3876_v36  ;;  %3570 = vmatmul.mubr.bf16.gmra.mrb[4].mxu0 %v4269_v62  ;;  %v3879_v62 = vld [vmem:[%s4712_s1 + $0x230] sm:$0xff]  }
  0x9f   : > { %3617 = vmatprep.subr.bf16.mxu1 %v3877_v15  ;;  %3586 = vmatpush3.bf16.msra.mxu0 %v3875_v2 }
  0xa0   : > { %3573 = vmatprep.mubr.bf16.mxu0 %v4303_v31  ;;  %3587 = vmatprep.subr.bf16.mxu0 %v3876_v36  ;;  %v510_v31 = vsel %vm4086_vm4, %v505_v47, %v509_v14 }
  0xa1   : > { %3446 = vmatmul.mubr.bf16.gmra.mrb[8].mxu1 %v4252_v44  ;;  %v3880_v44 = vld [vmem:[%s4712_s1 + $0x238] sm:$0xff]  }
  0xa2   : > { %3625 = vmatpush3.bf16.msra.mxu1 %v3877_v15  ;;  %3449 = vmatprep.mubr.bf16.mxu1 %v4289_v17  ;;  %v500_v17 = vsel %vm4086_vm4, %v495_v9, %v499_v40 }
  0xa3   : > { %3618 = vmatprep.subr.bf16.mxu1 %v3878_v4  ;;  %3588 = vmatpush3.bf16.msra.mxu0 %v3876_v36  ;;  %v3064_v41 = vcombine.low %v500_v17, %v510_v31 }
  0xa4   : > { %3589 = vmatprep.subr.bf16.mxu0 %v3877_v15 }
  0xa6   : > { %3626 = vmatpush3.bf16.msra.mxu1 %v3878_v4  ;;  %3574 = vmatmul.mubr.bf16.gmra.mrb[8].mxu0 %v4328_v55  ;;  %v609_v55 = vrot.slane %v4549_v19, 5 }
  0xa7   : > { %3619 = vmatprep.subr.bf16.mxu1 %v3879_v62  ;;  %3590 = vmatpush3.bf16.msra.mxu0 %v3877_v15 }
  0xa8   : > { %3577 = vmatprep.mubr.bf16.mxu0 %v4361_v25  ;;  %3591 = vmatprep.subr.bf16.mxu0 %v3878_v4  ;;  %v2867_v25 = vrot.slane %v4546_v37, 9  ;;  %v611_v28 = vrot.slane %v609_v55, 4 }
  0xa9   : > { %3450 = vmatmul.mubr.bf16.gmra.mrb[12].mxu1 %v4351_v23 }
  0xaa   : > { %3627 = vmatpush3.bf16.msra.mxu1 %v3879_v62  ;;  %3605 = vmatprep.mubr.bf16.mxu1 %v4459_v5  ;;  %v610_v50 = vsel %vm4095_vm5, %v2867_v25, %v609_v55  ;;  %v613_v23 = vsel %vm4095_vm5, %v611_v28, %v612_v56 }
  0xab   : > { %3620 = vmatprep.subr.bf16.mxu1 %v3880_v44  ;;  %3592 = vmatpush3.bf16.msra.mxu0 %v3878_v4  ;;  %v3089_v5 = vcombine.low %v610_v50, %v613_v23 }
  0xac   : > { %3593 = vmatprep.subr.bf16.mxu0 %v3879_v62 }
  0xae   : > { %3628 = vmatpush3.bf16.msra.mxu1 %v3880_v44  ;;  %3578 = vmatmul.mubr.bf16.gmra.mrb[12].mxu0 %v3064_v41 }
  0xaf   : > { %3594 = vmatpush3.bf16.msra.mxu0 %v3879_v62  ;;  %3597 = vmatprep.mubr.bf16.mxu0 %v4389_v20 }
  0xb0   : > { %3595 = vmatprep.subr.bf16.mxu0 %v3880_v44 }
  0xb1   : > { %3606 = vmatmul.mubr.bf16.vlgmr.msra.gmra.mrb[16].mxu1 %v4465_v38 }
  0xb2   : > { %3609 = vmatprep.mubr.bf16.mxu1 %v4484_v27 }
  0xb3   : > { %3596 = vmatpush3.bf16.msra.mxu0 %v3880_v44 }
  0xb6   : > { %3598 = vmatmul.mubr.bf16.vlgmr.msra.gmra.mrb[0].mxu0 %v4392_v16 }
  0xb7   : > { %3601 = vmatprep.mubr.bf16.mxu0 %v4428_v32 }
  0xb9   : > { %3610 = vmatmul.mubr.bf16.gmra.mrb[20].mxu1 %v3089_v5 }
  0xbe   : > { %3602 = vmatmul.mubr.bf16.gmra.mrb[4].mxu0 %v4433_v46 }
 0x164   : > { %v3439_v20 = vpop.f32.mrb[0].mxu1 }
 0x165   : > { %v1410_v38 = vpop.f32.mrb[1].mxu1 }
 0x166   : > { %v4621_v35 = vpop.f32.mrb[2].mxu1 }
 0x167   : > { %v4623_v27 = vpop.f32.mrb[3].mxu1 }
 0x16c   : > { %v4625_v7 = vpop.f32.mrb[4].mxu1 }
 0x16d   : > { %v4627_v59 = vpop.f32.mrb[5].mxu1 }
 0x16e   : > { %v4629_v10 = vpop.f32.mrb[6].mxu1 }
 0x16f   : > { %v4631_v53 = vpop.f32.mrb[7].mxu1 }
 0x174   : > { %v3447_v16 = vpop.f32.mrb[8].mxu1 }
 0x175   : > { %v1442_v32 = vpop.f32.mrb[9].mxu1 }
 0x176   : > { %v3448_v58 = vpop.f32.mrb[10].mxu1 }
 0x177   : > { %v1445_v49 = vpop.f32.mrb[11].mxu1 }
 0x179   : > { %v3575_v34 = vpop.f32.mrb[8].mxu0 }
 0x17a   : > { %v3637_v46 = vadd.f32 %v3575_v34, %v3447_v16  ;;  %v2298_v33 = vpop.f32.mrb[9].mxu0 }
 0x17b   : > { %v3639_v42 = vadd.f32 %v2298_v33, %v1442_v32  ;;  %v3576_v6 = vpop.f32.mrb[10].mxu0 }
 0x17c   : > { %v3451_v8 = vpop.f32.mrb[12].mxu1  ;;  %v3641_v11 = vadd.f32 %v3576_v6, %v3448_v58  ;;  %v2301_v13 = vpop.f32.mrb[11].mxu0 }
 0x17d   : > { %v1458_v18 = vpop.f32.mrb[13].mxu1  ;;  %v3643_v39 = vadd.f32 %v2301_v13, %v1445_v49 }
 0x17e   : > { %v3452_v24 = vpop.f32.mrb[14].mxu1 }
 0x17f   : > { %v1461_v48 = vpop.f32.mrb[15].mxu1 }
 0x181   : > { %v3579_v22 = vpop.f32.mrb[12].mxu0 }
 0x182   : > { %v3645_v37 = vadd.f32 %v3579_v22, %v3451_v8  ;;  %v2314_v19 = vpop.f32.mrb[13].mxu0 }
 0x183   : > { %v3647_v3 = vadd.f32 %v2314_v19, %v1458_v18  ;;  %v3580_v54 = vpop.f32.mrb[14].mxu0 }
 0x184   : > { %v3607_v21 = vpop.f32.mrb[16].mxu1  ;;  %v3649_v51 = vadd.f32 %v3580_v54, %v3452_v24  ;;  %v2317_v12 = vpop.f32.mrb[15].mxu0 }
 0x185   : > { %v3638_v2 = vadd.f32 %v3637_v46, %v3607_v21  ;;  %v2512_v36 = vpop.f32.mrb[17].mxu1  ;;  %v3651_v30 = vadd.f32 %v2317_v12, %v1461_v48 }
 0x186   : > { %v3640_v61 = vadd.f32 %v3639_v42, %v2512_v36  ;;  %v3608_v60 = vpop.f32.mrb[18].mxu1 }
 0x187   : > { %v2624_v15 = vmul.f32 %v3638_v2, %v4637_v26  ;;  %v3642_v45 = vadd.f32 %v3641_v11, %v3608_v60  ;;  %v2515_v63 = vpop.f32.mrb[19].mxu1 }
 0x188   : > { %v2622_v40 = vmul.f32 %v3640_v61, %v4637_v26  ;;  %v3644_v0 = vadd.f32 %v3643_v39, %v2515_v63 }
 0x189   : > { %v2647_v52 = vadd.f32 %v4643_v29, %v2624_v15  ;;  %v2625_v4 = vmul.f32 %v3642_v45, %v4637_v26  ;;  %v3599_v1 = vpop.f32.mrb[0].mxu0 }
 0x18a   : > { %v2645_v57 = vadd.f32 %v4643_v29, %v2622_v40  ;;  %v2623_v43 = vmul.f32 %v3644_v0, %v4637_v26  ;;  %v3629_v62 = vadd.f32 %v3599_v1, %v3439_v20  ;;  %v2480_v9 = vpop.f32.mrb[1].mxu0 }
 0x18b   : > { %v2648_v47 = vadd.f32 %v4643_v29, %v2625_v4  ;;  %v2663_v14 = vmax.f32 %v2647_v52, 0.0  ;;  %v3630_v44 = vadd.f32 %v2480_v9, %v1410_v38  ;;  %v3600_v31 = vpop.f32.mrb[2].mxu0 }
 0x18c   : > { %v2661_v17 = vmax.f32 %v2645_v57, 0.0  ;;  %v2646_v55 = vadd.f32 %v4643_v29, %v2623_v43  ;;  %v3611_v41 = vpop.f32.mrb[20].mxu1  ;;  %v2616_v25 = vmul.f32 %v3629_v62, %v4637_v26  ;;  %v3631_v28 = vadd.f32 %v3600_v31, %v4621_v35  ;;  %v2483_v50 = vpop.f32.mrb[3].mxu0 }
 0x18d   : > { %v2664_v56 = vmax.f32 %v2648_v47, 0.0  ;;  %v3646_v23 = vadd.f32 %v3645_v37, %v3611_v41  ;;  %v2528_v5 = vpop.f32.mrb[21].mxu1  ;;  %v2614_v20 = vmul.f32 %v3630_v44, %v4637_v26  ;;  %v3632_v38 = vadd.f32 %v2483_v50, %v4623_v27 }
 0x18e   : > { %v2662_v16 = vmax.f32 %v2646_v55, 0.0  ;;  %v3648_v32 = vadd.f32 %v3647_v3, %v2528_v5  ;;  %v3612_v58 = vpop.f32.mrb[22].mxu1  ;;  %v2639_v35 = vadd.f32 %v4643_v29, %v2616_v25  ;;  %v2617_v49 = vmul.f32 %v3631_v28, %v4637_v26 }
 0x18f   : > { %v3162_v34 = vpack.c.bf16 %v2664_v56, %v2663_v14  ;;  %v2628_v46 = vmul.f32 %v3646_v23, %v4637_v26  ;;  %v2531_v33 = vpop.f32.mrb[23].mxu1  ;;  %v2637_v42 = vadd.f32 %v4643_v29, %v2614_v20  ;;  %v2615_v6 = vmul.f32 %v3632_v38, %v4637_v26 }
 0x190   : > { %v3157_v8 = vpack.c.bf16 %v2662_v16, %v2661_v17  ;;  %v2626_v11 = vmul.f32 %v3648_v32, %v4637_v26  ;;  %v2640_v27 = vadd.f32 %v4643_v29, %v2617_v49  ;;  %v3650_v13 = vadd.f32 %v3649_v51, %v3612_v58 }
 0x191   : > { %3178 = vst [vmem:[%s4659_s11 + $0x28] sm:$0xff] %v3162_v34   ;;  %v2655_v18 = vmax.f32 %v2639_v35, 0.0  ;;  %v2638_v39 = vadd.f32 %v4643_v29, %v2615_v6  ;;  %v3603_v24 = vpop.f32.mrb[4].mxu0  ;;  %v2651_v48 = vadd.f32 %v4643_v29, %v2628_v46  ;;  %v3652_v22 = vadd.f32 %v3651_v30, %v2531_v33 }
 0x192   : > { %3177 = vst [vmem:[%s4659_s11 + $0x20] sm:$0xff] %v3157_v8   ;;  %v2653_v37 = vmax.f32 %v2637_v42, 0.0  ;;  %v2656_v19 = vmax.f32 %v2640_v27, 0.0  ;;  %v3633_v3 = vadd.f32 %v3603_v24, %v4625_v7  ;;  %v2496_v54 = vpop.f32.mrb[5].mxu0  ;;  %v2629_v21 = vmul.f32 %v3650_v13, %v4637_v26 }
 0x193   : > { %v2654_v12 = vmax.f32 %v2638_v39, 0.0  ;;  %v3634_v2 = vadd.f32 %v2496_v54, %v4627_v59  ;;  %v2649_v51 = vadd.f32 %v4643_v29, %v2626_v11  ;;  %v3604_v36 = vpop.f32.mrb[6].mxu0  ;;  %v2627_v61 = vmul.f32 %v3652_v22, %v4637_v26 }
 0x194   : > { %v3142_v60 = vpack.c.bf16 %v2656_v19, %v2655_v18  ;;  %v2620_v30 = vmul.f32 %v3633_v3, %v4637_v26  ;;  %v3635_v15 = vadd.f32 %v3604_v36, %v4629_v10  ;;  %v2652_v7 = vadd.f32 %v4643_v29, %v2629_v21  ;;  %v2499_v45 = vpop.f32.mrb[7].mxu0 }
 0x195   : > { %v3137_v63 = vpack.c.bf16 %v2654_v12, %v2653_v37  ;;  %v2618_v40 = vmul.f32 %v3634_v2, %v4637_v26  ;;  %v3636_v0 = vadd.f32 %v2499_v45, %v4631_v53  ;;  %v2650_v59 = vadd.f32 %v4643_v29, %v2627_v61 }
 0x196   : > { %3174 = vst [vmem:[%s4659_s11 + $0x8] sm:$0xff] %v3142_v60   ;;  %v2643_v52 = vadd.f32 %v4643_v29, %v2620_v30  ;;  %v2667_v4 = vmax.f32 %v2651_v48, 0.0  ;;  %v2621_v1 = vmul.f32 %v3635_v15, %v4637_v26  ;;  %v2668_v57 = vmax.f32 %v2652_v7, 0.0 }
 0x197   : > { %3138 = vst [vmem:[%s4659_s11] sm:$0xff] %v3137_v63   ;;  %v2641_v10 = vadd.f32 %v4643_v29, %v2618_v40  ;;  %v2665_v43 = vmax.f32 %v2649_v51, 0.0  ;;  %v2619_v62 = vmul.f32 %v3636_v0, %v4637_v26  ;;  %v2666_v53 = vmax.f32 %v2650_v59, 0.0 }
 0x198   : > { %v2644_v9 = vadd.f32 %v4643_v29, %v2621_v1  ;;  %v3172_v47 = vpack.c.bf16 %v2668_v57, %v2667_v4  ;;  %v2659_v17 = vmax.f32 %v2643_v52, 0.0 }
 0x199   : > { %v2642_v14 = vadd.f32 %v4643_v29, %v2619_v62  ;;  %v3167_v44 = vpack.c.bf16 %v2666_v53, %v2665_v43  ;;  %v2657_v55 = vmax.f32 %v2641_v10, 0.0 }
 0x19a   : > { %v2660_v31 = vmax.f32 %v2644_v9, 0.0  ;;  %3180 = vst [vmem:[%s4659_s11 + $0x38] sm:$0xff] %v3172_v47  }
 0x19b   : > { %v2658_v41 = vmax.f32 %v2642_v14, 0.0  ;;  %3179 = vst [vmem:[%s4659_s11 + $0x30] sm:$0xff] %v3167_v44  }
 0x19c   : > { %v3152_v25 = vpack.c.bf16 %v2660_v31, %v2659_v17 }
 0x19d   : > { %v3147_v28 = vpack.c.bf16 %v2658_v41, %v2657_v55 }
 0x19e   : > { %3176 = vst [vmem:[%s4659_s11 + $0x18] sm:$0xff] %v3152_v25  }
 0x19f   : > { %3175 = vst [vmem:[%s4659_s11 + $0x10] sm:$0xff] %v3147_v28  }
 0x1a0 PF: > { %s14_s19 = sadd.s32 1, %s3919_s19   ;;  %s4735_s15 = smov %s3911_s17 }
 0x1a1   : > { %p11_p8 = scmp.ge.s32.totalorder %s14_s19, 6   ;;  %s4736_s16 = smov %s3915_s18 }
 0x1a2   : > { %s4737_s17 = smov %s4740_s20  ;;  %s4738_s18 = smov %s4744_s21 }
 0x1a3   :  { %13 = sbr.rel (!%p11_p8) target bundleno = 3 (0x3), region = 74 }

</bundles_post_ra>
